<compile_context>
chip_gen: v7x
topology: tpu7x:2x2x1
jax: 0.10.0
libtpu: 0.0.40
codegen_flags: <defaults>
</compile_context>

<pallas_src>
import functools

import jax
import jax.numpy as jnp
from jax.experimental import pallas as pl
from jax.experimental.pallas import tpu as pltpu


def _seq_kernel(x3_ref, consts_ref, whh_ref, weff_ref, out_ref, *,
                seq_len, future, chunk, n_interleave, matmul_dtype):
    """One batch block: full teacher-forced + autoregressive recurrence.

    x3_ref    : (n_chunks, TB, chunk) teacher-forced inputs, chunk-major.
    consts_ref: (8, H) packed constants: row0=Wih^T, row1=b_ih+b_hh,
                row2=fused b_eff, row3=Wlin row, [4,0]=b_lin.
    whh_ref   : (H, H)  Whh^T.
    weff_ref  : (H, H)  Whh^T + Wlin^T Wih^T (fused autoregressive step).
    out_ref   : (TB, S) outputs, S = seq_len + future.
    """
    TB, S = out_ref.shape
    H = whh_ref.shape[0]
    n = n_interleave
    sub = TB // n

    # ---- loop-invariant setup (hoisted broadcasts, weights cast once) ------
    consts = consts_ref[...]
    wih_b = jnp.broadcast_to(consts[0:1, :], (sub, H))    # Wih^T row
    bias_b = jnp.broadcast_to(consts[1:2, :], (sub, H))   # b_ih + b_hh
    beff_b = jnp.broadcast_to(consts[2:3, :], (sub, H))   # fused bias
    wlin_b = jnp.broadcast_to(consts[3:4, :], (sub, H))   # linear weight row
    blin = consts[4:5, 0:1]                                # linear bias (1,1)

    whh = whh_ref[...].astype(matmul_dtype)
    weff = weff_ref[...].astype(matmul_dtype)
    precision = (jax.lax.Precision.HIGHEST
                 if matmul_dtype == jnp.float32 else None)

    col = jax.lax.broadcasted_iota(jnp.int32, (sub, S), 1)

    def mm(h, w):
        # MXU matmul; inputs in `matmul_dtype` (bf16 => single MXU pass on
        # v6e/v7x), accumulation/output pinned to f32.
        return jnp.dot(h.astype(matmul_dtype), w,
                       preferred_element_type=jnp.float32,
                       precision=precision)

    def readout(h):
        # VPU mul + XLU lane-reduce; avoids a per-step N=1 MXU matmul.
        return jnp.sum(h * wlin_b, axis=-1, keepdims=True) + blin   # (sub, 1)

    def scatter(out_k, t, y_k):
        # NOTE(perf): at very large S this select touches all S/128 output
        # vregs each step; restrict it to the vreg containing column t (or
        # stage y via a small VMEM scratch) if S grows into the thousands.
        return jnp.where(col == t, y_k, out_k)

    def tf_step(t, x_cols, hs, outs):
        # One teacher-forced step for all interleaved sub-tiles. The input
        # projection sits off the serial h chain (free VPU/XLU filler); the n
        # independent chains hide each other's MXU/EUP latency.
        new_hs, new_outs = [], []
        for k in range(n):
            xw = x_cols[k] * wih_b + bias_b
            h_k = jnp.tanh(xw + mm(hs[k], whh))
            new_hs.append(h_k)
            new_outs.append(scatter(outs[k], t, readout(h_k)))
        return tuple(new_hs), tuple(new_outs)

    def ar_step(t, hs, outs):
        # Autoregressive step with the linear readout folded into the
        # recurrence: h' = tanh(h @ W_eff + b_eff).
        new_hs, new_outs = [], []
        for k in range(n):
            h_k = jnp.tanh(mm(hs[k], weff) + beff_b)
            new_hs.append(h_k)
            new_outs.append(scatter(outs[k], t, readout(h_k)))
        return tuple(new_hs), tuple(new_outs)

    def split_cols(x_ck, i):
        # Static, sublane-aligned slices: per-sub-tile input column for
        # in-chunk step i.
        return [x_ck[k * sub:(k + 1) * sub, i:i + 1] for k in range(n)]

    hs = tuple(jnp.zeros((sub, H), jnp.float32) for _ in range(n))
    outs = tuple(jnp.zeros((sub, S), jnp.float32) for _ in range(n))

    # ---- teacher-forced phase: fori_loop over chunks, static inner unroll --
    n_full, rem = divmod(seq_len, chunk)

    def tf_chunk(c, carry):
        hs_c, outs_c = carry
        x_ck = x3_ref[c]                       # (TB, chunk) leading-dim index
        for i in range(chunk):                 # static unroll: LLO visibility
            hs_c, outs_c = tf_step(c * chunk + i, split_cols(x_ck, i),
                                   hs_c, outs_c)
        return hs_c, outs_c

    if n_full > 0:
        hs, outs = jax.lax.fori_loop(0, n_full, tf_chunk, (hs, outs))
    if rem > 0:                                # static tail (< chunk steps)
        x_ck = x3_ref[n_full]
        for i in range(rem):
            hs, outs = tf_step(n_full * chunk + i, split_cols(x_ck, i),
                               hs, outs)

    # ---- autoregressive phase ----------------------------------------------
    f_full, f_rem = divmod(future, chunk)

    def ar_chunk(c, carry):
        hs_c, outs_c = carry
        for i in range(chunk):
            hs_c, outs_c = ar_step(seq_len + c * chunk + i, hs_c, outs_c)
        return hs_c, outs_c

    if f_full > 0:
        hs, outs = jax.lax.fori_loop(0, f_full, ar_chunk, (hs, outs))
    for i in range(f_rem):
        hs, outs = ar_step(seq_len + f_full * chunk + i, hs, outs)

    # ---- one lane-dense store per sub-tile (static sublane offsets) --------
    for k in range(n):
        out_ref[k * sub:(k + 1) * sub, :] = outs[k]


def _tiling(batch, n_interleave, max_tb=256):
    """Pick (batch tile TB, interleave factor n).

    Grow TB toward the MXU height, prefer >=2 grid blocks when the batch
    allows (v7x megacore sharding), and keep every interleaved sub-tile
    sublane-aligned (multiple of 8 rows)."""
    if batch % 8 != 0:
        return batch, 1                         # tiny/ragged batch: one block
    n = max(1, n_interleave)
    while n > 1 and batch % (8 * n) != 0:
        n //= 2
    unit = 8 * n
    cands = [tb for tb in range(unit, min(batch, max_tb) + 1, unit)
             if batch % tb == 0]
    if not cands:
        return batch, 1
    tb = cands[-1]
    multi = [c for c in cands if batch // c >= 2]
    if multi:
        tb = multi[-1]                          # prefer >=2 blocks (megacore)
    return tb, n


def sequence_forward(x, params, future=0, *, chunk=8, n_interleave=2,
                     matmul_dtype=jnp.bfloat16):
    """Forward pass of `Sequence`: x (B, T) f32 -> (B, T + future) f32.

    `matmul_dtype` controls only the MXU inputs (bf16 = single-pass matmul on
    v6e/v7x); hidden state, elementwise math and outputs stay float32."""
    B, T = x.shape
    assert T >= 1, "need at least one observed timestep"
    wih_t, whh_t, bih, bhh, wlin_t, blin = params
    H = whh_t.shape[0]
    S = T + future

    # One-time weight preprocessing (off the serial chain).
    bias = bih + bhh                        # (1, H)
    w_eff = whh_t + wlin_t @ wih_t          # (H, H): fused autoregressive step
    b_eff = bias + blin * wih_t             # (1, H)

    # Pack the five tiny constants into one (8, H) operand: one startup DMA /
    # one set of double buffers instead of five.
    consts = jnp.zeros((8, H), jnp.float32)
    consts = consts.at[0, :].set(wih_t[0])
    consts = consts.at[1, :].set(bias[0])
    consts = consts.at[2, :].set(b_eff[0])
    consts = consts.at[3, :].set(wlin_t[:, 0])
    consts = consts.at[4, 0].set(blin[0, 0])

    # Chunk-major view of the input (n_chunks, B, chunk): pure layout plumbing
    # so the kernel only needs a leading-dim dynamic index per chunk.
    chunk = int(max(1, min(chunk, T)))
    n_chunks = -(-T // chunk)
    pad = n_chunks * chunk - T
    x3 = jnp.pad(x, ((0, 0), (0, pad))).reshape(B, n_chunks, chunk)
    x3 = jnp.transpose(x3, (1, 0, 2)).astype(jnp.float32)

    TB, n_ilv = _tiling(B, n_interleave)
    assert B % TB == 0 and TB % n_ilv == 0
    grid = (B // TB,)

    kernel = functools.partial(
        _seq_kernel, seq_len=T, future=int(future), chunk=chunk,
        n_interleave=n_ilv, matmul_dtype=matmul_dtype)

    return pl.pallas_call(
        kernel,
        out_shape=jax.ShapeDtypeStruct((B, S), jnp.float32),
        grid=grid,
        in_specs=[
            pl.BlockSpec((n_chunks, TB, chunk), lambda b: (0, b, 0)),  # x3
            pl.BlockSpec((8, H), lambda b: (0, 0)),                    # consts
            pl.BlockSpec((H, H), lambda b: (0, 0)),                    # Whh^T
            pl.BlockSpec((H, H), lambda b: (0, 0)),                    # W_eff
        ],
        out_specs=pl.BlockSpec((TB, S), lambda b: (b, 0)),
        compiler_params=pltpu.CompilerParams(
            dimension_semantics=("parallel",)),
    )(x3, consts, whh_t, w_eff)


def init_params(key, hdim):
    """Deterministic init mirroring nn.RNNCell / nn.Linear shapes, stored
    pre-transposed for the kernel:
      weight_ih.T (1,H), weight_hh.T (H,H), b_ih (1,H), b_hh (1,H),
      linear.weight.T (H,1), linear.bias (1,1)."""
    k = jax.random.split(key, 6)
    bound = 1.0 / jnp.sqrt(hdim)
    u = lambda kk, shape: jax.random.uniform(kk, shape, jnp.float32, -bound, bound)
    wih_t = u(k[0], (1, hdim))
    whh_t = u(k[1], (hdim, hdim))
    bih = u(k[2], (1, hdim))
    bhh = u(k[3], (1, hdim))
    wlin_t = u(k[4], (hdim, 1))
    blin = u(k[5], (1, 1))
    return wih_t, whh_t, bih, bhh, wlin_t, blin


def sequence_reference(x, params, future=0):
    """Pure-JAX reference of the PyTorch forward (non-fused math)."""
    wih_t, whh_t, bih, bhh, wlin_t, blin = params
    B, T = x.shape
    H = whh_t.shape[0]
    h = jnp.zeros((B, H), jnp.float32)
    outs = []
    y = None
    for t in range(T):
        x_t = x[:, t:t + 1]
        h = jnp.tanh(x_t @ wih_t + h @ whh_t + bih + bhh)
        y = h @ wlin_t + blin
        outs.append(y)
    for _ in range(future):
        h = jnp.tanh(y @ wih_t + h @ whh_t + bih + bhh)
        y = h @ wlin_t + blin
        outs.append(y)
    return jnp.concatenate(outs, axis=1)


if __name__ == "__main__":
    key = jax.random.PRNGKey(0)
    k_x, k_p = jax.random.split(key)

    # Small demo shapes: B=32 gives grid=(2,) (megacore) with 2-way interleave
    # inside each 16-row block.  If H is a free hyperparameter, a multiple of
    # 128 uses the padded lanes the kernel already pays for.
    B, T, H, FUTURE = 32, 16, 32, 6

    # Sine-wave-like input, analogous to np.sin(x / T) in the original script.
    phase = jax.random.uniform(k_x, (B, 1), jnp.float32, 0.0, 6.28)
    t_idx = jnp.arange(T, dtype=jnp.float32)[None, :]
    x = jnp.sin(t_idx / 5.0 + phase).astype(jnp.float32)

    params = init_params(k_p, H)
    ref = sequence_reference(x, params, future=FUTURE)

    # f32 MXU path (precision pinned): validated tightly against the pure-JAX
    # reference (fused-future-step algebra changes rounding order slightly).
    out_f32 = jax.block_until_ready(
        sequence_forward(x, params, future=FUTURE, matmul_dtype=jnp.float32))
    assert out_f32.shape == (B, T + FUTURE), out_f32.shape
    assert jnp.allclose(out_f32, ref, atol=2e-4, rtol=2e-4), "f32 mismatch"

    # bf16 MXU-input path (single-pass matmuls: the v6e/v7x recommendation).
    # Rounding compounds through the 20+-step tanh recurrence, so this run is
    # a shape/finiteness sanity check; numerical validation is the f32 path.
    out_bf16 = jax.block_until_ready(
        sequence_forward(x, params, future=FUTURE, matmul_dtype=jnp.bfloat16))
    assert out_bf16.shape == (B, T + FUTURE)
    assert bool(jnp.all(jnp.isfinite(out_bf16)))

    print("KERNEL_OK")
</pallas_src>

<mosaic_0001>
module attributes {stable_mosaic.version = 11 : i64} {
  func.func @_seq_kernel(%arg0: i32, %arg1: memref<2x16x8xf32, #tpu.memory_space<vmem>>, %arg2: memref<8x32xf32, #tpu.memory_space<vmem>>, %arg3: memref<32x32xf32, #tpu.memory_space<vmem>>, %arg4: memref<32x32xf32, #tpu.memory_space<vmem>>, %arg5: memref<16x22xf32, #tpu.memory_space<vmem>>) attributes {dimension_semantics = [#tpu.dimension_semantics<parallel>], iteration_bounds = array<i64: 2>, scalar_prefetch = 0 : i64, scratch_operands = 0 : i64, tpu.core_type = #tpu.core_type<tc>, window_params = [{transform_indices = @transform_0, window_bounds = array<i64: 2, 16, 8>}, {pipeline_mode = #tpu.pipeline_mode<synchronous>, transform_indices = @transform_1, window_bounds = array<i64: 8, 32>}, {pipeline_mode = #tpu.pipeline_mode<synchronous>, transform_indices = @transform_2, window_bounds = array<i64: 32, 32>}, {pipeline_mode = #tpu.pipeline_mode<synchronous>, transform_indices = @transform_3, window_bounds = array<i64: 32, 32>}, {transform_indices = @transform_4, window_bounds = array<i64: 16, 22>}]} {
    %c0 = arith.constant 0 : index
    %c0_0 = arith.constant 0 : index
    %0 = vector.load %arg2[%c0, %c0_0] : memref<8x32xf32, #tpu.memory_space<vmem>>, vector<8x32xf32>
    %1 = vector.extract_strided_slice %0 {offsets = [0, 0], sizes = [1, 32], strides = [1, 1]} : vector<8x32xf32> to vector<1x32xf32>
    %2 = vector.shape_cast %1 : vector<1x32xf32> to vector<1x32xf32>
    %3 = vector.broadcast %2 : vector<1x32xf32> to vector<8x32xf32>
    %4 = vector.extract_strided_slice %0 {offsets = [1, 0], sizes = [1, 32], strides = [1, 1]} : vector<8x32xf32> to vector<1x32xf32>
    %5 = vector.shape_cast %4 : vector<1x32xf32> to vector<1x32xf32>
    %6 = vector.broadcast %5 : vector<1x32xf32> to vector<8x32xf32>
    %7 = vector.extract_strided_slice %0 {offsets = [2, 0], sizes = [1, 32], strides = [1, 1]} : vector<8x32xf32> to vector<1x32xf32>
    %8 = vector.shape_cast %7 : vector<1x32xf32> to vector<1x32xf32>
    %9 = vector.broadcast %8 : vector<1x32xf32> to vector<8x32xf32>
    %10 = vector.extract_strided_slice %0 {offsets = [3, 0], sizes = [1, 32], strides = [1, 1]} : vector<8x32xf32> to vector<1x32xf32>
    %11 = vector.shape_cast %10 : vector<1x32xf32> to vector<1x32xf32>
    %12 = vector.broadcast %11 : vector<1x32xf32> to vector<8x32xf32>
    %13 = vector.extract_strided_slice %0 {offsets = [4, 0], sizes = [1, 1], strides = [1, 1]} : vector<8x32xf32> to vector<1x1xf32>
    %c0_1 = arith.constant 0 : index
    %c0_2 = arith.constant 0 : index
    %14 = vector.load %arg3[%c0_1, %c0_2] : memref<32x32xf32, #tpu.memory_space<vmem>>, vector<32x32xf32>
    %c0_3 = arith.constant 0 : index
    %c0_4 = arith.constant 0 : index
    %15 = vector.load %arg4[%c0_3, %c0_4] : memref<32x32xf32, #tpu.memory_space<vmem>>, vector<32x32xf32>
    %16 = tpu.iota {dimensions = array<i32: 1>} : vector<8x22xi32>
    %cst = arith.constant 0.000000e+00 : f32
    %17 = vector.broadcast %cst : f32 to vector<8x32xf32>
    %cst_5 = arith.constant 0.000000e+00 : f32
    %18 = vector.broadcast %cst_5 : f32 to vector<8x32xf32>
    %cst_6 = arith.constant 0.000000e+00 : f32
    %19 = vector.broadcast %cst_6 : f32 to vector<8x22xf32>
    %cst_7 = arith.constant 0.000000e+00 : f32
    %20 = vector.broadcast %cst_7 : f32 to vector<8x22xf32>
    %c0_i32 = arith.constant 0 : i32
    %c2_i32 = arith.constant 2 : i32
    %21 = arith.addi %c0_i32, %c2_i32 : i32
    %c1_i32 = arith.constant 1 : i32
    %22:4 = scf.for %arg6 = %c0_i32 to %21 step %c1_i32 iter_args(%arg7 = %17, %arg8 = %18, %arg9 = %19, %arg10 = %20) -> (vector<8x32xf32>, vector<8x32xf32>, vector<8x22xf32>, vector<8x22xf32>)  : i32 {
      %181 = arith.index_cast %arg6 : i32 to index
      %c0_42 = arith.constant 0 : index
      %c0_43 = arith.constant 0 : index
      %182 = vector.load %arg1[%181, %c0_42, %c0_43] : memref<2x16x8xf32, #tpu.memory_space<vmem>>, vector<1x16x8xf32>
      %183 = vector.shape_cast %182 : vector<1x16x8xf32> to vector<16x8xf32>
      %c8_i32 = arith.constant 8 : i32
      %184 = arith.muli %arg6, %c8_i32 : i32
      %c0_i32_44 = arith.constant 0 : i32
      %185 = arith.addi %184, %c0_i32_44 : i32
      %186 = vector.extract_strided_slice %183 {offsets = [0, 0], sizes = [8, 1], strides = [1, 1]} : vector<16x8xf32> to vector<8x1xf32>
      %187 = vector.extract_strided_slice %183 {offsets = [8, 0], sizes = [8, 1], strides = [1, 1]} : vector<16x8xf32> to vector<8x1xf32>
      %188 = vector.broadcast %186 : vector<8x1xf32> to vector<8x32xf32>
      %189 = arith.mulf %188, %3 : vector<8x32xf32>
      %190 = arith.addf %189, %6 : vector<8x32xf32>
      %cst_45 = arith.constant dense<0.000000e+00> : vector<8x32xf32>
      %191 = tpu.matmul %arg7, %14, %cst_45 {dimension_numbers = #tpu.dot_dimension_numbers<[1], [0], [0], [1], [0, 0, 1, 1], [], []>, precision = #tpu.contract_precision<fp32>} : vector<8x32xf32>, vector<32x32xf32>, vector<8x32xf32> -> vector<8x32xf32>
      %192 = arith.addf %190, %191 : vector<8x32xf32>
      %193 = math.tanh %192 : vector<8x32xf32>
      %194 = arith.mulf %193, %12 : vector<8x32xf32>
      %cst_46 = arith.constant dense<0.000000e+00> : vector<8xf32>
      %195 = vector.multi_reduction <add>, %194, %cst_46 [1] : vector<8x32xf32> to vector<8xf32>
      %196 = vector.shape_cast %195 : vector<8xf32> to vector<8x1xf32>
      %197 = vector.broadcast %13 : vector<1x1xf32> to vector<8x1xf32>
      %198 = arith.addf %196, %197 : vector<8x1xf32>
      %199 = vector.broadcast %185 : i32 to vector<8x22xi32>
      %200 = arith.cmpi eq, %16, %199 : vector<8x22xi32>
      %201 = vector.shape_cast %198 : vector<8x1xf32> to vector<8x1xf32>
      %202 = vector.broadcast %201 : vector<8x1xf32> to vector<8x22xf32>
      %203 = arith.select %200, %202, %arg9 : vector<8x22xi1>, vector<8x22xf32>
      %204 = vector.broadcast %187 : vector<8x1xf32> to vector<8x32xf32>
      %205 = arith.mulf %204, %3 : vector<8x32xf32>
      %206 = arith.addf %205, %6 : vector<8x32xf32>
      %cst_47 = arith.constant dense<0.000000e+00> : vector<8x32xf32>
      %207 = tpu.matmul %arg8, %14, %cst_47 {dimension_numbers = #tpu.dot_dimension_numbers<[1], [0], [0], [1], [0, 0, 1, 1], [], []>, precision = #tpu.contract_precision<fp32>} : vector<8x32xf32>, vector<32x32xf32>, vector<8x32xf32> -> vector<8x32xf32>
      %208 = arith.addf %206, %207 : vector<8x32xf32>
      %209 = math.tanh %208 : vector<8x32xf32>
      %210 = arith.mulf %209, %12 : vector<8x32xf32>
      %cst_48 = arith.constant dense<0.000000e+00> : vector<8xf32>
      %211 = vector.multi_reduction <add>, %210, %cst_48 [1] : vector<8x32xf32> to vector<8xf32>
      %212 = vector.shape_cast %211 : vector<8xf32> to vector<8x1xf32>
      %213 = vector.broadcast %13 : vector<1x1xf32> to vector<8x1xf32>
      %214 = arith.addf %212, %213 : vector<8x1xf32>
      %215 = vector.broadcast %185 : i32 to vector<8x22xi32>
      %216 = arith.cmpi eq, %16, %215 : vector<8x22xi32>
      %217 = vector.shape_cast %214 : vector<8x1xf32> to vector<8x1xf32>
      %218 = vector.broadcast %217 : vector<8x1xf32> to vector<8x22xf32>
      %219 = arith.select %216, %218, %arg10 : vector<8x22xi1>, vector<8x22xf32>
      %c8_i32_49 = arith.constant 8 : i32
      %220 = arith.muli %arg6, %c8_i32_49 : i32
      %c1_i32_50 = arith.constant 1 : i32
      %221 = arith.addi %220, %c1_i32_50 : i32
      %222 = vector.extract_strided_slice %183 {offsets = [0, 1], sizes = [8, 1], strides = [1, 1]} : vector<16x8xf32> to vector<8x1xf32>
      %223 = vector.extract_strided_slice %183 {offsets = [8, 1], sizes = [8, 1], strides = [1, 1]} : vector<16x8xf32> to vector<8x1xf32>
      %224 = vector.broadcast %222 : vector<8x1xf32> to vector<8x32xf32>
      %225 = arith.mulf %224, %3 : vector<8x32xf32>
      %226 = arith.addf %225, %6 : vector<8x32xf32>
      %cst_51 = arith.constant dense<0.000000e+00> : vector<8x32xf32>
      %227 = tpu.matmul %193, %14, %cst_51 {dimension_numbers = #tpu.dot_dimension_numbers<[1], [0], [0], [1], [0, 0, 1, 1], [], []>, precision = #tpu.contract_precision<fp32>} : vector<8x32xf32>, vector<32x32xf32>, vector<8x32xf32> -> vector<8x32xf32>
      %228 = arith.addf %226, %227 : vector<8x32xf32>
      %229 = math.tanh %228 : vector<8x32xf32>
      %230 = arith.mulf %229, %12 : vector<8x32xf32>
      %cst_52 = arith.constant dense<0.000000e+00> : vector<8xf32>
      %231 = vector.multi_reduction <add>, %230, %cst_52 [1] : vector<8x32xf32> to vector<8xf32>
      %232 = vector.shape_cast %231 : vector<8xf32> to vector<8x1xf32>
      %233 = vector.broadcast %13 : vector<1x1xf32> to vector<8x1xf32>
      %234 = arith.addf %232, %233 : vector<8x1xf32>
      %235 = vector.broadcast %221 : i32 to vector<8x22xi32>
      %236 = arith.cmpi eq, %16, %235 : vector<8x22xi32>
      %237 = vector.shape_cast %234 : vector<8x1xf32> to vector<8x1xf32>
      %238 = vector.broadcast %237 : vector<8x1xf32> to vector<8x22xf32>
      %239 = arith.select %236, %238, %203 : vector<8x22xi1>, vector<8x22xf32>
      %240 = vector.broadcast %223 : vector<8x1xf32> to vector<8x32xf32>
      %241 = arith.mulf %240, %3 : vector<8x32xf32>
      %242 = arith.addf %241, %6 : vector<8x32xf32>
      %cst_53 = arith.constant dense<0.000000e+00> : vector<8x32xf32>
      %243 = tpu.matmul %209, %14, %cst_53 {dimension_numbers = #tpu.dot_dimension_numbers<[1], [0], [0], [1], [0, 0, 1, 1], [], []>, precision = #tpu.contract_precision<fp32>} : vector<8x32xf32>, vector<32x32xf32>, vector<8x32xf32> -> vector<8x32xf32>
      %244 = arith.addf %242, %243 : vector<8x32xf32>
      %245 = math.tanh %244 : vector<8x32xf32>
      %246 = arith.mulf %245, %12 : vector<8x32xf32>
      %cst_54 = arith.constant dense<0.000000e+00> : vector<8xf32>
      %247 = vector.multi_reduction <add>, %246, %cst_54 [1] : vector<8x32xf32> to vector<8xf32>
      %248 = vector.shape_cast %247 : vector<8xf32> to vector<8x1xf32>
      %249 = vector.broadcast %13 : vector<1x1xf32> to vector<8x1xf32>
      %250 = arith.addf %248, %249 : vector<8x1xf32>
      %251 = vector.broadcast %221 : i32 to vector<8x22xi32>
      %252 = arith.cmpi eq, %16, %251 : vector<8x22xi32>
      %253 = vector.shape_cast %250 : vector<8x1xf32> to vector<8x1xf32>
      %254 = vector.broadcast %253 : vector<8x1xf32> to vector<8x22xf32>
      %255 = arith.select %252, %254, %219 : vector<8x22xi1>, vector<8x22xf32>
      %c8_i32_55 = arith.constant 8 : i32
      %256 = arith.muli %arg6, %c8_i32_55 : i32
      %c2_i32_56 = arith.constant 2 : i32
      %257 = arith.addi %256, %c2_i32_56 : i32
      %258 = vector.extract_strided_slice %183 {offsets = [0, 2], sizes = [8, 1], strides = [1, 1]} : vector<16x8xf32> to vector<8x1xf32>
      %259 = vector.extract_strided_slice %183 {offsets = [8, 2], sizes = [8, 1], strides = [1, 1]} : vector<16x8xf32> to vector<8x1xf32>
      %260 = vector.broadcast %258 : vector<8x1xf32> to vector<8x32xf32>
      %261 = arith.mulf %260, %3 : vector<8x32xf32>
      %262 = arith.addf %261, %6 : vector<8x32xf32>
      %cst_57 = arith.constant dense<0.000000e+00> : vector<8x32xf32>
      %263 = tpu.matmul %229, %14, %cst_57 {dimension_numbers = #tpu.dot_dimension_numbers<[1], [0], [0], [1], [0, 0, 1, 1], [], []>, precision = #tpu.contract_precision<fp32>} : vector<8x32xf32>, vector<32x32xf32>, vector<8x32xf32> -> vector<8x32xf32>
      %264 = arith.addf %262, %263 : vector<8x32xf32>
      %265 = math.tanh %264 : vector<8x32xf32>
      %266 = arith.mulf %265, %12 : vector<8x32xf32>
      %cst_58 = arith.constant dense<0.000000e+00> : vector<8xf32>
      %267 = vector.multi_reduction <add>, %266, %cst_58 [1] : vector<8x32xf32> to vector<8xf32>
      %268 = vector.shape_cast %267 : vector<8xf32> to vector<8x1xf32>
      %269 = vector.broadcast %13 : vector<1x1xf32> to vector<8x1xf32>
      %270 = arith.addf %268, %269 : vector<8x1xf32>
      %271 = vector.broadcast %257 : i32 to vector<8x22xi32>
      %272 = arith.cmpi eq, %16, %271 : vector<8x22xi32>
      %273 = vector.shape_cast %270 : vector<8x1xf32> to vector<8x1xf32>
      %274 = vector.broadcast %273 : vector<8x1xf32> to vector<8x22xf32>
      %275 = arith.select %272, %274, %239 : vector<8x22xi1>, vector<8x22xf32>
      %276 = vector.broadcast %259 : vector<8x1xf32> to vector<8x32xf32>
      %277 = arith.mulf %276, %3 : vector<8x32xf32>
      %278 = arith.addf %277, %6 : vector<8x32xf32>
      %cst_59 = arith.constant dense<0.000000e+00> : vector<8x32xf32>
      %279 = tpu.matmul %245, %14, %cst_59 {dimension_numbers = #tpu.dot_dimension_numbers<[1], [0], [0], [1], [0, 0, 1, 1], [], []>, precision = #tpu.contract_precision<fp32>} : vector<8x32xf32>, vector<32x32xf32>, vector<8x32xf32> -> vector<8x32xf32>
      %280 = arith.addf %278, %279 : vector<8x32xf32>
      %281 = math.tanh %280 : vector<8x32xf32>
      %282 = arith.mulf %281, %12 : vector<8x32xf32>
      %cst_60 = arith.constant dense<0.000000e+00> : vector<8xf32>
      %283 = vector.multi_reduction <add>, %282, %cst_60 [1] : vector<8x32xf32> to vector<8xf32>
      %284 = vector.shape_cast %283 : vector<8xf32> to vector<8x1xf32>
      %285 = vector.broadcast %13 : vector<1x1xf32> to vector<8x1xf32>
      %286 = arith.addf %284, %285 : vector<8x1xf32>
      %287 = vector.broadcast %257 : i32 to vector<8x22xi32>
      %288 = arith.cmpi eq, %16, %287 : vector<8x22xi32>
      %289 = vector.shape_cast %286 : vector<8x1xf32> to vector<8x1xf32>
      %290 = vector.broadcast %289 : vector<8x1xf32> to vector<8x22xf32>
      %291 = arith.select %288, %290, %255 : vector<8x22xi1>, vector<8x22xf32>
      %c8_i32_61 = arith.constant 8 : i32
      %292 = arith.muli %arg6, %c8_i32_61 : i32
      %c3_i32 = arith.constant 3 : i32
      %293 = arith.addi %292, %c3_i32 : i32
      %294 = vector.extract_strided_slice %183 {offsets = [0, 3], sizes = [8, 1], strides = [1, 1]} : vector<16x8xf32> to vector<8x1xf32>
      %295 = vector.extract_strided_slice %183 {offsets = [8, 3], sizes = [8, 1], strides = [1, 1]} : vector<16x8xf32> to vector<8x1xf32>
      %296 = vector.broadcast %294 : vector<8x1xf32> to vector<8x32xf32>
      %297 = arith.mulf %296, %3 : vector<8x32xf32>
      %298 = arith.addf %297, %6 : vector<8x32xf32>
      %cst_62 = arith.constant dense<0.000000e+00> : vector<8x32xf32>
      %299 = tpu.matmul %265, %14, %cst_62 {dimension_numbers = #tpu.dot_dimension_numbers<[1], [0], [0], [1], [0, 0, 1, 1], [], []>, precision = #tpu.contract_precision<fp32>} : vector<8x32xf32>, vector<32x32xf32>, vector<8x32xf32> -> vector<8x32xf32>
      %300 = arith.addf %298, %299 : vector<8x32xf32>
      %301 = math.tanh %300 : vector<8x32xf32>
      %302 = arith.mulf %301, %12 : vector<8x32xf32>
      %cst_63 = arith.constant dense<0.000000e+00> : vector<8xf32>
      %303 = vector.multi_reduction <add>, %302, %cst_63 [1] : vector<8x32xf32> to vector<8xf32>
      %304 = vector.shape_cast %303 : vector<8xf32> to vector<8x1xf32>
      %305 = vector.broadcast %13 : vector<1x1xf32> to vector<8x1xf32>
      %306 = arith.addf %304, %305 : vector<8x1xf32>
      %307 = vector.broadcast %293 : i32 to vector<8x22xi32>
      %308 = arith.cmpi eq, %16, %307 : vector<8x22xi32>
      %309 = vector.shape_cast %306 : vector<8x1xf32> to vector<8x1xf32>
      %310 = vector.broadcast %309 : vector<8x1xf32> to vector<8x22xf32>
      %311 = arith.select %308, %310, %275 : vector<8x22xi1>, vector<8x22xf32>
      %312 = vector.broadcast %295 : vector<8x1xf32> to vector<8x32xf32>
      %313 = arith.mulf %312, %3 : vector<8x32xf32>
      %314 = arith.addf %313, %6 : vector<8x32xf32>
      %cst_64 = arith.constant dense<0.000000e+00> : vector<8x32xf32>
      %315 = tpu.matmul %281, %14, %cst_64 {dimension_numbers = #tpu.dot_dimension_numbers<[1], [0], [0], [1], [0, 0, 1, 1], [], []>, precision = #tpu.contract_precision<fp32>} : vector<8x32xf32>, vector<32x32xf32>, vector<8x32xf32> -> vector<8x32xf32>
      %316 = arith.addf %314, %315 : vector<8x32xf32>
      %317 = math.tanh %316 : vector<8x32xf32>
      %318 = arith.mulf %317, %12 : vector<8x32xf32>
      %cst_65 = arith.constant dense<0.000000e+00> : vector<8xf32>
      %319 = vector.multi_reduction <add>, %318, %cst_65 [1] : vector<8x32xf32> to vector<8xf32>
      %320 = vector.shape_cast %319 : vector<8xf32> to vector<8x1xf32>
      %321 = vector.broadcast %13 : vector<1x1xf32> to vector<8x1xf32>
      %322 = arith.addf %320, %321 : vector<8x1xf32>
      %323 = vector.broadcast %293 : i32 to vector<8x22xi32>
      %324 = arith.cmpi eq, %16, %323 : vector<8x22xi32>
      %325 = vector.shape_cast %322 : vector<8x1xf32> to vector<8x1xf32>
      %326 = vector.broadcast %325 : vector<8x1xf32> to vector<8x22xf32>
      %327 = arith.select %324, %326, %291 : vector<8x22xi1>, vector<8x22xf32>
      %c8_i32_66 = arith.constant 8 : i32
      %328 = arith.muli %arg6, %c8_i32_66 : i32
      %c4_i32 = arith.constant 4 : i32
      %329 = arith.addi %328, %c4_i32 : i32
      %330 = vector.extract_strided_slice %183 {offsets = [0, 4], sizes = [8, 1], strides = [1, 1]} : vector<16x8xf32> to vector<8x1xf32>
      %331 = vector.extract_strided_slice %183 {offsets = [8, 4], sizes = [8, 1], strides = [1, 1]} : vector<16x8xf32> to vector<8x1xf32>
      %332 = vector.broadcast %330 : vector<8x1xf32> to vector<8x32xf32>
      %333 = arith.mulf %332, %3 : vector<8x32xf32>
      %334 = arith.addf %333, %6 : vector<8x32xf32>
      %cst_67 = arith.constant dense<0.000000e+00> : vector<8x32xf32>
      %335 = tpu.matmul %301, %14, %cst_67 {dimension_numbers = #tpu.dot_dimension_numbers<[1], [0], [0], [1], [0, 0, 1, 1], [], []>, precision = #tpu.contract_precision<fp32>} : vector<8x32xf32>, vector<32x32xf32>, vector<8x32xf32> -> vector<8x32xf32>
      %336 = arith.addf %334, %335 : vector<8x32xf32>
      %337 = math.tanh %336 : vector<8x32xf32>
      %338 = arith.mulf %337, %12 : vector<8x32xf32>
      %cst_68 = arith.constant dense<0.000000e+00> : vector<8xf32>
      %339 = vector.multi_reduction <add>, %338, %cst_68 [1] : vector<8x32xf32> to vector<8xf32>
      %340 = vector.shape_cast %339 : vector<8xf32> to vector<8x1xf32>
      %341 = vector.broadcast %13 : vector<1x1xf32> to vector<8x1xf32>
      %342 = arith.addf %340, %341 : vector<8x1xf32>
      %343 = vector.broadcast %329 : i32 to vector<8x22xi32>
      %344 = arith.cmpi eq, %16, %343 : vector<8x22xi32>
      %345 = vector.shape_cast %342 : vector<8x1xf32> to vector<8x1xf32>
      %346 = vector.broadcast %345 : vector<8x1xf32> to vector<8x22xf32>
      %347 = arith.select %344, %346, %311 : vector<8x22xi1>, vector<8x22xf32>
      %348 = vector.broadcast %331 : vector<8x1xf32> to vector<8x32xf32>
      %349 = arith.mulf %348, %3 : vector<8x32xf32>
      %350 = arith.addf %349, %6 : vector<8x32xf32>
      %cst_69 = arith.constant dense<0.000000e+00> : vector<8x32xf32>
      %351 = tpu.matmul %317, %14, %cst_69 {dimension_numbers = #tpu.dot_dimension_numbers<[1], [0], [0], [1], [0, 0, 1, 1], [], []>, precision = #tpu.contract_precision<fp32>} : vector<8x32xf32>, vector<32x32xf32>, vector<8x32xf32> -> vector<8x32xf32>
      %352 = arith.addf %350, %351 : vector<8x32xf32>
      %353 = math.tanh %352 : vector<8x32xf32>
      %354 = arith.mulf %353, %12 : vector<8x32xf32>
      %cst_70 = arith.constant dense<0.000000e+00> : vector<8xf32>
      %355 = vector.multi_reduction <add>, %354, %cst_70 [1] : vector<8x32xf32> to vector<8xf32>
      %356 = vector.shape_cast %355 : vector<8xf32> to vector<8x1xf32>
      %357 = vector.broadcast %13 : vector<1x1xf32> to vector<8x1xf32>
      %358 = arith.addf %356, %357 : vector<8x1xf32>
      %359 = vector.broadcast %329 : i32 to vector<8x22xi32>
      %360 = arith.cmpi eq, %16, %359 : vector<8x22xi32>
      %361 = vector.shape_cast %358 : vector<8x1xf32> to vector<8x1xf32>
      %362 = vector.broadcast %361 : vector<8x1xf32> to vector<8x22xf32>
      %363 = arith.select %360, %362, %327 : vector<8x22xi1>, vector<8x22xf32>
      %c8_i32_71 = arith.constant 8 : i32
      %364 = arith.muli %arg6, %c8_i32_71 : i32
      %c5_i32 = arith.constant 5 : i32
      %365 = arith.addi %364, %c5_i32 : i32
      %366 = vector.extract_strided_slice %183 {offsets = [0, 5], sizes = [8, 1], strides = [1, 1]} : vector<16x8xf32> to vector<8x1xf32>
      %367 = vector.extract_strided_slice %183 {offsets = [8, 5], sizes = [8, 1], strides = [1, 1]} : vector<16x8xf32> to vector<8x1xf32>
      %368 = vector.broadcast %366 : vector<8x1xf32> to vector<8x32xf32>
      %369 = arith.mulf %368, %3 : vector<8x32xf32>
      %370 = arith.addf %369, %6 : vector<8x32xf32>
      %cst_72 = arith.constant dense<0.000000e+00> : vector<8x32xf32>
      %371 = tpu.matmul %337, %14, %cst_72 {dimension_numbers = #tpu.dot_dimension_numbers<[1], [0], [0], [1], [0, 0, 1, 1], [], []>, precision = #tpu.contract_precision<fp32>} : vector<8x32xf32>, vector<32x32xf32>, vector<8x32xf32> -> vector<8x32xf32>
      %372 = arith.addf %370, %371 : vector<8x32xf32>
      %373 = math.tanh %372 : vector<8x32xf32>
      %374 = arith.mulf %373, %12 : vector<8x32xf32>
      %cst_73 = arith.constant dense<0.000000e+00> : vector<8xf32>
      %375 = vector.multi_reduction <add>, %374, %cst_73 [1] : vector<8x32xf32> to vector<8xf32>
      %376 = vector.shape_cast %375 : vector<8xf32> to vector<8x1xf32>
      %377 = vector.broadcast %13 : vector<1x1xf32> to vector<8x1xf32>
      %378 = arith.addf %376, %377 : vector<8x1xf32>
      %379 = vector.broadcast %365 : i32 to vector<8x22xi32>
      %380 = arith.cmpi eq, %16, %379 : vector<8x22xi32>
      %381 = vector.shape_cast %378 : vector<8x1xf32> to vector<8x1xf32>
      %382 = vector.broadcast %381 : vector<8x1xf32> to vector<8x22xf32>
      %383 = arith.select %380, %382, %347 : vector<8x22xi1>, vector<8x22xf32>
      %384 = vector.broadcast %367 : vector<8x1xf32> to vector<8x32xf32>
      %385 = arith.mulf %384, %3 : vector<8x32xf32>
      %386 = arith.addf %385, %6 : vector<8x32xf32>
      %cst_74 = arith.constant dense<0.000000e+00> : vector<8x32xf32>
      %387 = tpu.matmul %353, %14, %cst_74 {dimension_numbers = #tpu.dot_dimension_numbers<[1], [0], [0], [1], [0, 0, 1, 1], [], []>, precision = #tpu.contract_precision<fp32>} : vector<8x32xf32>, vector<32x32xf32>, vector<8x32xf32> -> vector<8x32xf32>
      %388 = arith.addf %386, %387 : vector<8x32xf32>
      %389 = math.tanh %388 : vector<8x32xf32>
      %390 = arith.mulf %389, %12 : vector<8x32xf32>
      %cst_75 = arith.constant dense<0.000000e+00> : vector<8xf32>
      %391 = vector.multi_reduction <add>, %390, %cst_75 [1] : vector<8x32xf32> to vector<8xf32>
      %392 = vector.shape_cast %391 : vector<8xf32> to vector<8x1xf32>
      %393 = vector.broadcast %13 : vector<1x1xf32> to vector<8x1xf32>
      %394 = arith.addf %392, %393 : vector<8x1xf32>
      %395 = vector.broadcast %365 : i32 to vector<8x22xi32>
      %396 = arith.cmpi eq, %16, %395 : vector<8x22xi32>
      %397 = vector.shape_cast %394 : vector<8x1xf32> to vector<8x1xf32>
      %398 = vector.broadcast %397 : vector<8x1xf32> to vector<8x22xf32>
      %399 = arith.select %396, %398, %363 : vector<8x22xi1>, vector<8x22xf32>
      %c8_i32_76 = arith.constant 8 : i32
      %400 = arith.muli %arg6, %c8_i32_76 : i32
      %c6_i32 = arith.constant 6 : i32
      %401 = arith.addi %400, %c6_i32 : i32
      %402 = vector.extract_strided_slice %183 {offsets = [0, 6], sizes = [8, 1], strides = [1, 1]} : vector<16x8xf32> to vector<8x1xf32>
      %403 = vector.extract_strided_slice %183 {offsets = [8, 6], sizes = [8, 1], strides = [1, 1]} : vector<16x8xf32> to vector<8x1xf32>
      %404 = vector.broadcast %402 : vector<8x1xf32> to vector<8x32xf32>
      %405 = arith.mulf %404, %3 : vector<8x32xf32>
      %406 = arith.addf %405, %6 : vector<8x32xf32>
      %cst_77 = arith.constant dense<0.000000e+00> : vector<8x32xf32>
      %407 = tpu.matmul %373, %14, %cst_77 {dimension_numbers = #tpu.dot_dimension_numbers<[1], [0], [0], [1], [0, 0, 1, 1], [], []>, precision = #tpu.contract_precision<fp32>} : vector<8x32xf32>, vector<32x32xf32>, vector<8x32xf32> -> vector<8x32xf32>
      %408 = arith.addf %406, %407 : vector<8x32xf32>
      %409 = math.tanh %408 : vector<8x32xf32>
      %410 = arith.mulf %409, %12 : vector<8x32xf32>
      %cst_78 = arith.constant dense<0.000000e+00> : vector<8xf32>
      %411 = vector.multi_reduction <add>, %410, %cst_78 [1] : vector<8x32xf32> to vector<8xf32>
      %412 = vector.shape_cast %411 : vector<8xf32> to vector<8x1xf32>
      %413 = vector.broadcast %13 : vector<1x1xf32> to vector<8x1xf32>
      %414 = arith.addf %412, %413 : vector<8x1xf32>
      %415 = vector.broadcast %401 : i32 to vector<8x22xi32>
      %416 = arith.cmpi eq, %16, %415 : vector<8x22xi32>
      %417 = vector.shape_cast %414 : vector<8x1xf32> to vector<8x1xf32>
      %418 = vector.broadcast %417 : vector<8x1xf32> to vector<8x22xf32>
      %419 = arith.select %416, %418, %383 : vector<8x22xi1>, vector<8x22xf32>
      %420 = vector.broadcast %403 : vector<8x1xf32> to vector<8x32xf32>
      %421 = arith.mulf %420, %3 : vector<8x32xf32>
      %422 = arith.addf %421, %6 : vector<8x32xf32>
      %cst_79 = arith.constant dense<0.000000e+00> : vector<8x32xf32>
      %423 = tpu.matmul %389, %14, %cst_79 {dimension_numbers = #tpu.dot_dimension_numbers<[1], [0], [0], [1], [0, 0, 1, 1], [], []>, precision = #tpu.contract_precision<fp32>} : vector<8x32xf32>, vector<32x32xf32>, vector<8x32xf32> -> vector<8x32xf32>
      %424 = arith.addf %422, %423 : vector<8x32xf32>
      %425 = math.tanh %424 : vector<8x32xf32>
      %426 = arith.mulf %425, %12 : vector<8x32xf32>
      %cst_80 = arith.constant dense<0.000000e+00> : vector<8xf32>
      %427 = vector.multi_reduction <add>, %426, %cst_80 [1] : vector<8x32xf32> to vector<8xf32>
      %428 = vector.shape_cast %427 : vector<8xf32> to vector<8x1xf32>
      %429 = vector.broadcast %13 : vector<1x1xf32> to vector<8x1xf32>
      %430 = arith.addf %428, %429 : vector<8x1xf32>
      %431 = vector.broadcast %401 : i32 to vector<8x22xi32>
      %432 = arith.cmpi eq, %16, %431 : vector<8x22xi32>
      %433 = vector.shape_cast %430 : vector<8x1xf32> to vector<8x1xf32>
      %434 = vector.broadcast %433 : vector<8x1xf32> to vector<8x22xf32>
      %435 = arith.select %432, %434, %399 : vector<8x22xi1>, vector<8x22xf32>
      %c8_i32_81 = arith.constant 8 : i32
      %436 = arith.muli %arg6, %c8_i32_81 : i32
      %c7_i32 = arith.constant 7 : i32
      %437 = arith.addi %436, %c7_i32 : i32
      %438 = vector.extract_strided_slice %183 {offsets = [0, 7], sizes = [8, 1], strides = [1, 1]} : vector<16x8xf32> to vector<8x1xf32>
      %439 = vector.extract_strided_slice %183 {offsets = [8, 7], sizes = [8, 1], strides = [1, 1]} : vector<16x8xf32> to vector<8x1xf32>
      %440 = vector.broadcast %438 : vector<8x1xf32> to vector<8x32xf32>
      %441 = arith.mulf %440, %3 : vector<8x32xf32>
      %442 = arith.addf %441, %6 : vector<8x32xf32>
      %cst_82 = arith.constant dense<0.000000e+00> : vector<8x32xf32>
      %443 = tpu.matmul %409, %14, %cst_82 {dimension_numbers = #tpu.dot_dimension_numbers<[1], [0], [0], [1], [0, 0, 1, 1], [], []>, precision = #tpu.contract_precision<fp32>} : vector<8x32xf32>, vector<32x32xf32>, vector<8x32xf32> -> vector<8x32xf32>
      %444 = arith.addf %442, %443 : vector<8x32xf32>
      %445 = math.tanh %444 : vector<8x32xf32>
      %446 = arith.mulf %445, %12 : vector<8x32xf32>
      %cst_83 = arith.constant dense<0.000000e+00> : vector<8xf32>
      %447 = vector.multi_reduction <add>, %446, %cst_83 [1] : vector<8x32xf32> to vector<8xf32>
      %448 = vector.shape_cast %447 : vector<8xf32> to vector<8x1xf32>
      %449 = vector.broadcast %13 : vector<1x1xf32> to vector<8x1xf32>
      %450 = arith.addf %448, %449 : vector<8x1xf32>
      %451 = vector.broadcast %437 : i32 to vector<8x22xi32>
      %452 = arith.cmpi eq, %16, %451 : vector<8x22xi32>
      %453 = vector.shape_cast %450 : vector<8x1xf32> to vector<8x1xf32>
      %454 = vector.broadcast %453 : vector<8x1xf32> to vector<8x22xf32>
      %455 = arith.select %452, %454, %419 : vector<8x22xi1>, vector<8x22xf32>
      %456 = vector.broadcast %439 : vector<8x1xf32> to vector<8x32xf32>
      %457 = arith.mulf %456, %3 : vector<8x32xf32>
      %458 = arith.addf %457, %6 : vector<8x32xf32>
      %cst_84 = arith.constant dense<0.000000e+00> : vector<8x32xf32>
      %459 = tpu.matmul %425, %14, %cst_84 {dimension_numbers = #tpu.dot_dimension_numbers<[1], [0], [0], [1], [0, 0, 1, 1], [], []>, precision = #tpu.contract_precision<fp32>} : vector<8x32xf32>, vector<32x32xf32>, vector<8x32xf32> -> vector<8x32xf32>
      %460 = arith.addf %458, %459 : vector<8x32xf32>
      %461 = math.tanh %460 : vector<8x32xf32>
      %462 = arith.mulf %461, %12 : vector<8x32xf32>
      %cst_85 = arith.constant dense<0.000000e+00> : vector<8xf32>
      %463 = vector.multi_reduction <add>, %462, %cst_85 [1] : vector<8x32xf32> to vector<8xf32>
      %464 = vector.shape_cast %463 : vector<8xf32> to vector<8x1xf32>
      %465 = vector.broadcast %13 : vector<1x1xf32> to vector<8x1xf32>
      %466 = arith.addf %464, %465 : vector<8x1xf32>
      %467 = vector.broadcast %437 : i32 to vector<8x22xi32>
      %468 = arith.cmpi eq, %16, %467 : vector<8x22xi32>
      %469 = vector.shape_cast %466 : vector<8x1xf32> to vector<8x1xf32>
      %470 = vector.broadcast %469 : vector<8x1xf32> to vector<8x22xf32>
      %471 = arith.select %468, %470, %435 : vector<8x22xi1>, vector<8x22xf32>
      scf.yield %445, %461, %455, %471 : vector<8x32xf32>, vector<8x32xf32>, vector<8x22xf32>, vector<8x22xf32>
    }
    %c2_i32_8 = arith.constant 2 : i32
    %cst_9 = arith.constant dense<0.000000e+00> : vector<8x32xf32>
    %23 = tpu.matmul %22#0, %15, %cst_9 {dimension_numbers = #tpu.dot_dimension_numbers<[1], [0], [0], [1], [0, 0, 1, 1], [], []>, precision = #tpu.contract_precision<fp32>} : vector<8x32xf32>, vector<32x32xf32>, vector<8x32xf32> -> vector<8x32xf32>
    %24 = arith.addf %23, %9 : vector<8x32xf32>
    %25 = math.tanh %24 : vector<8x32xf32>
    %26 = arith.mulf %25, %12 : vector<8x32xf32>
    %cst_10 = arith.constant dense<0.000000e+00> : vector<8xf32>
    %27 = vector.multi_reduction <add>, %26, %cst_10 [1] : vector<8x32xf32> to vector<8xf32>
    %28 = vector.shape_cast %27 : vector<8xf32> to vector<8x1xf32>
    %29 = vector.broadcast %13 : vector<1x1xf32> to vector<8x1xf32>
    %30 = arith.addf %28, %29 : vector<8x1xf32>
    %c16_i32 = arith.constant 16 : i32
    %31 = vector.broadcast %c16_i32 : i32 to vector<8x22xi32>
    %32 = arith.cmpi eq, %16, %31 : vector<8x22xi32>
    %33 = vector.shape_cast %30 : vector<8x1xf32> to vector<8x1xf32>
    %34 = vector.broadcast %33 : vector<8x1xf32> to vector<8x22xf32>
    %35 = arith.select %32, %34, %22#2 : vector<8x22xi1>, vector<8x22xf32>
    %cst_11 = arith.constant dense<0.000000e+00> : vector<8x32xf32>
    %36 = tpu.matmul %22#1, %15, %cst_11 {dimension_numbers = #tpu.dot_dimension_numbers<[1], [0], [0], [1], [0, 0, 1, 1], [], []>, precision = #tpu.contract_precision<fp32>} : vector<8x32xf32>, vector<32x32xf32>, vector<8x32xf32> -> vector<8x32xf32>
    %37 = arith.addf %36, %9 : vector<8x32xf32>
    %38 = math.tanh %37 : vector<8x32xf32>
    %39 = arith.mulf %38, %12 : vector<8x32xf32>
    %cst_12 = arith.constant dense<0.000000e+00> : vector<8xf32>
    %40 = vector.multi_reduction <add>, %39, %cst_12 [1] : vector<8x32xf32> to vector<8xf32>
    %41 = vector.shape_cast %40 : vector<8xf32> to vector<8x1xf32>
    %42 = vector.broadcast %13 : vector<1x1xf32> to vector<8x1xf32>
    %43 = arith.addf %41, %42 : vector<8x1xf32>
    %c16_i32_13 = arith.constant 16 : i32
    %44 = vector.broadcast %c16_i32_13 : i32 to vector<8x22xi32>
    %45 = arith.cmpi eq, %16, %44 : vector<8x22xi32>
    %46 = vector.shape_cast %43 : vector<8x1xf32> to vector<8x1xf32>
    %47 = vector.broadcast %46 : vector<8x1xf32> to vector<8x22xf32>
    %48 = arith.select %45, %47, %22#3 : vector<8x22xi1>, vector<8x22xf32>
    %cst_14 = arith.constant dense<0.000000e+00> : vector<8x32xf32>
    %49 = tpu.matmul %25, %15, %cst_14 {dimension_numbers = #tpu.dot_dimension_numbers<[1], [0], [0], [1], [0, 0, 1, 1], [], []>, precision = #tpu.contract_precision<fp32>} : vector<8x32xf32>, vector<32x32xf32>, vector<8x32xf32> -> vector<8x32xf32>
    %50 = arith.addf %49, %9 : vector<8x32xf32>
    %51 = math.tanh %50 : vector<8x32xf32>
    %52 = arith.mulf %51, %12 : vector<8x32xf32>
    %cst_15 = arith.constant dense<0.000000e+00> : vector<8xf32>
    %53 = vector.multi_reduction <add>, %52, %cst_15 [1] : vector<8x32xf32> to vector<8xf32>
    %54 = vector.shape_cast %53 : vector<8xf32> to vector<8x1xf32>
    %55 = vector.broadcast %13 : vector<1x1xf32> to vector<8x1xf32>
    %56 = arith.addf %54, %55 : vector<8x1xf32>
    %c17_i32 = arith.constant 17 : i32
    %57 = vector.broadcast %c17_i32 : i32 to vector<8x22xi32>
    %58 = arith.cmpi eq, %16, %57 : vector<8x22xi32>
    %59 = vector.shape_cast %56 : vector<8x1xf32> to vector<8x1xf32>
    %60 = vector.broadcast %59 : vector<8x1xf32> to vector<8x22xf32>
    %61 = arith.select %58, %60, %35 : vector<8x22xi1>, vector<8x22xf32>
    %cst_16 = arith.constant dense<0.000000e+00> : vector<8x32xf32>
    %62 = tpu.matmul %38, %15, %cst_16 {dimension_numbers = #tpu.dot_dimension_numbers<[1], [0], [0], [1], [0, 0, 1, 1], [], []>, precision = #tpu.contract_precision<fp32>} : vector<8x32xf32>, vector<32x32xf32>, vector<8x32xf32> -> vector<8x32xf32>
    %63 = arith.addf %62, %9 : vector<8x32xf32>
    %64 = math.tanh %63 : vector<8x32xf32>
    %65 = arith.mulf %64, %12 : vector<8x32xf32>
    %cst_17 = arith.constant dense<0.000000e+00> : vector<8xf32>
    %66 = vector.multi_reduction <add>, %65, %cst_17 [1] : vector<8x32xf32> to vector<8xf32>
    %67 = vector.shape_cast %66 : vector<8xf32> to vector<8x1xf32>
    %68 = vector.broadcast %13 : vector<1x1xf32> to vector<8x1xf32>
    %69 = arith.addf %67, %68 : vector<8x1xf32>
    %c17_i32_18 = arith.constant 17 : i32
    %70 = vector.broadcast %c17_i32_18 : i32 to vector<8x22xi32>
    %71 = arith.cmpi eq, %16, %70 : vector<8x22xi32>
    %72 = vector.shape_cast %69 : vector<8x1xf32> to vector<8x1xf32>
    %73 = vector.broadcast %72 : vector<8x1xf32> to vector<8x22xf32>
    %74 = arith.select %71, %73, %48 : vector<8x22xi1>, vector<8x22xf32>
    %cst_19 = arith.constant dense<0.000000e+00> : vector<8x32xf32>
    %75 = tpu.matmul %51, %15, %cst_19 {dimension_numbers = #tpu.dot_dimension_numbers<[1], [0], [0], [1], [0, 0, 1, 1], [], []>, precision = #tpu.contract_precision<fp32>} : vector<8x32xf32>, vector<32x32xf32>, vector<8x32xf32> -> vector<8x32xf32>
    %76 = arith.addf %75, %9 : vector<8x32xf32>
    %77 = math.tanh %76 : vector<8x32xf32>
    %78 = arith.mulf %77, %12 : vector<8x32xf32>
    %cst_20 = arith.constant dense<0.000000e+00> : vector<8xf32>
    %79 = vector.multi_reduction <add>, %78, %cst_20 [1] : vector<8x32xf32> to vector<8xf32>
    %80 = vector.shape_cast %79 : vector<8xf32> to vector<8x1xf32>
    %81 = vector.broadcast %13 : vector<1x1xf32> to vector<8x1xf32>
    %82 = arith.addf %80, %81 : vector<8x1xf32>
    %c18_i32 = arith.constant 18 : i32
    %83 = vector.broadcast %c18_i32 : i32 to vector<8x22xi32>
    %84 = arith.cmpi eq, %16, %83 : vector<8x22xi32>
    %85 = vector.shape_cast %82 : vector<8x1xf32> to vector<8x1xf32>
    %86 = vector.broadcast %85 : vector<8x1xf32> to vector<8x22xf32>
    %87 = arith.select %84, %86, %61 : vector<8x22xi1>, vector<8x22xf32>
    %cst_21 = arith.constant dense<0.000000e+00> : vector<8x32xf32>
    %88 = tpu.matmul %64, %15, %cst_21 {dimension_numbers = #tpu.dot_dimension_numbers<[1], [0], [0], [1], [0, 0, 1, 1], [], []>, precision = #tpu.contract_precision<fp32>} : vector<8x32xf32>, vector<32x32xf32>, vector<8x32xf32> -> vector<8x32xf32>
    %89 = arith.addf %88, %9 : vector<8x32xf32>
    %90 = math.tanh %89 : vector<8x32xf32>
    %91 = arith.mulf %90, %12 : vector<8x32xf32>
    %cst_22 = arith.constant dense<0.000000e+00> : vector<8xf32>
    %92 = vector.multi_reduction <add>, %91, %cst_22 [1] : vector<8x32xf32> to vector<8xf32>
    %93 = vector.shape_cast %92 : vector<8xf32> to vector<8x1xf32>
    %94 = vector.broadcast %13 : vector<1x1xf32> to vector<8x1xf32>
    %95 = arith.addf %93, %94 : vector<8x1xf32>
    %c18_i32_23 = arith.constant 18 : i32
    %96 = vector.broadcast %c18_i32_23 : i32 to vector<8x22xi32>
    %97 = arith.cmpi eq, %16, %96 : vector<8x22xi32>
    %98 = vector.shape_cast %95 : vector<8x1xf32> to vector<8x1xf32>
    %99 = vector.broadcast %98 : vector<8x1xf32> to vector<8x22xf32>
    %100 = arith.select %97, %99, %74 : vector<8x22xi1>, vector<8x22xf32>
    %cst_24 = arith.constant dense<0.000000e+00> : vector<8x32xf32>
    %101 = tpu.matmul %77, %15, %cst_24 {dimension_numbers = #tpu.dot_dimension_numbers<[1], [0], [0], [1], [0, 0, 1, 1], [], []>, precision = #tpu.contract_precision<fp32>} : vector<8x32xf32>, vector<32x32xf32>, vector<8x32xf32> -> vector<8x32xf32>
    %102 = arith.addf %101, %9 : vector<8x32xf32>
    %103 = math.tanh %102 : vector<8x32xf32>
    %104 = arith.mulf %103, %12 : vector<8x32xf32>
    %cst_25 = arith.constant dense<0.000000e+00> : vector<8xf32>
    %105 = vector.multi_reduction <add>, %104, %cst_25 [1] : vector<8x32xf32> to vector<8xf32>
    %106 = vector.shape_cast %105 : vector<8xf32> to vector<8x1xf32>
    %107 = vector.broadcast %13 : vector<1x1xf32> to vector<8x1xf32>
    %108 = arith.addf %106, %107 : vector<8x1xf32>
    %c19_i32 = arith.constant 19 : i32
    %109 = vector.broadcast %c19_i32 : i32 to vector<8x22xi32>
    %110 = arith.cmpi eq, %16, %109 : vector<8x22xi32>
    %111 = vector.shape_cast %108 : vector<8x1xf32> to vector<8x1xf32>
    %112 = vector.broadcast %111 : vector<8x1xf32> to vector<8x22xf32>
    %113 = arith.select %110, %112, %87 : vector<8x22xi1>, vector<8x22xf32>
    %cst_26 = arith.constant dense<0.000000e+00> : vector<8x32xf32>
    %114 = tpu.matmul %90, %15, %cst_26 {dimension_numbers = #tpu.dot_dimension_numbers<[1], [0], [0], [1], [0, 0, 1, 1], [], []>, precision = #tpu.contract_precision<fp32>} : vector<8x32xf32>, vector<32x32xf32>, vector<8x32xf32> -> vector<8x32xf32>
    %115 = arith.addf %114, %9 : vector<8x32xf32>
    %116 = math.tanh %115 : vector<8x32xf32>
    %117 = arith.mulf %116, %12 : vector<8x32xf32>
    %cst_27 = arith.constant dense<0.000000e+00> : vector<8xf32>
    %118 = vector.multi_reduction <add>, %117, %cst_27 [1] : vector<8x32xf32> to vector<8xf32>
    %119 = vector.shape_cast %118 : vector<8xf32> to vector<8x1xf32>
    %120 = vector.broadcast %13 : vector<1x1xf32> to vector<8x1xf32>
    %121 = arith.addf %119, %120 : vector<8x1xf32>
    %c19_i32_28 = arith.constant 19 : i32
    %122 = vector.broadcast %c19_i32_28 : i32 to vector<8x22xi32>
    %123 = arith.cmpi eq, %16, %122 : vector<8x22xi32>
    %124 = vector.shape_cast %121 : vector<8x1xf32> to vector<8x1xf32>
    %125 = vector.broadcast %124 : vector<8x1xf32> to vector<8x22xf32>
    %126 = arith.select %123, %125, %100 : vector<8x22xi1>, vector<8x22xf32>
    %cst_29 = arith.constant dense<0.000000e+00> : vector<8x32xf32>
    %127 = tpu.matmul %103, %15, %cst_29 {dimension_numbers = #tpu.dot_dimension_numbers<[1], [0], [0], [1], [0, 0, 1, 1], [], []>, precision = #tpu.contract_precision<fp32>} : vector<8x32xf32>, vector<32x32xf32>, vector<8x32xf32> -> vector<8x32xf32>
    %128 = arith.addf %127, %9 : vector<8x32xf32>
    %129 = math.tanh %128 : vector<8x32xf32>
    %130 = arith.mulf %129, %12 : vector<8x32xf32>
    %cst_30 = arith.constant dense<0.000000e+00> : vector<8xf32>
    %131 = vector.multi_reduction <add>, %130, %cst_30 [1] : vector<8x32xf32> to vector<8xf32>
    %132 = vector.shape_cast %131 : vector<8xf32> to vector<8x1xf32>
    %133 = vector.broadcast %13 : vector<1x1xf32> to vector<8x1xf32>
    %134 = arith.addf %132, %133 : vector<8x1xf32>
    %c20_i32 = arith.constant 20 : i32
    %135 = vector.broadcast %c20_i32 : i32 to vector<8x22xi32>
    %136 = arith.cmpi eq, %16, %135 : vector<8x22xi32>
    %137 = vector.shape_cast %134 : vector<8x1xf32> to vector<8x1xf32>
    %138 = vector.broadcast %137 : vector<8x1xf32> to vector<8x22xf32>
    %139 = arith.select %136, %138, %113 : vector<8x22xi1>, vector<8x22xf32>
    %cst_31 = arith.constant dense<0.000000e+00> : vector<8x32xf32>
    %140 = tpu.matmul %116, %15, %cst_31 {dimension_numbers = #tpu.dot_dimension_numbers<[1], [0], [0], [1], [0, 0, 1, 1], [], []>, precision = #tpu.contract_precision<fp32>} : vector<8x32xf32>, vector<32x32xf32>, vector<8x32xf32> -> vector<8x32xf32>
    %141 = arith.addf %140, %9 : vector<8x32xf32>
    %142 = math.tanh %141 : vector<8x32xf32>
    %143 = arith.mulf %142, %12 : vector<8x32xf32>
    %cst_32 = arith.constant dense<0.000000e+00> : vector<8xf32>
    %144 = vector.multi_reduction <add>, %143, %cst_32 [1] : vector<8x32xf32> to vector<8xf32>
    %145 = vector.shape_cast %144 : vector<8xf32> to vector<8x1xf32>
    %146 = vector.broadcast %13 : vector<1x1xf32> to vector<8x1xf32>
    %147 = arith.addf %145, %146 : vector<8x1xf32>
    %c20_i32_33 = arith.constant 20 : i32
    %148 = vector.broadcast %c20_i32_33 : i32 to vector<8x22xi32>
    %149 = arith.cmpi eq, %16, %148 : vector<8x22xi32>
    %150 = vector.shape_cast %147 : vector<8x1xf32> to vector<8x1xf32>
    %151 = vector.broadcast %150 : vector<8x1xf32> to vector<8x22xf32>
    %152 = arith.select %149, %151, %126 : vector<8x22xi1>, vector<8x22xf32>
    %cst_34 = arith.constant dense<0.000000e+00> : vector<8x32xf32>
    %153 = tpu.matmul %129, %15, %cst_34 {dimension_numbers = #tpu.dot_dimension_numbers<[1], [0], [0], [1], [0, 0, 1, 1], [], []>, precision = #tpu.contract_precision<fp32>} : vector<8x32xf32>, vector<32x32xf32>, vector<8x32xf32> -> vector<8x32xf32>
    %154 = arith.addf %153, %9 : vector<8x32xf32>
    %155 = math.tanh %154 : vector<8x32xf32>
    %156 = arith.mulf %155, %12 : vector<8x32xf32>
    %cst_35 = arith.constant dense<0.000000e+00> : vector<8xf32>
    %157 = vector.multi_reduction <add>, %156, %cst_35 [1] : vector<8x32xf32> to vector<8xf32>
    %158 = vector.shape_cast %157 : vector<8xf32> to vector<8x1xf32>
    %159 = vector.broadcast %13 : vector<1x1xf32> to vector<8x1xf32>
    %160 = arith.addf %158, %159 : vector<8x1xf32>
    %c21_i32 = arith.constant 21 : i32
    %161 = vector.broadcast %c21_i32 : i32 to vector<8x22xi32>
    %162 = arith.cmpi eq, %16, %161 : vector<8x22xi32>
    %163 = vector.shape_cast %160 : vector<8x1xf32> to vector<8x1xf32>
    %164 = vector.broadcast %163 : vector<8x1xf32> to vector<8x22xf32>
    %165 = arith.select %162, %164, %139 : vector<8x22xi1>, vector<8x22xf32>
    %cst_36 = arith.constant dense<0.000000e+00> : vector<8x32xf32>
    %166 = tpu.matmul %142, %15, %cst_36 {dimension_numbers = #tpu.dot_dimension_numbers<[1], [0], [0], [1], [0, 0, 1, 1], [], []>, precision = #tpu.contract_precision<fp32>} : vector<8x32xf32>, vector<32x32xf32>, vector<8x32xf32> -> vector<8x32xf32>
    %167 = arith.addf %166, %9 : vector<8x32xf32>
    %168 = math.tanh %167 : vector<8x32xf32>
    %169 = arith.mulf %168, %12 : vector<8x32xf32>
    %cst_37 = arith.constant dense<0.000000e+00> : vector<8xf32>
    %170 = vector.multi_reduction <add>, %169, %cst_37 [1] : vector<8x32xf32> to vector<8xf32>
    %171 = vector.shape_cast %170 : vector<8xf32> to vector<8x1xf32>
    %172 = vector.broadcast %13 : vector<1x1xf32> to vector<8x1xf32>
    %173 = arith.addf %171, %172 : vector<8x1xf32>
    %c21_i32_38 = arith.constant 21 : i32
    %174 = vector.broadcast %c21_i32_38 : i32 to vector<8x22xi32>
    %175 = arith.cmpi eq, %16, %174 : vector<8x22xi32>
    %176 = vector.shape_cast %173 : vector<8x1xf32> to vector<8x1xf32>
    %177 = vector.broadcast %176 : vector<8x1xf32> to vector<8x22xf32>
    %178 = arith.select %175, %177, %152 : vector<8x22xi1>, vector<8x22xf32>
    %c0_39 = arith.constant 0 : index
    %c0_40 = arith.constant 0 : index
    %179 = vector.load %arg5[%c0_39, %c0_40] : memref<16x22xf32, #tpu.memory_space<vmem>>, vector<8x22xf32>
    tpu.vector_store %arg5[%c0_39, %c0_40], %165 {strides = array<i32>} : memref<16x22xf32, #tpu.memory_space<vmem>>, vector<8x22xf32>,
    %c8 = arith.constant 8 : index
    %c0_41 = arith.constant 0 : index
    %180 = vector.load %arg5[%c8, %c0_41] : memref<16x22xf32, #tpu.memory_space<vmem>>, vector<8x22xf32>
    tpu.vector_store %arg5[%c8, %c0_41], %178 {strides = array<i32>} : memref<16x22xf32, #tpu.memory_space<vmem>>, vector<8x22xf32>,
    return
  }
  func.func @transform_0(%arg0: i32) -> (i32, i32, i32) {
    %c0_i32 = arith.constant 0 : i32
    %c0_i32_0 = arith.constant 0 : i32
    %c0_i32_1 = arith.constant 0 : i32
    return %c0_i32, %arg0, %c0_i32_0 : i32, i32, i32
  }
  func.func @transform_1(%arg0: i32) -> (i32, i32) {
    %c0_i32 = arith.constant 0 : i32
    %c0_i32_0 = arith.constant 0 : i32
    %c0_i32_1 = arith.constant 0 : i32
    return %c0_i32, %c0_i32_0 : i32, i32
  }
  func.func @transform_2(%arg0: i32) -> (i32, i32) {
    %c0_i32 = arith.constant 0 : i32
    %c0_i32_0 = arith.constant 0 : i32
    %c0_i32_1 = arith.constant 0 : i32
    return %c0_i32, %c0_i32_0 : i32, i32
  }
  func.func @transform_3(%arg0: i32) -> (i32, i32) {
    %c0_i32 = arith.constant 0 : i32
    %c0_i32_0 = arith.constant 0 : i32
    %c0_i32_1 = arith.constant 0 : i32
    return %c0_i32, %c0_i32_0 : i32, i32
  }
  func.func @transform_4(%arg0: i32) -> (i32, i32) {
    %c0_i32 = arith.constant 0 : i32
    %c0_i32_0 = arith.constant 0 : i32
    return %arg0, %c0_i32 : i32, i32
  }
}

</mosaic_0001>

<bundles_post_ra>
// kernel: tpu_custom_call.1
= control target key start
LH: loop header
LB: loop body
LE: loop exit
PB: predicated region body
PF: predicated region fallthrough
CT: control target
= control target key end

     0   :  { %s18624_s15 = smov 0   ;;  %s18626_s16 = smov 0   ;;  %s20255_s0 = inlined_call_operand.vmem [shape: f32[2,32,8], index: 0, kind: input, shape index: {}]   ;;  %s20256_s1 = inlined_call_operand.vmem [shape: f32[8,32], index: 1, kind: input, shape index: {}]   ;;  %s20257_s2 = inlined_call_operand.vmem [shape: f32[32,32], index: 2, kind: input, shape index: {}]   ;;  %s20258_s3 = inlined_call_operand.vmem [shape: f32[32,32], index: 3, kind: input, shape index: {}]   ;;  %s20259_s4 = inlined_call_operand.vmem [shape: f32[32,22], index: 4, kind: output, shape index: {}]  }
   0x1   :  { %s18628_s17 = smov 0  }
   0x2 LB: > { %s14526_s18 = sadd.s32 4294967295, %s18562_s17   ;;  %s18641_s19 = sadd.s32 1, %s18562_s17   ;;  %s18562_s17 = sphi %s18628_s17, %s20272_s17   ;;  %s18558_s16 = sphi %s18626_s16, %s20271_s16   ;;  %s18554_s15 = sphi %s18624_s15, %s20270_s15  }
   0x3   : > { %s18_s20 = ssub.s32 %s18562_s17, %s18641_s19  ;;  %s21_s21 = sadd.s32 1, %s18558_s16 }
   0x4   : > { %p19_p0 = scmp.eq.s32.totalorder %s18_s20, 0  ;;  %p28_p1 = scmp.ne.s32.totalorder %s18558_s16, %s18554_s15 }
   0x5   : > { %p29_p2 = scmp.eq.s32.totalorder %s18562_s17, 0  ;;  %p14529_p4 = scmp.ge.s32.totalorder %s18562_s17, 2 }
   0x6   : > { %s18650_s22 = scalar_select %p19_p0, %s18558_s16, %s21_s21  }
   0x7   : > { %p30_p3 = por %p29_p2, %p28_p1  ;;  %152 = sbr.rel (%p14529_p4) target bundleno = 21 (0x15), region = 28 }
   0xe   : > { %155 = sbr.rel (!%p30_p3) target bundleno = 21 (0x15), region = 32  ;;  %s157_s23 = sand.u32 (%p30_p3), 1, %s18558_s16  }
   0xf   : > { %s14541_s24 = sshll.u32 (%p30_p3), %s18562_s17, 4  ;;  %s14530_s25 = sshll.u32 (%p30_p3), %s157_s23, 5 }
  0x10   : > { %s162_s28 = scalar_lea.vmem (%p30_p3), %s20255_s0, %s14541_s24  ;;  %s159_s29 = scalar_lea.vmem (%p30_p3), [#allocation2], %s14530_s25 }
  0x11   : > { %v196_v0 = vld [vmem:[%s162_s28] sm:$0xff] (%p30_p3)  ;;  %v198_v1 = vld [vmem:[%s162_s28 + $0x8] sm:$0xff] (%p30_p3) }
  0x12   : > { %v200_v2 = vld [vmem:[%s162_s28 + $0x20] sm:$0xff] (%p30_p3)  ;;  %197 = vst [vmem:[%s159_s29] sm:$0xff] (%p30_p3), %v196_v0  ;;  %199 = vst [vmem:[%s159_s29 + $0x8] sm:$0xff] (%p30_p3), %v198_v1  ;;  %v202_v3 = vld [vmem:[%s162_s28 + $0x28] sm:$0xff] (%p30_p3) }
  0x13   : > { %201 = vst [vmem:[%s159_s29 + $0x10] sm:$0xff] (%p30_p3), %v200_v2  ;;  %203 = vst [vmem:[%s159_s29 + $0x18] sm:$0xff] (%p30_p3), %v202_v3 }
  0x15 PF: > { %p14533_p5 = scmp.ge.s32.totalorder %s18562_s17, 1  ;;  %p208_p6 = scmp.lt.s32.totalorder %s18562_s17, 3 }
  0x17   : > { %p209_p7 = pnand %p14533_p5, %p208_p6 }
  0x18   : > { %s215_s30 = sand.u32 (!%p209_p7), 1, %s18554_s15   ;;  %s14535_s5 = sshll.u32 (!%p209_p7), %s14526_s18, 1  ;;  %v248_v4 = vlaneseq (!%p209_p7)  ;;  %v18666_v5 = vld [vmem:[%s20257_s2] sm:$0xff] (!%p209_p7)  ;;  %v18671_v6 = vld [vmem:[%s20257_s2 + $0x8] sm:$0xff] (!%p209_p7)  ;;  %v18678_v7 = vld [vmem:[%s20257_s2 + $0x10] sm:$0xff] (!%p209_p7)  ;;  %v18736_v24 = vmov (!%p209_p7), 0.0  }
  0x19   : > { %212 = sbr.rel (%p209_p7) target bundleno = 4267 (0x10ab), region = 70  ;;  %s18673_s10 = sshll.u32 (!%p209_p7), %s215_s30, 5  ;;  %v18683_v8 = vld [vmem:[%s20257_s2 + $0x18] sm:$0xff] (!%p209_p7)  ;;  %v18688_v9 = vld [vmem:[%s20258_s3] sm:$0xff] (!%p209_p7)  ;;  %v18695_v11 = vld [vmem:[%s20258_s3 + $0x8] sm:$0xff] (!%p209_p7)  ;;  %v18738_v25 = vmov (!%p209_p7), 0.0  }
  0x1a   : > { %p242_p8 = scmp.lt.s32.totalorder (!%p209_p7), %s14535_s5, 3  ;;  %v18690_v10 = vshrl.u32 (!%p209_p7), %v248_v4, 7  ;;  %v18700_v12 = vld [vmem:[%s20258_s3 + $0x10] sm:$0xff] (!%p209_p7)  ;;  %v18705_v13 = vld [vmem:[%s20258_s3 + $0x18] sm:$0xff] (!%p209_p7)  ;;  %v18707_v14 = vand.u32 (!%p209_p7), 127, %v248_v4  ;;  %v18712_v15 = vld [vmem:[%s20256_s1] sm:$0xff] (!%p209_p7) }
  0x1b   : > { %s217_s7 = scalar_lea.vmem (!%p209_p7), [#allocation2], %s18673_s10  ;;  %v18740_v26 = vmov (!%p209_p7), 0.0   ;;  %v18742_v27 = vmov (!%p209_p7), 0.0  }
  0x1c   : > { %v250_v16 = vsub.s32 (!%p209_p7), 0, %v18690_v10  ;;  %v254_v17 = vsub.s32 (!%p209_p7), 1, %v18690_v10  ;;  %v258_v18 = vsub.s32 (!%p209_p7), 2, %v18690_v10  ;;  %v262_v19 = vsub.s32 (!%p209_p7), 3, %v18690_v10 }
  0x1e   : > { %v18724_v20 = vrot.slane (!%p209_p7), %v18712_v15, %v250_v16  ;;  %v18727_v21 = vrot.slane (!%p209_p7), %v18712_v15, %v254_v17  ;;  %v18730_v22 = vrot.slane (!%p209_p7), %v18712_v15, %v258_v18  ;;  %v18733_v23 = vrot.slane (!%p209_p7), %v18712_v15, %v262_v19 }
  0x20   : > { %s20274_s5 = smov (!%p242_p8, %s14535_s5), 3 }
  0x21   : > { %s14536_s28 = sshll.u32 %s20274_s5, 3  ;;  %s18744_s5 = smov 0  }
  0x22   : > { %s18721_s6 = scalar_lea.vmem %s20259_s4, %s14536_s28 }
  0x23 LB: >> { %v301_v28 = vand.u32 4294901760, %v18666_v5  ;;  %v304_v29 = vand.u32 4294901760, %v18671_v6  ;;  %v307_v30 = vand.u32 4294901760, %v18678_v7  ;;  %v18584_v31 = vmov 0.0|0.0   ;;  %s14537_s8 = sshll.u32 %s18582_s5, 4  ;;  %s14538_s11 = sshll.u32 %s18582_s5, 3  ;;  %s18582_s5 = sphi %s18744_s5, %s279_s5   ;;  %v18578_v27 = vphi %v18742_v27, %v20269_v27   ;;  %v18574_v26 = vphi %v18740_v26, %v20268_v26   ;;  %v18570_v25 = vphi %v18738_v25, %v20267_v25   ;;  %v18566_v24 = vphi %v18736_v24, %v20266_v24  }
  0x24   : >> { %17230 = vmatprep.subr.bf16.mxu0 %v18584_v31  ;;  %v310_v32 = vand.u32 4294901760, %v18683_v8  ;;  %17236 = vmatprep.subr.bf16.mxu1 %v18584_v31  ;;  %vm18585_vm0 = vmmov 0   ;;  %v18586_v36 = vmov 0.0   ;;  %vm296_vm1 = vcmask 261120   ;;  %s285_s9 = scalar_lea.vmem %s217_s7, %s14537_s8 [#allocation2]  ;;  %s1312_s12 = sadd.s32 1, %s14538_s11 }
  0x25   : >> { %v18765_v33 = vpack.c.bf16 %v304_v29, %v301_v28  ;;  %v18768_v34 = vsub.f32 %v18666_v5, %v301_v28  ;;  %v18771_v35 = vsub.f32 %v18671_v6, %v304_v29  ;;  %15390 = vmatprep.mubr.msk.f32.mxu0 %vm18585_vm0, %v18586_v36  ;;  %15401 = vmatprep.mubr.msk.f32.mxu1 %vm18585_vm0, %v18586_v36  ;;  %v298_v42 = vsel %vm296_vm1, %v18578_v27, 0  ;;  %v18802_v51 = vld [vmem:[%s285_s9] sm:$0xff]  ;;  %v18810_v60 = vld [vmem:[%s285_s9 + $0x8] sm:$0xff]  ;;  %s2329_s13 = sadd.s32 2, %s14538_s11  ;;  %s3346_s14 = sadd.s32 3, %s14538_s11 }
  0x26   : >> { %v18779_v37 = vsub.f32 %v18678_v7, %v307_v30  ;;  %v18782_v38 = vsub.f32 %v18683_v8, %v310_v32  ;;  %v18785_v39 = vpack.c.bf16 %v310_v32, %v307_v30  ;;  %v18793_v43 = vand.u32 4294901760, %v298_v42  ;;  %s4363_s15 = sadd.s32 4, %s14538_s11  ;;  %s5380_s17 = sadd.s32 5, %s14538_s11 }
  0x27   : >> { %17232 = vmatpush3.bf16.msra.mxu0 %v18765_v33  ;;  %v382_v40 = vand.u32 4294901760, %v18768_v34  ;;  %v389_v41 = vand.u32 4294901760, %v18771_v35  ;;  %v18587_v57 = vmov 0   ;;  %v18588_v61 = vmov 1   ;;  %s7414_s18 = sadd.s32 7, %s14538_s11  ;;  %s6397_s20 = sadd.s32 6, %s14538_s11 }
  0x28   : >> { %17233 = vmatprep.subr.bf16.mxu0 %v18584_v31  ;;  %v396_v44 = vand.u32 4294901760, %v18779_v37  ;;  %v403_v45 = vand.u32 4294901760, %v18782_v38  ;;  %v370_v48 = vsub.f32 %v298_v42, %v18793_v43  ;;  %18449 = vset.pattern.permute.xlu0 %v18587_v57  ;;  %v18815_v62 = vpack.c.bf16 %v18771_v35, %v18768_v34  ;;  %s279_s5 = sadd.s32 1, %s18582_s5  }
  0x29   : >> { %v383_v46 = vsub.f32 %v18768_v34, %v382_v40  ;;  %v390_v47 = vsub.f32 %v18771_v35, %v389_v41  ;;  %291 = vperm.xlu0 %18449, %v18802_v51   ;;  %18450 = vset.pattern.permute.xlu1 %v18588_v61  ;;  %v18826_v1 = vpack.c.bf16 %v18782_v38, %v18779_v37  ;;  %v812_v2 = vsel %vm296_vm1, %v18574_v26, 0  ;;  %p276_p9 = scmp.ge.s32.totalorder %s279_s5, 2  }
  0x2a   : >> { %v397_v49 = vsub.f32 %v18779_v37, %v396_v44  ;;  %v404_v50 = vsub.f32 %v18782_v38, %v403_v45  ;;  %v371_v54 = vand.u32 4294901760, %v370_v48  ;;  %1314 = vperm.xlu1 %18450, %v18802_v51   ;;  %v18836_v3 = vand.u32 4294901760, %v812_v2 }
  0x2b   : >> { %17235 = vmatpush3.bf16.msra.mxu0 %v18785_v39  ;;  %v384_v52 = vand.u32 4294901760, %v383_v46  ;;  %v391_v53 = vand.u32 4294901760, %v390_v47  ;;  %v18589_v4 = vmov 2   ;;  %v18840_v16 = vpack.c.bf16 %v389_v41, %v382_v40 }
  0x2c   : >> { %17242 = vmatprep.subr.bf16.mxu0 %v18584_v31  ;;  %v398_v55 = vand.u32 4294901760, %v397_v49  ;;  %v405_v56 = vand.u32 4294901760, %v404_v50  ;;  %v372_v59 = vsub.f32 %v370_v48, %v371_v54  ;;  %v18847_v17 = vsub.f32 %v812_v2, %v18836_v3 }
  0x2d   : >> { %v18807_v58 = vpack.c.bf16 %v391_v53, %v384_v52  ;;  %806 = vperm.xlu0 %18449, %v18810_v60   ;;  %v18852_v18 = vpack.c.bf16 %v403_v45, %v396_v44  ;;  %v18590_v26 = vmov 3   ;;  %v18591_v28 = vmov 4  }
  0x2e   : >> { %v18817_v63 = vpack.c.bf16 %v405_v56, %v398_v55  ;;  %v373_v0 = vand.u32 4294901760, %v372_v59  ;;  %1823 = vperm.xlu1 %18450, %v18810_v60   ;;  %v885_v19 = vand.u32 4294901760, %v18847_v17  ;;  %v18592_v30 = vmov 5  }
  0x2f   : >> { %17238 = vmatpush3.bf16.msra.mxu1 %v18807_v58  ;;  %v18593_v32 = vmov 7   ;;  %v18594_v34 = vmov 6   ;;  %vm18596_vm10 = vmmov (%p276_p9), 0   ;;  %vm8930_vm11 = vcmp.eq.s32.totalorder (%p276_p9), %v18707_v14, 16 }
  0x30   : >> { %17239 = vmatprep.subr.bf16.mxu1 %v18584_v31  ;;  %15391 = vmatmul.mubr.f32.vlgmr.msra.gmra.mrb[0].mxu0 %v373_v0  ;;  %v886_v27 = vsub.f32 %v18847_v17, %v885_v19  ;;  %vm9931_vm12 = vcmp.eq.s32.totalorder (%p276_p9), %v18707_v14, 17  ;;  %vm10932_vm13 = vcmp.eq.s32.totalorder (%p276_p9), %v18707_v14, 18  ;;  %vm11933_vm14 = vcmp.eq.s32.totalorder (%p276_p9), %v18707_v14, 19 }
  0x31   : >> { %17244 = vmatpush3.bf16.msra.mxu0 %v18815_v62  ;;  %15412 = vmatprep.mubr.msk.f32.mxu0 %vm18585_vm0, %v18586_v36  ;;  %vm13935_vm15 = vcmp.eq.s32.totalorder (%p276_p9), %v18707_v14, 21 }
  0x32   : >> { %17245 = vmatprep.subr.bf16.mxu0 %v18584_v31  ;;  %18451 = vset.pattern.permute.xlu0 %v18589_v4  ;;  %v887_v29 = vand.u32 4294901760, %v886_v27 }
  0x33   : >> { %17241 = vmatpush3.bf16.msra.mxu1 %v18817_v63  ;;  %18452 = vset.pattern.permute.xlu1 %v18589_v4 }
  0x34   : >> { %17248 = vmatprep.subr.bf16.mxu1 %v18584_v31  ;;  %2840 = vperm.xlu1 %18452, %v18810_v60  }
  0x35   : >> { %17247 = vmatpush3.bf16.msra.mxu0 %v18826_v1  ;;  %2331 = vperm.xlu0 %18451, %v18802_v51  }
  0x36   : >> { %15402 = vmatmul.mubr.f32.vlgmr.msra.gmra.mrb[0].mxu1 %v18793_v43  ;;  %17254 = vmatprep.subr.bf16.mxu0 %v18584_v31 }
  0x37   : >> { %17250 = vmatpush3.bf16.msra.mxu1 %v18765_v33  ;;  %15423 = vmatprep.mubr.msk.f32.mxu1 %vm18585_vm0, %v18586_v36 }
  0x38   : >> { %17251 = vmatprep.subr.bf16.mxu1 %v18584_v31  ;;  %15413 = vmatmul.mubr.f32.vlgmr.msra.gmra.mrb[2].mxu0 %v370_v48 }
  0x39   : >> { %17256 = vmatpush3.bf16.msra.mxu0 %v18840_v16  ;;  %15434 = vmatprep.mubr.msk.f32.mxu0 %vm18585_vm0, %v18586_v36 }
  0x3a   : >> { %17257 = vmatprep.subr.bf16.mxu0 %v18584_v31  ;;  %18453 = vset.pattern.permute.xlu1 %v18590_v26 }
  0x3b   : >> { %17253 = vmatpush3.bf16.msra.mxu1 %v18785_v39  ;;  %3348 = vperm.xlu1 %18453, %v18802_v51  }
  0x3c   : >> { %17260 = vmatprep.subr.bf16.mxu1 %v18584_v31  ;;  %18454 = vset.pattern.permute.xlu0 %v18590_v26 }
  0x3d   : >> { %17259 = vmatpush3.bf16.msra.mxu0 %v18852_v18  ;;  %3857 = vperm.xlu0 %18454, %v18810_v60  }
  0x3e   : >> { %15424 = vmatmul.mubr.f32.vlgmr.msra.gmra.mrb[2].mxu1 %v371_v54  ;;  %17266 = vmatprep.subr.bf16.mxu0 %v18584_v31 }
  0x3f   : >> { %17262 = vmatpush3.bf16.msra.mxu1 %v18765_v33  ;;  %15445 = vmatprep.mubr.msk.f32.mxu1 %vm18585_vm0, %v18586_v36 }
  0x40   : >> { %17263 = vmatprep.subr.bf16.mxu1 %v18584_v31  ;;  %15435 = vmatmul.mubr.f32.vlgmr.msra.gmra.mrb[4].mxu0 %v18793_v43 }
  0x41   : >> { %17268 = vmatpush3.bf16.msra.mxu0 %v18765_v33  ;;  %15456 = vmatprep.mubr.msk.f32.mxu0 %vm18585_vm0, %v18586_v36 }
  0x42   : >> { %17269 = vmatprep.subr.bf16.mxu0 %v18584_v31  ;;  %18455 = vset.pattern.permute.xlu1 %v18591_v28 }
  0x43   : >> { %17265 = vmatpush3.bf16.msra.mxu1 %v18785_v39  ;;  %4365 = vperm.xlu1 %18455, %v18802_v51  }
  0x44   : >> { %17272 = vmatprep.subr.bf16.mxu1 %v18584_v31  ;;  %18456 = vset.pattern.permute.xlu0 %v18592_v30 }
  0x45   : >> { %17271 = vmatpush3.bf16.msra.mxu0 %v18785_v39  ;;  %5382 = vperm.xlu0 %18456, %v18802_v51  }
  0x46   : >> { %15446 = vmatmul.mubr.f32.vlgmr.msra.gmra.mrb[4].mxu1 %v18793_v43  ;;  %17278 = vmatprep.subr.bf16.mxu0 %v18584_v31 }
  0x47   : >> { %17274 = vmatpush3.bf16.msra.mxu1 %v18807_v58  ;;  %15467 = vmatprep.mubr.msk.f32.mxu1 %vm18585_vm0, %v18586_v36 }
  0x48   : >> { %17275 = vmatprep.subr.bf16.mxu1 %v18584_v31  ;;  %15457 = vmatmul.mubr.f32.vlgmr.msra.gmra.mrb[6].mxu0 %v887_v29 }
  0x49   : >> { %4874 = vperm.xlu1 %18455, %v18810_v60   ;;  %17280 = vmatpush3.bf16.msra.mxu0 %v18815_v62 }
  0x4a   : >> { %17281 = vmatprep.subr.bf16.mxu0 %v18584_v31  ;;  %15478 = vmatprep.mubr.msk.f32.mxu0 %vm18585_vm0, %v18586_v36 }
  0x4b   : >> { %17277 = vmatpush3.bf16.msra.mxu1 %v18817_v63  ;;  %18458 = vset.pattern.permute.xlu0 %v18594_v34 }
  0x4c   : >> { %17284 = vmatprep.subr.bf16.mxu1 %v18584_v31  ;;  %6399 = vperm.xlu0 %18458, %v18802_v51  }
  0x4d   : >> { %18457 = vset.pattern.permute.xlu1 %v18592_v30  ;;  %17283 = vmatpush3.bf16.msra.mxu0 %v18826_v1 }
  0x4e   : >> { %15468 = vmatmul.mubr.f32.vlgmr.msra.gmra.mrb[6].mxu1 %v18836_v3  ;;  %17290 = vmatprep.subr.bf16.mxu0 %v18584_v31 }
  0x4f   : >> { %17286 = vmatpush3.bf16.msra.mxu1 %v18765_v33  ;;  %15489 = vmatprep.mubr.msk.f32.mxu1 %vm18585_vm0, %v18586_v36 }
  0x50   : >> { %17287 = vmatprep.subr.bf16.mxu1 %v18584_v31  ;;  %5891 = vperm.xlu1 %18457, %v18810_v60  }
  0x51   : >> { %15479 = vmatmul.mubr.f32.vlgmr.msra.gmra.mrb[8].mxu0 %v18847_v17  ;;  %6908 = vperm.xlu0 %18458, %v18810_v60  }
  0x52   : >> { %17292 = vmatpush3.bf16.msra.mxu0 %v18840_v16  ;;  %15500 = vmatprep.mubr.msk.f32.mxu0 %vm18585_vm0, %v18586_v36 }
  0x53   : >> { %17289 = vmatpush3.bf16.msra.mxu1 %v18785_v39  ;;  %17293 = vmatprep.subr.bf16.mxu0 %v18584_v31 }
  0x54   : >> { %17296 = vmatprep.subr.bf16.mxu1 %v18584_v31  ;;  %18459 = vset.pattern.permute.xlu1 %v18593_v32 }
  0x55   : >> { %7416 = vperm.xlu1 %18459, %v18802_v51   ;;  %18460 = vset.pattern.permute.xlu0 %v18587_v57 }
  0x56   : >> { %15490 = vmatmul.mubr.f32.vlgmr.msra.gmra.mrb[8].mxu1 %v885_v19  ;;  %17295 = vmatpush3.bf16.msra.mxu0 %v18852_v18 }
  0x57   : >> { %17298 = vmatpush3.bf16.msra.mxu1 %v18765_v33  ;;  %15511 = vmatprep.mubr.msk.f32.mxu1 %vm18585_vm0, %v18586_v36 }
  0x58   : >> { %17299 = vmatprep.subr.bf16.mxu1 %v18584_v31  ;;  %17302 = vmatprep.subr.bf16.mxu0 %v18584_v31 }
  0x59   : >> { %15501 = vmatmul.mubr.f32.vlgmr.msra.gmra.mrb[10].mxu0 %v18836_v3  ;;  %7925 = vperm.xlu1 %18459, %v18810_v60  }
  0x5a   : >> { %17304 = vmatpush3.bf16.msra.mxu0 %v18765_v33  ;;  %15522 = vmatprep.mubr.msk.f32.mxu0 %vm18585_vm0, %v18586_v36 }
  0x5b   : >> { %17301 = vmatpush3.bf16.msra.mxu1 %v18785_v39  ;;  %17305 = vmatprep.subr.bf16.mxu0 %v18584_v31 }
  0x5c   : >> { %17308 = vmatprep.subr.bf16.mxu1 %v18584_v31 }
  0x5d   : >> { %18461 = vset.pattern.permute.xlu1 %v18587_v57 }
  0x5e   : >> { %15512 = vmatmul.mubr.f32.vlgmr.msra.gmra.mrb[10].mxu1 %v18836_v3  ;;  %17307 = vmatpush3.bf16.msra.mxu0 %v18785_v39 }
  0x5f   : >> { %17310 = vmatpush3.bf16.msra.mxu1 %v18807_v58  ;;  %15533 = vmatprep.mubr.msk.f32.mxu1 %vm18585_vm0, %v18586_v36 }
  0x60   : >> { %17311 = vmatprep.subr.bf16.mxu1 %v18584_v31  ;;  %17314 = vmatprep.subr.bf16.mxu0 %v18584_v31 }
  0x63   : >> { %17313 = vmatpush3.bf16.msra.mxu1 %v18817_v63 }
  0x64   : >> { %17320 = vmatprep.subr.bf16.mxu1 %v18584_v31 }
  0xa8   : >> { %v292_v48 = vpop.permute.xlu0 %291 }
  0xa9   : >> { %v294_v49 = vmul.f32 %v292_v48, %v18724_v20 }
  0xab   : >> { %v295_v53 = vadd.f32 %v294_v49, %v18727_v21 }
  0xac   : >> { %v807_v34 = vpop.permute.xlu0 %806 }
 0x103   : >> { %v375_v35 = vpop.f32.mrb[0].mxu0 }
 0x104   : >> { %v15392_v37 = vpop.f32.mrb[1].mxu0 }
 0x109   : >> { %v466_v38 = vpop.f32.mrb[0].mxu1 }
 0x10a   : >> { %v467_v40 = vadd.f32 %v466_v38, %v375_v35  ;;  %v15403_v41 = vpop.f32.mrb[1].mxu1 }
 0x10b   : >> { %v546_v42 = vpop.f32.mrb[2].mxu0 }
 0x10c   : >> { %v547_v43 = vadd.f32 %v546_v42, %v467_v40  ;;  %v15414_v44 = vpop.f32.mrb[3].mxu0  ;;  %v809_v40 = vmul.f32 %v807_v34, %v18724_v20  ;;  %v1315_v34 = vpop.permute.xlu1 %1314 }
 0x111   : >> { %v623_v45 = vpop.f32.mrb[2].mxu1 }
 0x112   : >> { %v624_v46 = vadd.f32 %v623_v45, %v547_v43  ;;  %v15425_v47 = vpop.f32.mrb[3].mxu1 }
 0x113   : >> { %v706_v50 = vpop.f32.mrb[4].mxu0 }
 0x114   : >> { %v707_v51 = vadd.f32 %v706_v50, %v624_v46  ;;  %v15436_v52 = vpop.f32.mrb[5].mxu0  ;;  %v810_v46 = vadd.f32 %v809_v40, %v18727_v21 }
 0x119   : >> { %v781_v54 = vpop.f32.mrb[4].mxu1 }
 0x11a   : >> { %v782_v55 = vadd.f32 %v781_v54, %v707_v51  ;;  %v15447_v56 = vpop.f32.mrb[5].mxu1 }
 0x11b   : >> { %v889_v59 = vpop.f32.mrb[6].mxu0 }
 0x11c   : >> { %v785_v57 = vadd.f32 %v782_v55, %v295_v53  ;;  %v15458_v60 = vpop.f32.mrb[7].mxu0 }
 0x11e   : >> { %18462 = vtanh.f32 %v785_v57 }
 0x121   : >> { %v980_v61 = vpop.f32.mrb[6].mxu1 }
 0x122   : >> { %v981_v0 = vadd.f32 %v980_v61, %v889_v59  ;;  %v15469_v2 = vpop.f32.mrb[7].mxu1 }
 0x124   : >> { %v1060_v3 = vpop.f32.mrb[8].mxu0 }
 0x125   : >> { %v1061_v4 = vadd.f32 %v1060_v3, %v981_v0  ;;  %v15480_v17 = vpop.f32.mrb[9].mxu0 }
 0x128   : >> { %v18463_v19 = vpop.eup %18462 }
 0x129   : >> { %v1137_v26 = vpop.f32.mrb[8].mxu1  ;;  %v787_v27 = vmul.f32 %v18463_v19, %v18733_v23  ;;  %v1320_v28 = vsel %vm296_vm1, %v18463_v19, 0 }
 0x12a   : >> { %v1138_v29 = vadd.f32 %v1137_v26, %v1061_v4  ;;  %v15491_v30 = vpop.f32.mrb[9].mxu1  ;;  %v1391_v32 = vand.u32 4294901760, %v1320_v28 }
 0x12b   : >> { %v788_v35 = vsel %vm296_vm1, %v787_v27, 0.0 }
 0x12c   : >> { %789 = vadd.xlane.f32.xlu1 %v788_v35  ;;  %v1392_v37 = vsub.f32 %v1320_v28, %v1391_v32  ;;  %15534 = vmatmul.mubr.f32.vlgmr.msra.gmra.mrb[12].mxu1 %v1391_v32  ;;  %v1220_v38 = vpop.f32.mrb[10].mxu0  ;;  %v1317_v35 = vmul.f32 %v1315_v34, %v18724_v20 }
 0x12d   : >> { %17322 = vmatpush3.bf16.msra.mxu1 %v18765_v33  ;;  %15555 = vmatprep.mubr.msk.f32.mxu1 %vm18585_vm0, %v18586_v36  ;;  %v1221_v41 = vadd.f32 %v1220_v38, %v1138_v29  ;;  %v15502_v42 = vpop.f32.mrb[11].mxu0 }
 0x12e   : >> { %17323 = vmatprep.subr.bf16.mxu1 %v18584_v31  ;;  %v1393_v43 = vand.u32 4294901760, %v1392_v37  ;;  %v1318_v40 = vadd.f32 %v1317_v35, %v18727_v21 }
 0x130   : >> { %v1394_v44 = vsub.f32 %v1392_v37, %v1393_v43 }
 0x131   : >> { %17325 = vmatpush3.bf16.msra.mxu1 %v18785_v39  ;;  %v1295_v45 = vpop.f32.mrb[10].mxu1 }
 0x132   : >> { %v1296_v47 = vadd.f32 %v1295_v45, %v1221_v41  ;;  %v15513_v48 = vpop.f32.mrb[11].mxu1  ;;  %17332 = vmatprep.subr.bf16.mxu1 %v18584_v31  ;;  %v1395_v49 = vand.u32 4294901760, %v1394_v44 }
 0x134   : >> { %v1299_v50 = vadd.f32 %v1296_v47, %v810_v46  ;;  %15556 = vmatmul.mubr.f32.vlgmr.msra.gmra.mrb[14].mxu1 %v1393_v43  ;;  %15523 = vmatmul.mubr.f32.vlgmr.msra.gmra.mrb[12].mxu0 %v1395_v49 }
 0x135   : >> { %17316 = vmatpush3.bf16.msra.mxu0 %v18815_v62  ;;  %17334 = vmatpush3.bf16.msra.mxu1 %v18765_v33 }
 0x136   : >> { %18464 = vtanh.f32 %v1299_v50  ;;  %17317 = vmatprep.subr.bf16.mxu0 %v18584_v31  ;;  %17335 = vmatprep.subr.bf16.mxu1 %v18584_v31 }
 0x137   : >> { %15544 = vmatprep.mubr.msk.f32.mxu0 %vm18585_vm0, %v18586_v36  ;;  %15577 = vmatprep.mubr.msk.f32.mxu1 %vm18585_vm0, %v18586_v36 }
 0x139   : >> { %17319 = vmatpush3.bf16.msra.mxu0 %v18826_v1  ;;  %17337 = vmatpush3.bf16.msra.mxu1 %v18785_v39 }
 0x13a   : >> { %17326 = vmatprep.subr.bf16.mxu0 %v18584_v31  ;;  %17344 = vmatprep.subr.bf16.mxu1 %v18584_v31 }
 0x13c   : >> { %15545 = vmatmul.mubr.f32.vlgmr.msra.gmra.mrb[14].mxu0 %v1392_v37  ;;  %15578 = vmatmul.mubr.f32.vlgmr.msra.gmra.mrb[16].mxu1 %v1391_v32 }
 0x13d   : >> { %17328 = vmatpush3.bf16.msra.mxu0 %v18840_v16  ;;  %17346 = vmatpush3.bf16.msra.mxu1 %v18807_v58 }
 0x13e   : >> { %17329 = vmatprep.subr.bf16.mxu0 %v18584_v31  ;;  %17347 = vmatprep.subr.bf16.mxu1 %v18584_v31 }
 0x13f   : >> { %15566 = vmatprep.mubr.msk.f32.mxu0 %vm18585_vm0, %v18586_v36  ;;  %15599 = vmatprep.mubr.msk.f32.mxu1 %vm18585_vm0, %v18586_v36 }
 0x140   : >> { %v18465_v51 = vpop.eup %18464 }
 0x141   : >> { %17331 = vmatpush3.bf16.msra.mxu0 %v18852_v18  ;;  %17349 = vmatpush3.bf16.msra.mxu1 %v18817_v63  ;;  %v1829_v52 = vsel %vm296_vm1, %v18465_v51, 0  ;;  %v1301_v53 = vmul.f32 %v18465_v51, %v18733_v23 }
 0x142   : >> { %17338 = vmatprep.subr.bf16.mxu0 %v18584_v31  ;;  %17356 = vmatprep.subr.bf16.mxu1 %v18584_v31  ;;  %v1900_v54 = vand.u32 4294901760, %v1829_v52 }
 0x143   : >> { %v1302_v55 = vsel %vm296_vm1, %v1301_v53, 0.0 }
 0x144   : >> { %15567 = vmatmul.mubr.f32.vlgmr.msra.gmra.mrb[16].mxu0 %v1391_v32  ;;  %v1901_v56 = vsub.f32 %v1829_v52, %v1900_v54  ;;  %15600 = vmatmul.mubr.f32.vlgmr.msra.gmra.mrb[18].mxu1 %v1900_v54 }
 0x145   : >> { %17340 = vmatpush3.bf16.msra.mxu0 %v18765_v33  ;;  %17358 = vmatpush3.bf16.msra.mxu1 %v18765_v33 }
 0x146   : >> { %1303 = vadd.xlane.f32.xlu0 %v1302_v55  ;;  %17341 = vmatprep.subr.bf16.mxu0 %v18584_v31  ;;  %v1902_v57 = vand.u32 4294901760, %v1901_v56 }
 0x147   : >> { %17359 = vmatprep.subr.bf16.mxu1 %v18584_v31  ;;  %15621 = vmatprep.mubr.msk.f32.mxu1 %vm18585_vm0, %v18586_v36 }
 0x148   : >> { %15588 = vmatprep.mubr.msk.f32.mxu0 %vm18585_vm0, %v18586_v36  ;;  %v1903_v59 = vsub.f32 %v1901_v56, %v1902_v57 }
 0x149   : >> { %17343 = vmatpush3.bf16.msra.mxu0 %v18785_v39  ;;  %17361 = vmatpush3.bf16.msra.mxu1 %v18785_v39 }
 0x14a   : >> { %17350 = vmatprep.subr.bf16.mxu0 %v18584_v31  ;;  %17368 = vmatprep.subr.bf16.mxu1 %v18584_v31  ;;  %v1904_v60 = vand.u32 4294901760, %v1903_v59 }
 0x14c   : >> { %15622 = vmatmul.mubr.f32.vlgmr.msra.gmra.mrb[20].mxu1 %v1902_v57  ;;  %15589 = vmatmul.mubr.f32.vlgmr.msra.gmra.mrb[18].mxu0 %v1904_v60 }
 0x14d   : >> { %17352 = vmatpush3.bf16.msra.mxu0 %v18815_v62  ;;  %17370 = vmatpush3.bf16.msra.mxu1 %v18765_v33 }
 0x14e   : >> { %17353 = vmatprep.subr.bf16.mxu0 %v18584_v31  ;;  %17371 = vmatprep.subr.bf16.mxu1 %v18584_v31 }
 0x14f   : >> { %15610 = vmatprep.mubr.msk.f32.mxu0 %vm18585_vm0, %v18586_v36  ;;  %15643 = vmatprep.mubr.msk.f32.mxu1 %vm18585_vm0, %v18586_v36 }
 0x151   : >> { %17355 = vmatpush3.bf16.msra.mxu0 %v18826_v1  ;;  %17373 = vmatpush3.bf16.msra.mxu1 %v18785_v39 }
 0x152   : >> { %17362 = vmatprep.subr.bf16.mxu0 %v18584_v31  ;;  %17380 = vmatprep.subr.bf16.mxu1 %v18584_v31 }
 0x154   : >> { %15611 = vmatmul.mubr.f32.vlgmr.msra.gmra.mrb[20].mxu0 %v1901_v56  ;;  %15644 = vmatmul.mubr.f32.vlgmr.msra.gmra.mrb[22].mxu1 %v1900_v54 }
 0x155   : >> { %17364 = vmatpush3.bf16.msra.mxu0 %v18840_v16  ;;  %15632 = vmatprep.mubr.msk.f32.mxu0 %vm18585_vm0, %v18586_v36 }
 0x156   : >> { %17365 = vmatprep.subr.bf16.mxu0 %v18584_v31  ;;  %17382 = vmatpush3.bf16.msra.mxu1 %v18807_v58 }
 0x157   : >> { %17383 = vmatprep.subr.bf16.mxu1 %v18584_v31  ;;  %15665 = vmatprep.mubr.msk.f32.mxu1 %vm18585_vm0, %v18586_v36 }
 0x159   : >> { %17367 = vmatpush3.bf16.msra.mxu0 %v18852_v18 }
 0x15a   : >> { %17385 = vmatpush3.bf16.msra.mxu1 %v18817_v63  ;;  %17374 = vmatprep.subr.bf16.mxu0 %v18584_v31 }
 0x15b   : >> { %17392 = vmatprep.subr.bf16.mxu1 %v18584_v31 }
 0x15c   : >> { %15633 = vmatmul.mubr.f32.vlgmr.msra.gmra.mrb[22].mxu0 %v1900_v54 }
 0x15d   : >> { %17376 = vmatpush3.bf16.msra.mxu0 %v18765_v33  ;;  %15654 = vmatprep.mubr.msk.f32.mxu0 %vm18585_vm0, %v18586_v36 }
 0x15e   : >> { %17377 = vmatprep.subr.bf16.mxu0 %v18584_v31 }
 0x161   : >> { %17379 = vmatpush3.bf16.msra.mxu0 %v18785_v39 }
 0x162   : >> { %17386 = vmatprep.subr.bf16.mxu0 %v18584_v31 }
 0x1ff   : >> { %v1488_v61 = vpop.f32.mrb[12].mxu1 }
 0x200   : >> { %v15535_v0 = vpop.f32.mrb[13].mxu1 }
 0x207   : >> { %v1645_v2 = vpop.f32.mrb[14].mxu1  ;;  %v1397_v3 = vpop.f32.mrb[12].mxu0 }
 0x208   : >> { %v1489_v4 = vadd.f32 %v1488_v61, %v1397_v3  ;;  %v15557_v17 = vpop.f32.mrb[15].mxu1  ;;  %v15524_v19 = vpop.f32.mrb[13].mxu0 }
 0x209   : >> { %v1824_v3 = vpop.permute.xlu1 %1823 }
 0x20f   : >> { %v1568_v26 = vpop.f32.mrb[14].mxu0  ;;  %v1803_v27 = vpop.f32.mrb[16].mxu1 }
 0x210   : >> { %v1569_v28 = vadd.f32 %v1568_v26, %v1489_v4  ;;  %v15546_v29 = vpop.f32.mrb[15].mxu0  ;;  %v15579_v30 = vpop.f32.mrb[17].mxu1  ;;  %v1826_v4 = vmul.f32 %v1824_v3, %v18724_v20 }
 0x212   : >> { %v1646_v32 = vadd.f32 %v1645_v2, %v1569_v28  ;;  %v1827_v29 = vadd.f32 %v1826_v4, %v18727_v21 }
 0x217   : >> { %v1728_v37 = vpop.f32.mrb[16].mxu0  ;;  %v1997_v38 = vpop.f32.mrb[18].mxu1 }
 0x218   : >> { %v1729_v41 = vadd.f32 %v1728_v37, %v1646_v32  ;;  %v15568_v42 = vpop.f32.mrb[17].mxu0  ;;  %v15601_v43 = vpop.f32.mrb[19].mxu1 }
 0x21a   : >> { %v1804_v44 = vadd.f32 %v1803_v27, %v1729_v41 }
 0x21c   : >> { %v1807_v45 = vadd.f32 %v1804_v44, %v1318_v40 }
 0x21e   : >> { %18466 = vtanh.f32 %v1807_v45 }
 0x21f   : >> { %v2154_v46 = vpop.f32.mrb[20].mxu1  ;;  %v1906_v47 = vpop.f32.mrb[18].mxu0 }
 0x220   : >> { %v1998_v48 = vadd.f32 %v1997_v38, %v1906_v47  ;;  %v15623_v49 = vpop.f32.mrb[21].mxu1  ;;  %v15590_v50 = vpop.f32.mrb[19].mxu0 }
 0x227   : >> { %v2077_v51 = vpop.f32.mrb[20].mxu0  ;;  %v2312_v52 = vpop.f32.mrb[22].mxu1 }
 0x228   : >> { %v18467_v53 = vpop.eup %18466  ;;  %v2078_v54 = vadd.f32 %v2077_v51, %v1998_v48  ;;  %v15612_v55 = vpop.f32.mrb[21].mxu0 }
 0x229   : >> { %v15645_v56 = vpop.f32.mrb[23].mxu1  ;;  %v2337_v57 = vsel %vm296_vm1, %v18467_v53, 0  ;;  %v1809_v59 = vmul.f32 %v18467_v53, %v18733_v23 }
 0x22a   : >> { %v2408_v60 = vand.u32 4294901760, %v2337_v57  ;;  %v2155_v61 = vadd.f32 %v2154_v46, %v2078_v54 }
 0x22b   : >> { %v1810_v0 = vsel %vm296_vm1, %v1809_v59, 0.0 }
 0x22c   : >> { %v2409_v2 = vsub.f32 %v2337_v57, %v2408_v60  ;;  %15666 = vmatmul.mubr.f32.vlgmr.msra.gmra.mrb[24].mxu1 %v2408_v60  ;;  %1811 = vadd.xlane.f32.xlu0 %v1810_v0 }
 0x22d   : >> { %17394 = vmatpush3.bf16.msra.mxu1 %v18765_v33  ;;  %15687 = vmatprep.mubr.msk.f32.mxu1 %vm18585_vm0, %v18586_v36 }
 0x22e   : >> { %17395 = vmatprep.subr.bf16.mxu1 %v18584_v31  ;;  %v2410_v17 = vand.u32 4294901760, %v2409_v2 }
 0x22f   : >> { %v2237_v19 = vpop.f32.mrb[22].mxu0 }
 0x230   : >> { %v2238_v26 = vadd.f32 %v2237_v19, %v2155_v61  ;;  %v15634_v27 = vpop.f32.mrb[23].mxu0  ;;  %v2411_v28 = vsub.f32 %v2409_v2, %v2410_v17 }
 0x231   : >> { %17397 = vmatpush3.bf16.msra.mxu1 %v18785_v39 }
 0x232   : >> { %v2313_v30 = vadd.f32 %v2312_v52, %v2238_v26  ;;  %17404 = vmatprep.subr.bf16.mxu1 %v18584_v31  ;;  %v2412_v32 = vand.u32 4294901760, %v2411_v28 }
 0x234   : >> { %v2316_v34 = vadd.f32 %v2313_v30, %v1827_v29  ;;  %15688 = vmatmul.mubr.f32.vlgmr.msra.gmra.mrb[26].mxu1 %v2410_v17  ;;  %15655 = vmatmul.mubr.f32.vlgmr.msra.gmra.mrb[24].mxu0 %v2412_v32 }
 0x235   : >> { %17388 = vmatpush3.bf16.msra.mxu0 %v18815_v62  ;;  %17406 = vmatpush3.bf16.msra.mxu1 %v18765_v33 }
 0x236   : >> { %18468 = vtanh.f32 %v2316_v34  ;;  %17389 = vmatprep.subr.bf16.mxu0 %v18584_v31  ;;  %17407 = vmatprep.subr.bf16.mxu1 %v18584_v31 }
 0x237   : >> { %15676 = vmatprep.mubr.msk.f32.mxu0 %vm18585_vm0, %v18586_v36  ;;  %15709 = vmatprep.mubr.msk.f32.mxu1 %vm18585_vm0, %v18586_v36 }
 0x239   : >> { %17391 = vmatpush3.bf16.msra.mxu0 %v18826_v1  ;;  %17409 = vmatpush3.bf16.msra.mxu1 %v18785_v39 }
 0x23a   : >> { %17398 = vmatprep.subr.bf16.mxu0 %v18584_v31  ;;  %17416 = vmatprep.subr.bf16.mxu1 %v18584_v31 }
 0x23c   : >> { %15677 = vmatmul.mubr.f32.vlgmr.msra.gmra.mrb[26].mxu0 %v2409_v2  ;;  %15710 = vmatmul.mubr.f32.vlgmr.msra.gmra.mrb[28].mxu1 %v2408_v60 }
 0x23d   : >> { %17400 = vmatpush3.bf16.msra.mxu0 %v18840_v16  ;;  %17418 = vmatpush3.bf16.msra.mxu1 %v18807_v58 }
 0x23e   : >> { %17401 = vmatprep.subr.bf16.mxu0 %v18584_v31  ;;  %17419 = vmatprep.subr.bf16.mxu1 %v18584_v31 }
 0x23f   : >> { %15698 = vmatprep.mubr.msk.f32.mxu0 %vm18585_vm0, %v18586_v36  ;;  %15731 = vmatprep.mubr.msk.f32.mxu1 %vm18585_vm0, %v18586_v36 }
 0x240   : >> { %v18469_v35 = vpop.eup %18468 }
 0x241   : >> { %17403 = vmatpush3.bf16.msra.mxu0 %v18852_v18  ;;  %17421 = vmatpush3.bf16.msra.mxu1 %v18817_v63  ;;  %v2846_v37 = vsel %vm296_vm1, %v18469_v35, 0  ;;  %v2318_v38 = vmul.f32 %v18469_v35, %v18733_v23 }
 0x242   : >> { %17410 = vmatprep.subr.bf16.mxu0 %v18584_v31  ;;  %17428 = vmatprep.subr.bf16.mxu1 %v18584_v31  ;;  %v2917_v40 = vand.u32 4294901760, %v2846_v37 }
 0x243   : >> { %v2319_v41 = vsel %vm296_vm1, %v2318_v38, 0.0 }
 0x244   : >> { %15699 = vmatmul.mubr.f32.vlgmr.msra.gmra.mrb[28].mxu0 %v2408_v60  ;;  %v2918_v42 = vsub.f32 %v2846_v37, %v2917_v40  ;;  %15732 = vmatmul.mubr.f32.vlgmr.msra.gmra.mrb[30].mxu1 %v2917_v40  ;;  %v2332_v60 = vpop.permute.xlu0 %2331 }
 0x245   : >> { %17412 = vmatpush3.bf16.msra.mxu0 %v18765_v33  ;;  %17430 = vmatpush3.bf16.msra.mxu1 %v18765_v33  ;;  %v2334_v61 = vmul.f32 %v2332_v60, %v18724_v20 }
 0x246   : >> { %2320 = vadd.xlane.f32.xlu1 %v2319_v41  ;;  %17413 = vmatprep.subr.bf16.mxu0 %v18584_v31  ;;  %v2919_v43 = vand.u32 4294901760, %v2918_v42 }
 0x247   : >> { %17431 = vmatprep.subr.bf16.mxu1 %v18584_v31  ;;  %15753 = vmatprep.mubr.msk.f32.mxu1 %vm18585_vm0, %v18586_v36  ;;  %v2335_v3 = vadd.f32 %v2334_v61, %v18727_v21 }
 0x248   : >> { %15720 = vmatprep.mubr.msk.f32.mxu0 %vm18585_vm0, %v18586_v36  ;;  %v2920_v44 = vsub.f32 %v2918_v42, %v2919_v43 }
 0x249   : >> { %17415 = vmatpush3.bf16.msra.mxu0 %v18785_v39  ;;  %17433 = vmatpush3.bf16.msra.mxu1 %v18785_v39 }
 0x24a   : >> { %17422 = vmatprep.subr.bf16.mxu0 %v18584_v31  ;;  %17440 = vmatprep.subr.bf16.mxu1 %v18584_v31  ;;  %v2921_v45 = vand.u32 4294901760, %v2920_v44 }
 0x24c   : >> { %15754 = vmatmul.mubr.f32.vlgmr.msra.gmra.mrb[32].mxu1 %v2919_v43  ;;  %15721 = vmatmul.mubr.f32.vlgmr.msra.gmra.mrb[30].mxu0 %v2921_v45 }
 0x24d   : >> { %17424 = vmatpush3.bf16.msra.mxu0 %v18815_v62  ;;  %17442 = vmatpush3.bf16.msra.mxu1 %v18765_v33 }
 0x24e   : >> { %17425 = vmatprep.subr.bf16.mxu0 %v18584_v31  ;;  %17443 = vmatprep.subr.bf16.mxu1 %v18584_v31 }
 0x24f   : >> { %15742 = vmatprep.mubr.msk.f32.mxu0 %vm18585_vm0, %v18586_v36  ;;  %15775 = vmatprep.mubr.msk.f32.mxu1 %vm18585_vm0, %v18586_v36 }
 0x251   : >> { %17427 = vmatpush3.bf16.msra.mxu0 %v18826_v1  ;;  %17445 = vmatpush3.bf16.msra.mxu1 %v18785_v39 }
 0x252   : >> { %17434 = vmatprep.subr.bf16.mxu0 %v18584_v31  ;;  %17452 = vmatprep.subr.bf16.mxu1 %v18584_v31 }
 0x254   : >> { %15743 = vmatmul.mubr.f32.vlgmr.msra.gmra.mrb[32].mxu0 %v2918_v42  ;;  %15776 = vmatmul.mubr.f32.vlgmr.msra.gmra.mrb[34].mxu1 %v2917_v40 }
 0x255   : >> { %17436 = vmatpush3.bf16.msra.mxu0 %v18840_v16  ;;  %15764 = vmatprep.mubr.msk.f32.mxu0 %vm18585_vm0, %v18586_v36 }
 0x256   : >> { %17437 = vmatprep.subr.bf16.mxu0 %v18584_v31  ;;  %17454 = vmatpush3.bf16.msra.mxu1 %v18807_v58 }
 0x257   : >> { %17455 = vmatprep.subr.bf16.mxu1 %v18584_v31  ;;  %15797 = vmatprep.mubr.msk.f32.mxu1 %vm18585_vm0, %v18586_v36 }
 0x259   : >> { %17439 = vmatpush3.bf16.msra.mxu0 %v18852_v18 }
 0x25a   : >> { %17457 = vmatpush3.bf16.msra.mxu1 %v18817_v63  ;;  %17446 = vmatprep.subr.bf16.mxu0 %v18584_v31 }
 0x25b   : >> { %17464 = vmatprep.subr.bf16.mxu1 %v18584_v31 }
 0x25c   : >> { %15765 = vmatmul.mubr.f32.vlgmr.msra.gmra.mrb[34].mxu0 %v2917_v40 }
 0x25d   : >> { %17448 = vmatpush3.bf16.msra.mxu0 %v18765_v33  ;;  %15786 = vmatprep.mubr.msk.f32.mxu0 %vm18585_vm0, %v18586_v36 }
 0x25e   : >> { %17449 = vmatprep.subr.bf16.mxu0 %v18584_v31 }
 0x261   : >> { %17451 = vmatpush3.bf16.msra.mxu0 %v18785_v39 }
 0x262   : >> { %17458 = vmatprep.subr.bf16.mxu0 %v18584_v31 }
 0x2ff   : >> { %v2505_v46 = vpop.f32.mrb[24].mxu1 }
 0x300   : >> { %v15667_v47 = vpop.f32.mrb[25].mxu1 }
 0x301   : >> { %v2841_v47 = vpop.permute.xlu1 %2840 }
 0x307   : >> { %v2662_v48 = vpop.f32.mrb[26].mxu1  ;;  %v2414_v49 = vpop.f32.mrb[24].mxu0 }
 0x308   : >> { %v2506_v50 = vadd.f32 %v2505_v46, %v2414_v49  ;;  %v15689_v51 = vpop.f32.mrb[27].mxu1  ;;  %v15656_v52 = vpop.f32.mrb[25].mxu0  ;;  %v2843_v49 = vmul.f32 %v2841_v47, %v18724_v20 }
 0x30f   : >> { %v2585_v53 = vpop.f32.mrb[26].mxu0  ;;  %v2820_v54 = vpop.f32.mrb[28].mxu1 }
 0x310   : >> { %v2586_v55 = vadd.f32 %v2585_v53, %v2506_v50  ;;  %v15678_v56 = vpop.f32.mrb[27].mxu0  ;;  %v15711_v57 = vpop.f32.mrb[29].mxu1  ;;  %v2844_v53 = vadd.f32 %v2843_v49, %v18727_v21 }
 0x312   : >> { %v2663_v59 = vadd.f32 %v2662_v48, %v2586_v55 }
 0x317   : >> { %v2745_v0 = vpop.f32.mrb[28].mxu0  ;;  %v3014_v2 = vpop.f32.mrb[30].mxu1 }
 0x318   : >> { %v2746_v4 = vadd.f32 %v2745_v0, %v2663_v59  ;;  %v15700_v17 = vpop.f32.mrb[29].mxu0  ;;  %v15733_v19 = vpop.f32.mrb[31].mxu1 }
 0x31a   : >> { %v2821_v26 = vadd.f32 %v2820_v54, %v2746_v4 }
 0x31c   : >> { %v2824_v27 = vadd.f32 %v2821_v26, %v2335_v3 }
 0x31e   : >> { %18470 = vtanh.f32 %v2824_v27 }
 0x31f   : >> { %v3171_v28 = vpop.f32.mrb[32].mxu1  ;;  %v2923_v29 = vpop.f32.mrb[30].mxu0 }
 0x320   : >> { %v3015_v30 = vadd.f32 %v3014_v2, %v2923_v29  ;;  %v15755_v32 = vpop.f32.mrb[33].mxu1  ;;  %v15722_v34 = vpop.f32.mrb[31].mxu0 }
 0x327   : >> { %v3094_v35 = vpop.f32.mrb[32].mxu0  ;;  %v3329_v37 = vpop.f32.mrb[34].mxu1 }
 0x328   : >> { %v18471_v38 = vpop.eup %18470  ;;  %v3095_v40 = vadd.f32 %v3094_v35, %v3015_v30  ;;  %v15744_v41 = vpop.f32.mrb[33].mxu0 }
 0x329   : >> { %v15777_v42 = vpop.f32.mrb[35].mxu1  ;;  %v3354_v43 = vsel %vm296_vm1, %v18471_v38, 0  ;;  %v2826_v44 = vmul.f32 %v18471_v38, %v18733_v23 }
 0x32a   : >> { %v3425_v45 = vand.u32 4294901760, %v3354_v43  ;;  %v3172_v46 = vadd.f32 %v3171_v28, %v3095_v40 }
 0x32b   : >> { %v2827_v48 = vsel %vm296_vm1, %v2826_v44, 0.0 }
 0x32c   : >> { %v3426_v50 = vsub.f32 %v3354_v43, %v3425_v45  ;;  %15798 = vmatmul.mubr.f32.vlgmr.msra.gmra.mrb[36].mxu1 %v3425_v45  ;;  %2828 = vadd.xlane.f32.xlu0 %v2827_v48 }
 0x32d   : >> { %17466 = vmatpush3.bf16.msra.mxu1 %v18765_v33  ;;  %15819 = vmatprep.mubr.msk.f32.mxu1 %vm18585_vm0, %v18586_v36 }
 0x32e   : >> { %17467 = vmatprep.subr.bf16.mxu1 %v18584_v31  ;;  %v3427_v51 = vand.u32 4294901760, %v3426_v50 }
 0x32f   : >> { %v3254_v52 = vpop.f32.mrb[34].mxu0 }
 0x330   : >> { %v3255_v54 = vadd.f32 %v3254_v52, %v3172_v46  ;;  %v15766_v55 = vpop.f32.mrb[35].mxu0  ;;  %v3428_v56 = vsub.f32 %v3426_v50, %v3427_v51 }
 0x331   : >> { %17469 = vmatpush3.bf16.msra.mxu1 %v18785_v39 }
 0x332   : >> { %v3330_v57 = vadd.f32 %v3329_v37, %v3255_v54  ;;  %17476 = vmatprep.subr.bf16.mxu1 %v18584_v31  ;;  %v3429_v59 = vand.u32 4294901760, %v3428_v56 }
 0x334   : >> { %v3333_v60 = vadd.f32 %v3330_v57, %v2844_v53  ;;  %15820 = vmatmul.mubr.f32.vlgmr.msra.gmra.mrb[38].mxu1 %v3427_v51  ;;  %15787 = vmatmul.mubr.f32.vlgmr.msra.gmra.mrb[36].mxu0 %v3429_v59 }
 0x335   : >> { %17460 = vmatpush3.bf16.msra.mxu0 %v18815_v62  ;;  %17478 = vmatpush3.bf16.msra.mxu1 %v18765_v33 }
 0x336   : >> { %18472 = vtanh.f32 %v3333_v60  ;;  %17461 = vmatprep.subr.bf16.mxu0 %v18584_v31  ;;  %17479 = vmatprep.subr.bf16.mxu1 %v18584_v31 }
 0x337   : >> { %15808 = vmatprep.mubr.msk.f32.mxu0 %vm18585_vm0, %v18586_v36  ;;  %15841 = vmatprep.mubr.msk.f32.mxu1 %vm18585_vm0, %v18586_v36 }
 0x339   : >> { %17463 = vmatpush3.bf16.msra.mxu0 %v18826_v1  ;;  %17481 = vmatpush3.bf16.msra.mxu1 %v18785_v39 }
 0x33a   : >> { %17470 = vmatprep.subr.bf16.mxu0 %v18584_v31  ;;  %17488 = vmatprep.subr.bf16.mxu1 %v18584_v31 }
 0x33c   : >> { %15809 = vmatmul.mubr.f32.vlgmr.msra.gmra.mrb[38].mxu0 %v3426_v50  ;;  %15842 = vmatmul.mubr.f32.vlgmr.msra.gmra.mrb[40].mxu1 %v3425_v45 }
 0x33d   : >> { %17472 = vmatpush3.bf16.msra.mxu0 %v18840_v16  ;;  %17490 = vmatpush3.bf16.msra.mxu1 %v18807_v58 }
 0x33e   : >> { %17473 = vmatprep.subr.bf16.mxu0 %v18584_v31  ;;  %17491 = vmatprep.subr.bf16.mxu1 %v18584_v31 }
 0x33f   : >> { %15830 = vmatprep.mubr.msk.f32.mxu0 %vm18585_vm0, %v18586_v36  ;;  %15863 = vmatprep.mubr.msk.f32.mxu1 %vm18585_vm0, %v18586_v36 }
 0x340   : >> { %v18473_v61 = vpop.eup %18472 }
 0x341   : >> { %17475 = vmatpush3.bf16.msra.mxu0 %v18852_v18  ;;  %17493 = vmatpush3.bf16.msra.mxu1 %v18817_v63  ;;  %v3863_v0 = vsel %vm296_vm1, %v18473_v61, 0  ;;  %v3335_v2 = vmul.f32 %v18473_v61, %v18733_v23 }
 0x342   : >> { %17482 = vmatprep.subr.bf16.mxu0 %v18584_v31  ;;  %17500 = vmatprep.subr.bf16.mxu1 %v18584_v31  ;;  %v3934_v3 = vand.u32 4294901760, %v3863_v0 }
 0x343   : >> { %v3336_v4 = vsel %vm296_vm1, %v3335_v2, 0.0 }
 0x344   : >> { %15831 = vmatmul.mubr.f32.vlgmr.msra.gmra.mrb[40].mxu0 %v3425_v45  ;;  %v3935_v17 = vsub.f32 %v3863_v0, %v3934_v3  ;;  %15864 = vmatmul.mubr.f32.vlgmr.msra.gmra.mrb[42].mxu1 %v3934_v3  ;;  %v3349_v45 = vpop.permute.xlu1 %3348 }
 0x345   : >> { %17484 = vmatpush3.bf16.msra.mxu0 %v18765_v33  ;;  %17502 = vmatpush3.bf16.msra.mxu1 %v18765_v33  ;;  %v3351_v46 = vmul.f32 %v3349_v45, %v18724_v20 }
 0x346   : >> { %3337 = vadd.xlane.f32.xlu1 %v3336_v4  ;;  %17485 = vmatprep.subr.bf16.mxu0 %v18584_v31  ;;  %v3936_v19 = vand.u32 4294901760, %v3935_v17 }
 0x347   : >> { %17503 = vmatprep.subr.bf16.mxu1 %v18584_v31  ;;  %15885 = vmatprep.mubr.msk.f32.mxu1 %vm18585_vm0, %v18586_v36  ;;  %v3352_v49 = vadd.f32 %v3351_v46, %v18727_v21 }
 0x348   : >> { %15852 = vmatprep.mubr.msk.f32.mxu0 %vm18585_vm0, %v18586_v36  ;;  %v3937_v26 = vsub.f32 %v3935_v17, %v3936_v19 }
 0x349   : >> { %17487 = vmatpush3.bf16.msra.mxu0 %v18785_v39  ;;  %17505 = vmatpush3.bf16.msra.mxu1 %v18785_v39 }
 0x34a   : >> { %17494 = vmatprep.subr.bf16.mxu0 %v18584_v31  ;;  %17512 = vmatprep.subr.bf16.mxu1 %v18584_v31  ;;  %v3938_v27 = vand.u32 4294901760, %v3937_v26 }
 0x34c   : >> { %15886 = vmatmul.mubr.f32.vlgmr.msra.gmra.mrb[44].mxu1 %v3936_v19  ;;  %15853 = vmatmul.mubr.f32.vlgmr.msra.gmra.mrb[42].mxu0 %v3938_v27 }
 0x34d   : >> { %17496 = vmatpush3.bf16.msra.mxu0 %v18815_v62  ;;  %17514 = vmatpush3.bf16.msra.mxu1 %v18765_v33 }
 0x34e   : >> { %17497 = vmatprep.subr.bf16.mxu0 %v18584_v31  ;;  %17515 = vmatprep.subr.bf16.mxu1 %v18584_v31 }
 0x34f   : >> { %15874 = vmatprep.mubr.msk.f32.mxu0 %vm18585_vm0, %v18586_v36  ;;  %15907 = vmatprep.mubr.msk.f32.mxu1 %vm18585_vm0, %v18586_v36 }
 0x351   : >> { %17499 = vmatpush3.bf16.msra.mxu0 %v18826_v1  ;;  %17517 = vmatpush3.bf16.msra.mxu1 %v18785_v39 }
 0x352   : >> { %17506 = vmatprep.subr.bf16.mxu0 %v18584_v31  ;;  %17524 = vmatprep.subr.bf16.mxu1 %v18584_v31 }
 0x354   : >> { %15875 = vmatmul.mubr.f32.vlgmr.msra.gmra.mrb[44].mxu0 %v3935_v17  ;;  %15908 = vmatmul.mubr.f32.vlgmr.msra.gmra.mrb[46].mxu1 %v3934_v3 }
 0x355   : >> { %17508 = vmatpush3.bf16.msra.mxu0 %v18840_v16  ;;  %15896 = vmatprep.mubr.msk.f32.mxu0 %vm18585_vm0, %v18586_v36 }
 0x356   : >> { %17509 = vmatprep.subr.bf16.mxu0 %v18584_v31  ;;  %17526 = vmatpush3.bf16.msra.mxu1 %v18807_v58 }
 0x357   : >> { %17527 = vmatprep.subr.bf16.mxu1 %v18584_v31  ;;  %15929 = vmatprep.mubr.msk.f32.mxu1 %vm18585_vm0, %v18586_v36 }
 0x359   : >> { %17511 = vmatpush3.bf16.msra.mxu0 %v18852_v18 }
 0x35a   : >> { %17529 = vmatpush3.bf16.msra.mxu1 %v18817_v63  ;;  %17518 = vmatprep.subr.bf16.mxu0 %v18584_v31 }
 0x35b   : >> { %17536 = vmatprep.subr.bf16.mxu1 %v18584_v31 }
 0x35c   : >> { %15897 = vmatmul.mubr.f32.vlgmr.msra.gmra.mrb[46].mxu0 %v3934_v3 }
 0x35d   : >> { %17520 = vmatpush3.bf16.msra.mxu0 %v18765_v33  ;;  %15918 = vmatprep.mubr.msk.f32.mxu0 %vm18585_vm0, %v18586_v36 }
 0x35e   : >> { %17521 = vmatprep.subr.bf16.mxu0 %v18584_v31 }
 0x361   : >> { %17523 = vmatpush3.bf16.msra.mxu0 %v18785_v39 }
 0x362   : >> { %17530 = vmatprep.subr.bf16.mxu0 %v18584_v31 }
 0x3ff   : >> { %v3522_v28 = vpop.f32.mrb[36].mxu1 }
 0x400   : >> { %v15799_v29 = vpop.f32.mrb[37].mxu1 }
 0x401   : >> { %v3858_v29 = vpop.permute.xlu0 %3857 }
 0x407   : >> { %v3679_v30 = vpop.f32.mrb[38].mxu1  ;;  %v3431_v32 = vpop.f32.mrb[36].mxu0 }
 0x408   : >> { %v3523_v34 = vadd.f32 %v3522_v28, %v3431_v32  ;;  %v15821_v35 = vpop.f32.mrb[39].mxu1  ;;  %v15788_v37 = vpop.f32.mrb[37].mxu0  ;;  %v3860_v32 = vmul.f32 %v3858_v29, %v18724_v20 }
 0x40f   : >> { %v3602_v38 = vpop.f32.mrb[38].mxu0  ;;  %v3837_v40 = vpop.f32.mrb[40].mxu1 }
 0x410   : >> { %v3603_v41 = vadd.f32 %v3602_v38, %v3523_v34  ;;  %v15810_v42 = vpop.f32.mrb[39].mxu0  ;;  %v15843_v43 = vpop.f32.mrb[41].mxu1  ;;  %v3861_v38 = vadd.f32 %v3860_v32, %v18727_v21 }
 0x412   : >> { %v3680_v44 = vadd.f32 %v3679_v30, %v3603_v41 }
 0x417   : >> { %v3762_v47 = vpop.f32.mrb[40].mxu0  ;;  %v4031_v48 = vpop.f32.mrb[42].mxu1 }
 0x418   : >> { %v3763_v50 = vadd.f32 %v3762_v47, %v3680_v44  ;;  %v15832_v51 = vpop.f32.mrb[41].mxu0  ;;  %v15865_v52 = vpop.f32.mrb[43].mxu1 }
 0x41a   : >> { %v3838_v53 = vadd.f32 %v3837_v40, %v3763_v50 }
 0x41c   : >> { %v3841_v54 = vadd.f32 %v3838_v53, %v3352_v49 }
 0x41e   : >> { %18474 = vtanh.f32 %v3841_v54 }
 0x41f   : >> { %v4188_v55 = vpop.f32.mrb[44].mxu1  ;;  %v3940_v56 = vpop.f32.mrb[42].mxu0 }
 0x420   : >> { %v4032_v57 = vadd.f32 %v4031_v48, %v3940_v56  ;;  %v15887_v59 = vpop.f32.mrb[45].mxu1  ;;  %v15854_v60 = vpop.f32.mrb[43].mxu0 }
 0x427   : >> { %v4111_v61 = vpop.f32.mrb[44].mxu0  ;;  %v4346_v0 = vpop.f32.mrb[46].mxu1 }
 0x428   : >> { %v18475_v2 = vpop.eup %18474  ;;  %v4112_v3 = vadd.f32 %v4111_v61, %v4032_v57  ;;  %v15876_v4 = vpop.f32.mrb[45].mxu0 }
 0x429   : >> { %v15909_v17 = vpop.f32.mrb[47].mxu1  ;;  %v4371_v19 = vsel %vm296_vm1, %v18475_v2, 0  ;;  %v3843_v26 = vmul.f32 %v18475_v2, %v18733_v23 }
 0x42a   : >> { %v4442_v27 = vand.u32 4294901760, %v4371_v19  ;;  %v4189_v28 = vadd.f32 %v4188_v55, %v4112_v3 }
 0x42b   : >> { %v3844_v30 = vsel %vm296_vm1, %v3843_v26, 0.0 }
 0x42c   : >> { %v4443_v34 = vsub.f32 %v4371_v19, %v4442_v27  ;;  %15930 = vmatmul.mubr.f32.vlgmr.msra.gmra.mrb[48].mxu1 %v4442_v27  ;;  %3845 = vadd.xlane.f32.xlu0 %v3844_v30 }
 0x42d   : >> { %17538 = vmatpush3.bf16.msra.mxu1 %v18765_v33  ;;  %15951 = vmatprep.mubr.msk.f32.mxu1 %vm18585_vm0, %v18586_v36 }
 0x42e   : >> { %17539 = vmatprep.subr.bf16.mxu1 %v18584_v31  ;;  %v4444_v35 = vand.u32 4294901760, %v4443_v34 }
 0x42f   : >> { %v4271_v37 = vpop.f32.mrb[46].mxu0 }
 0x430   : >> { %v4272_v40 = vadd.f32 %v4271_v37, %v4189_v28  ;;  %v15898_v41 = vpop.f32.mrb[47].mxu0  ;;  %v4445_v42 = vsub.f32 %v4443_v34, %v4444_v35 }
 0x431   : >> { %17541 = vmatpush3.bf16.msra.mxu1 %v18785_v39 }
 0x432   : >> { %v4347_v43 = vadd.f32 %v4346_v0, %v4272_v40  ;;  %17548 = vmatprep.subr.bf16.mxu1 %v18584_v31  ;;  %v4446_v44 = vand.u32 4294901760, %v4445_v42 }
 0x434   : >> { %v4350_v45 = vadd.f32 %v4347_v43, %v3861_v38  ;;  %15952 = vmatmul.mubr.f32.vlgmr.msra.gmra.mrb[50].mxu1 %v4444_v35  ;;  %15919 = vmatmul.mubr.f32.vlgmr.msra.gmra.mrb[48].mxu0 %v4446_v44 }
 0x435   : >> { %17532 = vmatpush3.bf16.msra.mxu0 %v18815_v62  ;;  %17550 = vmatpush3.bf16.msra.mxu1 %v18765_v33 }
 0x436   : >> { %18476 = vtanh.f32 %v4350_v45  ;;  %17533 = vmatprep.subr.bf16.mxu0 %v18584_v31  ;;  %17551 = vmatprep.subr.bf16.mxu1 %v18584_v31 }
 0x437   : >> { %15940 = vmatprep.mubr.msk.f32.mxu0 %vm18585_vm0, %v18586_v36  ;;  %15973 = vmatprep.mubr.msk.f32.mxu1 %vm18585_vm0, %v18586_v36 }
 0x439   : >> { %17535 = vmatpush3.bf16.msra.mxu0 %v18826_v1  ;;  %17553 = vmatpush3.bf16.msra.mxu1 %v18785_v39 }
 0x43a   : >> { %17542 = vmatprep.subr.bf16.mxu0 %v18584_v31  ;;  %17560 = vmatprep.subr.bf16.mxu1 %v18584_v31 }
 0x43c   : >> { %15941 = vmatmul.mubr.f32.vlgmr.msra.gmra.mrb[50].mxu0 %v4443_v34  ;;  %15974 = vmatmul.mubr.f32.vlgmr.msra.gmra.mrb[52].mxu1 %v4442_v27 }
 0x43d   : >> { %17544 = vmatpush3.bf16.msra.mxu0 %v18840_v16  ;;  %17562 = vmatpush3.bf16.msra.mxu1 %v18807_v58 }
 0x43e   : >> { %17545 = vmatprep.subr.bf16.mxu0 %v18584_v31  ;;  %17563 = vmatprep.subr.bf16.mxu1 %v18584_v31 }
 0x43f   : >> { %15962 = vmatprep.mubr.msk.f32.mxu0 %vm18585_vm0, %v18586_v36  ;;  %15995 = vmatprep.mubr.msk.f32.mxu1 %vm18585_vm0, %v18586_v36 }
 0x440   : >> { %v18477_v46 = vpop.eup %18476 }
 0x441   : >> { %17547 = vmatpush3.bf16.msra.mxu0 %v18852_v18  ;;  %17565 = vmatpush3.bf16.msra.mxu1 %v18817_v63  ;;  %v4880_v47 = vsel %vm296_vm1, %v18477_v46, 0  ;;  %v4352_v48 = vmul.f32 %v18477_v46, %v18733_v23 }
 0x442   : >> { %17554 = vmatprep.subr.bf16.mxu0 %v18584_v31  ;;  %17572 = vmatprep.subr.bf16.mxu1 %v18584_v31  ;;  %v4951_v49 = vand.u32 4294901760, %v4880_v47 }
 0x443   : >> { %v4353_v50 = vsel %vm296_vm1, %v4352_v48, 0.0 }
 0x444   : >> { %15963 = vmatmul.mubr.f32.vlgmr.msra.gmra.mrb[52].mxu0 %v4442_v27  ;;  %v4952_v51 = vsub.f32 %v4880_v47, %v4951_v49  ;;  %15996 = vmatmul.mubr.f32.vlgmr.msra.gmra.mrb[54].mxu1 %v4951_v49  ;;  %v4366_v27 = vpop.permute.xlu1 %4365 }
 0x445   : >> { %17556 = vmatpush3.bf16.msra.mxu0 %v18765_v33  ;;  %17574 = vmatpush3.bf16.msra.mxu1 %v18765_v33  ;;  %v4368_v28 = vmul.f32 %v4366_v27, %v18724_v20 }
 0x446   : >> { %4354 = vadd.xlane.f32.xlu1 %v4353_v50  ;;  %17557 = vmatprep.subr.bf16.mxu0 %v18584_v31  ;;  %v4953_v52 = vand.u32 4294901760, %v4952_v51 }
 0x447   : >> { %17575 = vmatprep.subr.bf16.mxu1 %v18584_v31  ;;  %16017 = vmatprep.mubr.msk.f32.mxu1 %vm18585_vm0, %v18586_v36  ;;  %v4369_v32 = vadd.f32 %v4368_v28, %v18727_v21 }
 0x448   : >> { %15984 = vmatprep.mubr.msk.f32.mxu0 %vm18585_vm0, %v18586_v36  ;;  %v4954_v53 = vsub.f32 %v4952_v51, %v4953_v52 }
 0x449   : >> { %17559 = vmatpush3.bf16.msra.mxu0 %v18785_v39  ;;  %17577 = vmatpush3.bf16.msra.mxu1 %v18785_v39 }
 0x44a   : >> { %17566 = vmatprep.subr.bf16.mxu0 %v18584_v31  ;;  %17584 = vmatprep.subr.bf16.mxu1 %v18584_v31  ;;  %v4955_v54 = vand.u32 4294901760, %v4954_v53 }
 0x44c   : >> { %16018 = vmatmul.mubr.f32.vlgmr.msra.gmra.mrb[56].mxu1 %v4953_v52  ;;  %15985 = vmatmul.mubr.f32.vlgmr.msra.gmra.mrb[54].mxu0 %v4955_v54 }
 0x44d   : >> { %17568 = vmatpush3.bf16.msra.mxu0 %v18815_v62  ;;  %17586 = vmatpush3.bf16.msra.mxu1 %v18765_v33 }
 0x44e   : >> { %17569 = vmatprep.subr.bf16.mxu0 %v18584_v31  ;;  %17587 = vmatprep.subr.bf16.mxu1 %v18584_v31 }
 0x44f   : >> { %16006 = vmatprep.mubr.msk.f32.mxu0 %vm18585_vm0, %v18586_v36  ;;  %16039 = vmatprep.mubr.msk.f32.mxu1 %vm18585_vm0, %v18586_v36 }
 0x451   : >> { %17571 = vmatpush3.bf16.msra.mxu0 %v18826_v1  ;;  %17589 = vmatpush3.bf16.msra.mxu1 %v18785_v39 }
 0x452   : >> { %17578 = vmatprep.subr.bf16.mxu0 %v18584_v31  ;;  %17596 = vmatprep.subr.bf16.mxu1 %v18584_v31 }
 0x454   : >> { %16007 = vmatmul.mubr.f32.vlgmr.msra.gmra.mrb[56].mxu0 %v4952_v51  ;;  %16040 = vmatmul.mubr.f32.vlgmr.msra.gmra.mrb[58].mxu1 %v4951_v49 }
 0x455   : >> { %17580 = vmatpush3.bf16.msra.mxu0 %v18840_v16  ;;  %16028 = vmatprep.mubr.msk.f32.mxu0 %vm18585_vm0, %v18586_v36 }
 0x456   : >> { %17581 = vmatprep.subr.bf16.mxu0 %v18584_v31  ;;  %17598 = vmatpush3.bf16.msra.mxu1 %v18807_v58 }
 0x457   : >> { %17599 = vmatprep.subr.bf16.mxu1 %v18584_v31  ;;  %16061 = vmatprep.mubr.msk.f32.mxu1 %vm18585_vm0, %v18586_v36 }
 0x459   : >> { %17583 = vmatpush3.bf16.msra.mxu0 %v18852_v18 }
 0x45a   : >> { %17601 = vmatpush3.bf16.msra.mxu1 %v18817_v63  ;;  %17590 = vmatprep.subr.bf16.mxu0 %v18584_v31 }
 0x45b   : >> { %17608 = vmatprep.subr.bf16.mxu1 %v18584_v31 }
 0x45c   : >> { %16029 = vmatmul.mubr.f32.vlgmr.msra.gmra.mrb[58].mxu0 %v4951_v49 }
 0x45d   : >> { %17592 = vmatpush3.bf16.msra.mxu0 %v18765_v33  ;;  %16050 = vmatprep.mubr.msk.f32.mxu0 %vm18585_vm0, %v18586_v36 }
 0x45e   : >> { %17593 = vmatprep.subr.bf16.mxu0 %v18584_v31 }
 0x461   : >> { %17595 = vmatpush3.bf16.msra.mxu0 %v18785_v39 }
 0x462   : >> { %17602 = vmatprep.subr.bf16.mxu0 %v18584_v31 }
 0x4ff   : >> { %v4539_v55 = vpop.f32.mrb[48].mxu1 }
 0x500   : >> { %v15931_v56 = vpop.f32.mrb[49].mxu1 }
 0x507   : >> { %v4696_v57 = vpop.f32.mrb[50].mxu1  ;;  %v4448_v59 = vpop.f32.mrb[48].mxu0 }
 0x508   : >> { %v4540_v60 = vadd.f32 %v4539_v55, %v4448_v59  ;;  %v15953_v61 = vpop.f32.mrb[51].mxu1  ;;  %v15920_v0 = vpop.f32.mrb[49].mxu0 }
 0x509   : >> { %v4875_v59 = vpop.permute.xlu1 %4874 }
 0x50f   : >> { %v4619_v2 = vpop.f32.mrb[50].mxu0  ;;  %v4854_v3 = vpop.f32.mrb[52].mxu1 }
 0x510   : >> { %v4620_v4 = vadd.f32 %v4619_v2, %v4540_v60  ;;  %v15942_v17 = vpop.f32.mrb[51].mxu0  ;;  %v15975_v19 = vpop.f32.mrb[53].mxu1  ;;  %v4877_v60 = vmul.f32 %v4875_v59, %v18724_v20 }
 0x512   : >> { %v4697_v26 = vadd.f32 %v4696_v57, %v4620_v4  ;;  %v4878_v17 = vadd.f32 %v4877_v60, %v18727_v21 }
 0x517   : >> { %v4779_v29 = vpop.f32.mrb[52].mxu0  ;;  %v5048_v30 = vpop.f32.mrb[54].mxu1 }
 0x518   : >> { %v4780_v34 = vadd.f32 %v4779_v29, %v4697_v26  ;;  %v15964_v35 = vpop.f32.mrb[53].mxu0  ;;  %v15997_v37 = vpop.f32.mrb[55].mxu1 }
 0x51a   : >> { %v4855_v38 = vadd.f32 %v4854_v3, %v4780_v34 }
 0x51c   : >> { %v4858_v40 = vadd.f32 %v4855_v38, %v4369_v32 }
 0x51e   : >> { %18478 = vtanh.f32 %v4858_v40 }
 0x51f   : >> { %v5205_v41 = vpop.f32.mrb[56].mxu1  ;;  %v4957_v42 = vpop.f32.mrb[54].mxu0 }
 0x520   : >> { %v5049_v43 = vadd.f32 %v5048_v30, %v4957_v42  ;;  %v16019_v44 = vpop.f32.mrb[57].mxu1  ;;  %v15986_v45 = vpop.f32.mrb[55].mxu0 }
 0x527   : >> { %v5128_v46 = vpop.f32.mrb[56].mxu0  ;;  %v5363_v47 = vpop.f32.mrb[58].mxu1 }
 0x528   : >> { %v18479_v48 = vpop.eup %18478  ;;  %v5129_v49 = vadd.f32 %v5128_v46, %v5049_v43  ;;  %v16008_v50 = vpop.f32.mrb[57].mxu0 }
 0x529   : >> { %v16041_v51 = vpop.f32.mrb[59].mxu1  ;;  %v5388_v52 = vsel %vm296_vm1, %v18479_v48, 0  ;;  %v4860_v53 = vmul.f32 %v18479_v48, %v18733_v23 }
 0x52a   : >> { %v5459_v54 = vand.u32 4294901760, %v5388_v52  ;;  %v5206_v55 = vadd.f32 %v5205_v41, %v5129_v49 }
 0x52b   : >> { %v4861_v56 = vsel %vm296_vm1, %v4860_v53, 0.0 }
 0x52c   : >> { %v5460_v57 = vsub.f32 %v5388_v52, %v5459_v54  ;;  %16062 = vmatmul.mubr.f32.vlgmr.msra.gmra.mrb[60].mxu1 %v5459_v54  ;;  %4862 = vadd.xlane.f32.xlu0 %v4861_v56 }
 0x52d   : >> { %17610 = vmatpush3.bf16.msra.mxu1 %v18765_v33  ;;  %16083 = vmatprep.mubr.msk.f32.mxu1 %vm18585_vm0, %v18586_v36 }
 0x52e   : >> { %17611 = vmatprep.subr.bf16.mxu1 %v18584_v31  ;;  %v5461_v61 = vand.u32 4294901760, %v5460_v57 }
 0x52f   : >> { %v5288_v0 = vpop.f32.mrb[58].mxu0 }
 0x530   : >> { %v5289_v2 = vadd.f32 %v5288_v0, %v5206_v55  ;;  %v16030_v3 = vpop.f32.mrb[59].mxu0  ;;  %v5462_v4 = vsub.f32 %v5460_v57, %v5461_v61 }
 0x531   : >> { %17613 = vmatpush3.bf16.msra.mxu1 %v18785_v39 }
 0x532   : >> { %v5364_v19 = vadd.f32 %v5363_v47, %v5289_v2  ;;  %17620 = vmatprep.subr.bf16.mxu1 %v18584_v31  ;;  %v5463_v26 = vand.u32 4294901760, %v5462_v4 }
 0x534   : >> { %v5367_v27 = vadd.f32 %v5364_v19, %v4878_v17  ;;  %16084 = vmatmul.mubr.f32.vlgmr.msra.gmra.mrb[62].mxu1 %v5461_v61  ;;  %16051 = vmatmul.mubr.f32.vlgmr.msra.gmra.mrb[60].mxu0 %v5463_v26 }
 0x535   : >> { %17604 = vmatpush3.bf16.msra.mxu0 %v18815_v62  ;;  %17622 = vmatpush3.bf16.msra.mxu1 %v18765_v33 }
 0x536   : >> { %18480 = vtanh.f32 %v5367_v27  ;;  %17605 = vmatprep.subr.bf16.mxu0 %v18584_v31  ;;  %17623 = vmatprep.subr.bf16.mxu1 %v18584_v31 }
 0x537   : >> { %16072 = vmatprep.mubr.msk.f32.mxu0 %vm18585_vm0, %v18586_v36  ;;  %16105 = vmatprep.mubr.msk.f32.mxu1 %vm18585_vm0, %v18586_v36 }
 0x539   : >> { %17607 = vmatpush3.bf16.msra.mxu0 %v18826_v1  ;;  %17625 = vmatpush3.bf16.msra.mxu1 %v18785_v39 }
 0x53a   : >> { %17614 = vmatprep.subr.bf16.mxu0 %v18584_v31  ;;  %17632 = vmatprep.subr.bf16.mxu1 %v18584_v31 }
 0x53c   : >> { %16073 = vmatmul.mubr.f32.vlgmr.msra.gmra.mrb[62].mxu0 %v5460_v57  ;;  %16106 = vmatmul.mubr.f32.vlgmr.msra.gmra.mrb[64].mxu1 %v5459_v54 }
 0x53d   : >> { %17616 = vmatpush3.bf16.msra.mxu0 %v18840_v16  ;;  %17634 = vmatpush3.bf16.msra.mxu1 %v18807_v58 }
 0x53e   : >> { %17617 = vmatprep.subr.bf16.mxu0 %v18584_v31  ;;  %17635 = vmatprep.subr.bf16.mxu1 %v18584_v31 }
 0x53f   : >> { %16094 = vmatprep.mubr.msk.f32.mxu0 %vm18585_vm0, %v18586_v36  ;;  %16127 = vmatprep.mubr.msk.f32.mxu1 %vm18585_vm0, %v18586_v36 }
 0x540   : >> { %v18481_v28 = vpop.eup %18480 }
 0x541   : >> { %17619 = vmatpush3.bf16.msra.mxu0 %v18852_v18  ;;  %17637 = vmatpush3.bf16.msra.mxu1 %v18817_v63  ;;  %v5897_v29 = vsel %vm296_vm1, %v18481_v28, 0  ;;  %v5369_v30 = vmul.f32 %v18481_v28, %v18733_v23 }
 0x542   : >> { %17626 = vmatprep.subr.bf16.mxu0 %v18584_v31  ;;  %17644 = vmatprep.subr.bf16.mxu1 %v18584_v31  ;;  %v5968_v32 = vand.u32 4294901760, %v5897_v29 }
 0x543   : >> { %v5370_v34 = vsel %vm296_vm1, %v5369_v30, 0.0 }
 0x544   : >> { %16095 = vmatmul.mubr.f32.vlgmr.msra.gmra.mrb[64].mxu0 %v5459_v54  ;;  %v5969_v35 = vsub.f32 %v5897_v29, %v5968_v32  ;;  %16128 = vmatmul.mubr.f32.vlgmr.msra.gmra.mrb[66].mxu1 %v5968_v32  ;;  %v5383_v54 = vpop.permute.xlu0 %5382 }
 0x545   : >> { %17628 = vmatpush3.bf16.msra.mxu0 %v18765_v33  ;;  %17646 = vmatpush3.bf16.msra.mxu1 %v18765_v33  ;;  %v5385_v55 = vmul.f32 %v5383_v54, %v18724_v20 }
 0x546   : >> { %5371 = vadd.xlane.f32.xlu1 %v5370_v34  ;;  %17629 = vmatprep.subr.bf16.mxu0 %v18584_v31  ;;  %v5970_v37 = vand.u32 4294901760, %v5969_v35 }
 0x547   : >> { %17647 = vmatprep.subr.bf16.mxu1 %v18584_v31  ;;  %16149 = vmatprep.mubr.msk.f32.mxu1 %vm18585_vm0, %v18586_v36  ;;  %v5386_v59 = vadd.f32 %v5385_v55, %v18727_v21 }
 0x548   : >> { %16116 = vmatprep.mubr.msk.f32.mxu0 %vm18585_vm0, %v18586_v36  ;;  %v5971_v38 = vsub.f32 %v5969_v35, %v5970_v37 }
 0x549   : >> { %17631 = vmatpush3.bf16.msra.mxu0 %v18785_v39  ;;  %17649 = vmatpush3.bf16.msra.mxu1 %v18785_v39 }
 0x54a   : >> { %17638 = vmatprep.subr.bf16.mxu0 %v18584_v31  ;;  %17656 = vmatprep.subr.bf16.mxu1 %v18584_v31  ;;  %v5972_v40 = vand.u32 4294901760, %v5971_v38 }
 0x54c   : >> { %16150 = vmatmul.mubr.f32.vlgmr.msra.gmra.mrb[68].mxu1 %v5970_v37  ;;  %16117 = vmatmul.mubr.f32.vlgmr.msra.gmra.mrb[66].mxu0 %v5972_v40 }
 0x54d   : >> { %17640 = vmatpush3.bf16.msra.mxu0 %v18815_v62  ;;  %17658 = vmatpush3.bf16.msra.mxu1 %v18765_v33 }
 0x54e   : >> { %17641 = vmatprep.subr.bf16.mxu0 %v18584_v31  ;;  %17659 = vmatprep.subr.bf16.mxu1 %v18584_v31 }
 0x54f   : >> { %16138 = vmatprep.mubr.msk.f32.mxu0 %vm18585_vm0, %v18586_v36  ;;  %16171 = vmatprep.mubr.msk.f32.mxu1 %vm18585_vm0, %v18586_v36 }
 0x551   : >> { %17643 = vmatpush3.bf16.msra.mxu0 %v18826_v1  ;;  %17661 = vmatpush3.bf16.msra.mxu1 %v18785_v39 }
 0x552   : >> { %17650 = vmatprep.subr.bf16.mxu0 %v18584_v31  ;;  %17668 = vmatprep.subr.bf16.mxu1 %v18584_v31 }
 0x554   : >> { %16139 = vmatmul.mubr.f32.vlgmr.msra.gmra.mrb[68].mxu0 %v5969_v35  ;;  %16172 = vmatmul.mubr.f32.vlgmr.msra.gmra.mrb[70].mxu1 %v5968_v32 }
 0x555   : >> { %17652 = vmatpush3.bf16.msra.mxu0 %v18840_v16  ;;  %16160 = vmatprep.mubr.msk.f32.mxu0 %vm18585_vm0, %v18586_v36 }
 0x556   : >> { %17653 = vmatprep.subr.bf16.mxu0 %v18584_v31  ;;  %17670 = vmatpush3.bf16.msra.mxu1 %v18807_v58 }
 0x557   : >> { %17671 = vmatprep.subr.bf16.mxu1 %v18584_v31  ;;  %16193 = vmatprep.mubr.msk.f32.mxu1 %vm18585_vm0, %v18586_v36 }
 0x559   : >> { %17655 = vmatpush3.bf16.msra.mxu0 %v18852_v18 }
 0x55a   : >> { %17673 = vmatpush3.bf16.msra.mxu1 %v18817_v63  ;;  %17662 = vmatprep.subr.bf16.mxu0 %v18584_v31 }
 0x55b   : >> { %17680 = vmatprep.subr.bf16.mxu1 %v18584_v31 }
 0x55c   : >> { %16161 = vmatmul.mubr.f32.vlgmr.msra.gmra.mrb[70].mxu0 %v5968_v32 }
 0x55d   : >> { %17664 = vmatpush3.bf16.msra.mxu0 %v18765_v33  ;;  %16182 = vmatprep.mubr.msk.f32.mxu0 %vm18585_vm0, %v18586_v36 }
 0x55e   : >> { %17665 = vmatprep.subr.bf16.mxu0 %v18584_v31 }
 0x561   : >> { %17667 = vmatpush3.bf16.msra.mxu0 %v18785_v39 }
 0x562   : >> { %17674 = vmatprep.subr.bf16.mxu0 %v18584_v31 }
 0x5ff   : >> { %v5556_v41 = vpop.f32.mrb[60].mxu1 }
 0x600   : >> { %v16063_v42 = vpop.f32.mrb[61].mxu1 }
 0x601   : >> { %v5892_v42 = vpop.permute.xlu1 %5891 }
 0x607   : >> { %v5713_v43 = vpop.f32.mrb[62].mxu1  ;;  %v5465_v44 = vpop.f32.mrb[60].mxu0 }
 0x608   : >> { %v5557_v45 = vadd.f32 %v5556_v41, %v5465_v44  ;;  %v16085_v46 = vpop.f32.mrb[63].mxu1  ;;  %v16052_v47 = vpop.f32.mrb[61].mxu0  ;;  %v5894_v44 = vmul.f32 %v5892_v42, %v18724_v20 }
 0x60f   : >> { %v5636_v48 = vpop.f32.mrb[62].mxu0  ;;  %v5871_v49 = vpop.f32.mrb[64].mxu1 }
 0x610   : >> { %v5637_v50 = vadd.f32 %v5636_v48, %v5557_v45  ;;  %v16074_v51 = vpop.f32.mrb[63].mxu0  ;;  %v16107_v52 = vpop.f32.mrb[65].mxu1  ;;  %v5895_v48 = vadd.f32 %v5894_v44, %v18727_v21 }
 0x612   : >> { %v5714_v53 = vadd.f32 %v5713_v43, %v5637_v50 }
 0x617   : >> { %v5796_v56 = vpop.f32.mrb[64].mxu0  ;;  %v6065_v57 = vpop.f32.mrb[66].mxu1 }
 0x618   : >> { %v5797_v60 = vadd.f32 %v5796_v56, %v5714_v53  ;;  %v16096_v61 = vpop.f32.mrb[65].mxu0  ;;  %v16129_v0 = vpop.f32.mrb[67].mxu1 }
 0x61a   : >> { %v5872_v2 = vadd.f32 %v5871_v49, %v5797_v60 }
 0x61c   : >> { %v5875_v3 = vadd.f32 %v5872_v2, %v5386_v59 }
 0x61e   : >> { %18482 = vtanh.f32 %v5875_v3 }
 0x61f   : >> { %v6222_v4 = vpop.f32.mrb[68].mxu1  ;;  %v5974_v17 = vpop.f32.mrb[66].mxu0 }
 0x620   : >> { %v6066_v19 = vadd.f32 %v6065_v57, %v5974_v17  ;;  %v16151_v26 = vpop.f32.mrb[69].mxu1  ;;  %v16118_v27 = vpop.f32.mrb[67].mxu0 }
 0x627   : >> { %v6145_v28 = vpop.f32.mrb[68].mxu0  ;;  %v6380_v29 = vpop.f32.mrb[70].mxu1 }
 0x628   : >> { %v18483_v30 = vpop.eup %18482  ;;  %v6146_v32 = vadd.f32 %v6145_v28, %v6066_v19  ;;  %v16140_v34 = vpop.f32.mrb[69].mxu0 }
 0x629   : >> { %v16173_v35 = vpop.f32.mrb[71].mxu1  ;;  %v6405_v37 = vsel %vm296_vm1, %v18483_v30, 0  ;;  %v5877_v38 = vmul.f32 %v18483_v30, %v18733_v23 }
 0x62a   : >> { %v6476_v40 = vand.u32 4294901760, %v6405_v37  ;;  %v6223_v41 = vadd.f32 %v6222_v4, %v6146_v32 }
 0x62b   : >> { %v5878_v43 = vsel %vm296_vm1, %v5877_v38, 0.0 }
 0x62c   : >> { %v6477_v45 = vsub.f32 %v6405_v37, %v6476_v40  ;;  %16194 = vmatmul.mubr.f32.vlgmr.msra.gmra.mrb[72].mxu1 %v6476_v40  ;;  %5879 = vadd.xlane.f32.xlu0 %v5878_v43 }
 0x62d   : >> { %17682 = vmatpush3.bf16.msra.mxu1 %v18765_v33  ;;  %16215 = vmatprep.mubr.msk.f32.mxu1 %vm18585_vm0, %v18586_v36 }
 0x62e   : >> { %17683 = vmatprep.subr.bf16.mxu1 %v18584_v31  ;;  %v6478_v46 = vand.u32 4294901760, %v6477_v45 }
 0x62f   : >> { %v6305_v47 = vpop.f32.mrb[70].mxu0 }
 0x630   : >> { %v6306_v49 = vadd.f32 %v6305_v47, %v6223_v41  ;;  %v16162_v50 = vpop.f32.mrb[71].mxu0  ;;  %v6479_v51 = vsub.f32 %v6477_v45, %v6478_v46 }
 0x631   : >> { %17685 = vmatpush3.bf16.msra.mxu1 %v18785_v39 }
 0x632   : >> { %v6381_v52 = vadd.f32 %v6380_v29, %v6306_v49  ;;  %17692 = vmatprep.subr.bf16.mxu1 %v18584_v31  ;;  %v6480_v53 = vand.u32 4294901760, %v6479_v51 }
 0x634   : >> { %v6384_v54 = vadd.f32 %v6381_v52, %v5895_v48  ;;  %16216 = vmatmul.mubr.f32.vlgmr.msra.gmra.mrb[74].mxu1 %v6478_v46  ;;  %16183 = vmatmul.mubr.f32.vlgmr.msra.gmra.mrb[72].mxu0 %v6480_v53 }
 0x635   : >> { %17676 = vmatpush3.bf16.msra.mxu0 %v18815_v62  ;;  %17694 = vmatpush3.bf16.msra.mxu1 %v18765_v33 }
 0x636   : >> { %18484 = vtanh.f32 %v6384_v54  ;;  %17677 = vmatprep.subr.bf16.mxu0 %v18584_v31  ;;  %17695 = vmatprep.subr.bf16.mxu1 %v18584_v31 }
 0x637   : >> { %16204 = vmatprep.mubr.msk.f32.mxu0 %vm18585_vm0, %v18586_v36  ;;  %16237 = vmatprep.mubr.msk.f32.mxu1 %vm18585_vm0, %v18586_v36 }
 0x639   : >> { %17679 = vmatpush3.bf16.msra.mxu0 %v18826_v1  ;;  %17697 = vmatpush3.bf16.msra.mxu1 %v18785_v39 }
 0x63a   : >> { %17686 = vmatprep.subr.bf16.mxu0 %v18584_v31  ;;  %17704 = vmatprep.subr.bf16.mxu1 %v18584_v31 }
 0x63c   : >> { %16205 = vmatmul.mubr.f32.vlgmr.msra.gmra.mrb[74].mxu0 %v6477_v45  ;;  %16238 = vmatmul.mubr.f32.vlgmr.msra.gmra.mrb[76].mxu1 %v6476_v40 }
 0x63d   : >> { %17688 = vmatpush3.bf16.msra.mxu0 %v18840_v16  ;;  %17706 = vmatpush3.bf16.msra.mxu1 %v18807_v58 }
 0x63e   : >> { %17689 = vmatprep.subr.bf16.mxu0 %v18584_v31  ;;  %17707 = vmatprep.subr.bf16.mxu1 %v18584_v31 }
 0x63f   : >> { %16226 = vmatprep.mubr.msk.f32.mxu0 %vm18585_vm0, %v18586_v36  ;;  %16259 = vmatprep.mubr.msk.f32.mxu1 %vm18585_vm0, %v18586_v36 }
 0x640   : >> { %v18485_v55 = vpop.eup %18484 }
 0x641   : >> { %17691 = vmatpush3.bf16.msra.mxu0 %v18852_v18  ;;  %17709 = vmatpush3.bf16.msra.mxu1 %v18817_v63  ;;  %v6914_v56 = vsel %vm296_vm1, %v18485_v55, 0  ;;  %v6386_v57 = vmul.f32 %v18485_v55, %v18733_v23 }
 0x642   : >> { %17698 = vmatprep.subr.bf16.mxu0 %v18584_v31  ;;  %17716 = vmatprep.subr.bf16.mxu1 %v18584_v31  ;;  %v6985_v59 = vand.u32 4294901760, %v6914_v56 }
 0x643   : >> { %v6387_v60 = vsel %vm296_vm1, %v6386_v57, 0.0 }
 0x644   : >> { %16227 = vmatmul.mubr.f32.vlgmr.msra.gmra.mrb[76].mxu0 %v6476_v40  ;;  %v6986_v61 = vsub.f32 %v6914_v56, %v6985_v59  ;;  %16260 = vmatmul.mubr.f32.vlgmr.msra.gmra.mrb[78].mxu1 %v6985_v59  ;;  %v6400_v40 = vpop.permute.xlu0 %6399 }
 0x645   : >> { %17700 = vmatpush3.bf16.msra.mxu0 %v18765_v33  ;;  %17718 = vmatpush3.bf16.msra.mxu1 %v18765_v33  ;;  %v6402_v41 = vmul.f32 %v6400_v40, %v18724_v20 }
 0x646   : >> { %6388 = vadd.xlane.f32.xlu1 %v6387_v60  ;;  %17701 = vmatprep.subr.bf16.mxu0 %v18584_v31  ;;  %v6987_v0 = vand.u32 4294901760, %v6986_v61 }
 0x647   : >> { %17719 = vmatprep.subr.bf16.mxu1 %v18584_v31  ;;  %16281 = vmatprep.mubr.msk.f32.mxu1 %vm18585_vm0, %v18586_v36  ;;  %v6403_v44 = vadd.f32 %v6402_v41, %v18727_v21 }
 0x648   : >> { %16248 = vmatprep.mubr.msk.f32.mxu0 %vm18585_vm0, %v18586_v36  ;;  %v6988_v2 = vsub.f32 %v6986_v61, %v6987_v0 }
 0x649   : >> { %17703 = vmatpush3.bf16.msra.mxu0 %v18785_v39  ;;  %17721 = vmatpush3.bf16.msra.mxu1 %v18785_v39 }
 0x64a   : >> { %17710 = vmatprep.subr.bf16.mxu0 %v18584_v31  ;;  %17728 = vmatprep.subr.bf16.mxu1 %v18584_v31  ;;  %v6989_v3 = vand.u32 4294901760, %v6988_v2 }
 0x64c   : >> { %16282 = vmatmul.mubr.f32.vlgmr.msra.gmra.mrb[80].mxu1 %v6987_v0  ;;  %16249 = vmatmul.mubr.f32.vlgmr.msra.gmra.mrb[78].mxu0 %v6989_v3 }
 0x64d   : >> { %17712 = vmatpush3.bf16.msra.mxu0 %v18815_v62  ;;  %17730 = vmatpush3.bf16.msra.mxu1 %v18765_v33 }
 0x64e   : >> { %17713 = vmatprep.subr.bf16.mxu0 %v18584_v31  ;;  %17731 = vmatprep.subr.bf16.mxu1 %v18584_v31 }
 0x64f   : >> { %16270 = vmatprep.mubr.msk.f32.mxu0 %vm18585_vm0, %v18586_v36  ;;  %16303 = vmatprep.mubr.msk.f32.mxu1 %vm18585_vm0, %v18586_v36 }
 0x651   : >> { %17715 = vmatpush3.bf16.msra.mxu0 %v18826_v1  ;;  %17733 = vmatpush3.bf16.msra.mxu1 %v18785_v39 }
 0x652   : >> { %17722 = vmatprep.subr.bf16.mxu0 %v18584_v31  ;;  %17740 = vmatprep.subr.bf16.mxu1 %v18584_v31 }
 0x654   : >> { %16271 = vmatmul.mubr.f32.vlgmr.msra.gmra.mrb[80].mxu0 %v6986_v61  ;;  %16304 = vmatmul.mubr.f32.vlgmr.msra.gmra.mrb[82].mxu1 %v6985_v59 }
 0x655   : >> { %17724 = vmatpush3.bf16.msra.mxu0 %v18840_v16  ;;  %16292 = vmatprep.mubr.msk.f32.mxu0 %vm18585_vm0, %v18586_v36 }
 0x656   : >> { %17725 = vmatprep.subr.bf16.mxu0 %v18584_v31  ;;  %17742 = vmatpush3.bf16.msra.mxu1 %v18807_v58 }
 0x657   : >> { %17743 = vmatprep.subr.bf16.mxu1 %v18584_v31  ;;  %16325 = vmatprep.mubr.msk.f32.mxu1 %vm18585_vm0, %v18586_v36 }
 0x659   : >> { %17727 = vmatpush3.bf16.msra.mxu0 %v18852_v18 }
 0x65a   : >> { %17745 = vmatpush3.bf16.msra.mxu1 %v18817_v63  ;;  %17734 = vmatprep.subr.bf16.mxu0 %v18584_v31 }
 0x65b   : >> { %17752 = vmatprep.subr.bf16.mxu1 %v18584_v31 }
 0x65c   : >> { %16293 = vmatmul.mubr.f32.vlgmr.msra.gmra.mrb[82].mxu0 %v6985_v59 }
 0x65d   : >> { %17736 = vmatpush3.bf16.msra.mxu0 %v18765_v33  ;;  %16314 = vmatprep.mubr.msk.f32.mxu0 %vm18585_vm0, %v18586_v36 }
 0x65e   : >> { %17737 = vmatprep.subr.bf16.mxu0 %v18584_v31 }
 0x661   : >> { %17739 = vmatpush3.bf16.msra.mxu0 %v18785_v39 }
 0x662   : >> { %17746 = vmatprep.subr.bf16.mxu0 %v18584_v31 }
 0x6ff   : >> { %v6573_v4 = vpop.f32.mrb[72].mxu1 }
 0x700   : >> { %v16195_v17 = vpop.f32.mrb[73].mxu1 }
 0x707   : >> { %v6730_v19 = vpop.f32.mrb[74].mxu1  ;;  %v6482_v26 = vpop.f32.mrb[72].mxu0 }
 0x708   : >> { %v6574_v27 = vadd.f32 %v6573_v4, %v6482_v26  ;;  %v16217_v28 = vpop.f32.mrb[75].mxu1  ;;  %v16184_v29 = vpop.f32.mrb[73].mxu0 }
 0x709   : >> { %v6909_v26 = vpop.permute.xlu0 %6908 }
 0x70f   : >> { %v6653_v30 = vpop.f32.mrb[74].mxu0  ;;  %v6888_v32 = vpop.f32.mrb[76].mxu1 }
 0x710   : >> { %v6654_v34 = vadd.f32 %v6653_v30, %v6574_v27  ;;  %v16206_v35 = vpop.f32.mrb[75].mxu0  ;;  %v16239_v37 = vpop.f32.mrb[77].mxu1  ;;  %v6911_v27 = vmul.f32 %v6909_v26, %v18724_v20 }
 0x711   : >> { %v19437_v35 = vpop.permute.xlu1 %7416 }
 0x712   : >> { %v6731_v38 = vadd.f32 %v6730_v19, %v6654_v34  ;;  %v6912_v37 = vadd.f32 %v6911_v27, %v18727_v21 }
 0x717   : >> { %v6813_v42 = vpop.f32.mrb[76].mxu0  ;;  %v7082_v43 = vpop.f32.mrb[78].mxu1 }
 0x718   : >> { %v6814_v45 = vadd.f32 %v6813_v42, %v6731_v38  ;;  %v16228_v46 = vpop.f32.mrb[77].mxu0  ;;  %v16261_v47 = vpop.f32.mrb[79].mxu1 }
 0x719   : >> { %v19446_v42 = vpop.permute.xlu1 %7925  ;;  %v19460_v46 = vpop.xlane.xlu0 %1303 }
 0x71a   : >> { %v6889_v48 = vadd.f32 %v6888_v32, %v6814_v45 }
 0x71c   : >> { %v6892_v49 = vadd.f32 %v6889_v48, %v6403_v44 }
 0x71d   : >> { %v790_v45 = vpop.xlane.xlu1 %789 }
 0x71e   : >> { %18486 = vtanh.f32 %v6892_v49  ;;  %v1812_v49 = vpop.xlane.xlu0 %1811 }
 0x71f   : >> { %v7239_v50 = vpop.f32.mrb[80].mxu1  ;;  %v6991_v51 = vpop.f32.mrb[78].mxu0 }
 0x720   : >> { %v7083_v52 = vadd.f32 %v7082_v43, %v6991_v51  ;;  %v16283_v53 = vpop.f32.mrb[81].mxu1  ;;  %v16250_v54 = vpop.f32.mrb[79].mxu0  ;;  %v793_v43 = vsub.s32 4, %v18690_v10 }
 0x722   : >> { %v19458_v44 = vrot.slane %v18712_v15, %v793_v43 }
 0x724   : >> { %v795_v48 = vadd.f32 %v19458_v44, %v790_v45  ;;  %v1813_v53 = vadd.f32 %v1812_v49, %v19458_v44 }
 0x727   : >> { %v7162_v55 = vpop.f32.mrb[80].mxu0  ;;  %v7397_v56 = vpop.f32.mrb[82].mxu1 }
 0x728   : >> { %v18487_v57 = vpop.eup %18486  ;;  %v7163_v59 = vadd.f32 %v7162_v55, %v7083_v52  ;;  %v16272_v60 = vpop.f32.mrb[81].mxu0 }
 0x729   : >> { %v16305_v61 = vpop.f32.mrb[83].mxu1  ;;  %v7422_v0 = vsel %vm296_vm1, %v18487_v57, 0  ;;  %v6894_v2 = vmul.f32 %v18487_v57, %v18733_v23  ;;  %v2321_v55 = vpop.xlane.xlu1 %2320 }
 0x72a   : >> { %v7493_v3 = vand.u32 4294901760, %v7422_v0  ;;  %v7240_v4 = vadd.f32 %v7239_v50, %v7163_v59 }
 0x72b   : >> { %v6895_v17 = vsel %vm296_vm1, %v6894_v2, 0.0 }
 0x72c   : >> { %v7494_v19 = vsub.f32 %v7422_v0, %v7493_v3  ;;  %16326 = vmatmul.mubr.f32.vlgmr.msra.gmra.mrb[84].mxu1 %v7493_v3  ;;  %6896 = vadd.xlane.f32.xlu0 %v6895_v17 }
 0x72d   : >> { %17754 = vmatpush3.bf16.msra.mxu1 %v18765_v33  ;;  %16347 = vmatprep.mubr.msk.f32.mxu1 %vm18585_vm0, %v18586_v36  ;;  %v3338_v59 = vpop.xlane.xlu1 %3337 }
 0x72e   : >> { %17755 = vmatprep.subr.bf16.mxu1 %v18584_v31  ;;  %v7495_v28 = vand.u32 4294901760, %v7494_v19  ;;  %v3339_v61 = vadd.f32 %v3338_v59, %v19458_v44 }
 0x72f   : >> { %v7322_v29 = vpop.f32.mrb[82].mxu0 }
 0x730   : >> { %v7323_v30 = vadd.f32 %v7322_v29, %v7240_v4  ;;  %v16294_v32 = vpop.f32.mrb[83].mxu0  ;;  %v7496_v34 = vsub.f32 %v7494_v19, %v7495_v28 }
 0x731   : >> { %17757 = vmatpush3.bf16.msra.mxu1 %v18785_v39  ;;  %v4355_v0 = vpop.xlane.xlu1 %4354 }
 0x732   : >> { %v7398_v38 = vadd.f32 %v7397_v56, %v7323_v30  ;;  %17764 = vmatprep.subr.bf16.mxu1 %v18584_v31  ;;  %v7497_v40 = vand.u32 4294901760, %v7496_v34  ;;  %v2322_v56 = vadd.f32 %v2321_v55, %v19458_v44  ;;  %v4356_v2 = vadd.f32 %v4355_v0, %v19458_v44 }
 0x733   : >> { %v7928_v0 = vmul.f32 %v19446_v42, %v18724_v20  ;;  %v2829_v42 = vpop.xlane.xlu0 %2828 }
 0x734   : >> { %v7401_v41 = vadd.f32 %v7398_v38, %v6912_v37  ;;  %16348 = vmatmul.mubr.f32.vlgmr.msra.gmra.mrb[86].mxu1 %v7495_v28  ;;  %16315 = vmatmul.mubr.f32.vlgmr.msra.gmra.mrb[84].mxu0 %v7497_v40 }
 0x735   : >> { %17748 = vmatpush3.bf16.msra.mxu0 %v18815_v62  ;;  %17766 = vmatpush3.bf16.msra.mxu1 %v18765_v33 }
 0x736   : >> { %18488 = vtanh.f32 %v7401_v41  ;;  %17749 = vmatprep.subr.bf16.mxu0 %v18584_v31  ;;  %17767 = vmatprep.subr.bf16.mxu1 %v18584_v31 }
 0x737   : >> { %16336 = vmatprep.mubr.msk.f32.mxu0 %vm18585_vm0, %v18586_v36  ;;  %16369 = vmatprep.mubr.msk.f32.mxu1 %vm18585_vm0, %v18586_v36 }
 0x739   : >> { %17751 = vmatpush3.bf16.msra.mxu0 %v18826_v1  ;;  %17769 = vmatpush3.bf16.msra.mxu1 %v18785_v39 }
 0x73a   : >> { %17758 = vmatprep.subr.bf16.mxu0 %v18584_v31  ;;  %17776 = vmatprep.subr.bf16.mxu1 %v18584_v31 }
 0x73c   : >> { %16337 = vmatmul.mubr.f32.vlgmr.msra.gmra.mrb[86].mxu0 %v7494_v19  ;;  %16370 = vmatmul.mubr.f32.vlgmr.msra.gmra.mrb[88].mxu1 %v7493_v3 }
 0x73d   : >> { %17760 = vmatpush3.bf16.msra.mxu0 %v18840_v16  ;;  %17778 = vmatpush3.bf16.msra.mxu1 %v18807_v58 }
 0x73e   : >> { %17761 = vmatprep.subr.bf16.mxu0 %v18584_v31  ;;  %17779 = vmatprep.subr.bf16.mxu1 %v18584_v31 }
 0x73f   : >> { %16358 = vmatprep.mubr.msk.f32.mxu0 %vm18585_vm0, %v18586_v36  ;;  %16391 = vmatprep.mubr.msk.f32.mxu1 %vm18585_vm0, %v18586_v36 }
 0x740   : >> { %v18489_v47 = vpop.eup %18488 }
 0x741   : >> { %17763 = vmatpush3.bf16.msra.mxu0 %v18852_v18  ;;  %17781 = vmatpush3.bf16.msra.mxu1 %v18817_v63  ;;  %v7931_v58 = vsel %vm296_vm1, %v18489_v47, 0  ;;  %v7403_v50 = vmul.f32 %v18489_v47, %v18733_v23 }
 0x742   : >> { %800 = vperm.xlu0 %18460, %v795_v48   ;;  %17770 = vmatprep.subr.bf16.mxu0 %v18584_v31  ;;  %v8002_v51 = vand.u32 4294901760, %v7931_v58 }
 0x743   : >> { %17788 = vmatprep.subr.bf16.mxu1 %v18584_v31  ;;  %v7404_v52 = vsel %vm296_vm1, %v7403_v50, 0.0 }
 0x744   : >> { %16359 = vmatmul.mubr.f32.vlgmr.msra.gmra.mrb[88].mxu0 %v7493_v3  ;;  %v8003_v54 = vsub.f32 %v7931_v58, %v8002_v51  ;;  %16392 = vmatmul.mubr.f32.vlgmr.msra.gmra.mrb[90].mxu1 %v8002_v51  ;;  %v5372_v3 = vpop.xlane.xlu1 %5371 }
 0x745   : >> { %17772 = vmatpush3.bf16.msra.mxu0 %v18765_v33  ;;  %17790 = vmatpush3.bf16.msra.mxu1 %v18765_v33 }
 0x746   : >> { %7405 = vadd.xlane.f32.xlu1 %v7404_v52  ;;  %1818 = vperm.xlu0 %18460, %v1813_v53   ;;  %v8004_v63 = vand.u32 4294901760, %v8003_v54 }
 0x747   : >> { %17773 = vmatprep.subr.bf16.mxu0 %v18584_v31  ;;  %17791 = vmatprep.subr.bf16.mxu1 %v18584_v31 }
 0x748   : >> { %16413 = vmatprep.mubr.msk.f32.mxu1 %vm18585_vm0, %v18586_v36  ;;  %16380 = vmatprep.mubr.msk.f32.mxu0 %vm18585_vm0, %v18586_v36  ;;  %v8005_v57 = vsub.f32 %v8003_v54, %v8004_v63 }
 0x749   : >> { %17775 = vmatpush3.bf16.msra.mxu0 %v18785_v39  ;;  %17793 = vmatpush3.bf16.msra.mxu1 %v18785_v39 }
 0x74a   : >> { %2325 = vperm.xlu0 %18460, %v2322_v56   ;;  %17782 = vmatprep.subr.bf16.mxu0 %v18584_v31  ;;  %v8006_v60 = vand.u32 4294901760, %v8005_v57 }
 0x74b   : >> { %17800 = vmatprep.subr.bf16.mxu1 %v18584_v31 }
 0x74c   : >> { %16414 = vmatmul.mubr.f32.vlgmr.msra.gmra.mrb[92].mxu1 %v8004_v63  ;;  %16381 = vmatmul.mubr.f32.vlgmr.msra.gmra.mrb[90].mxu0 %v8006_v60 }
 0x74d   : >> { %17784 = vmatpush3.bf16.msra.mxu0 %v18815_v62  ;;  %17802 = vmatpush3.bf16.msra.mxu1 %v18765_v33  ;;  %v5373_v33 = vadd.f32 %v5372_v3, %v19458_v44  ;;  %v6389_v62 = vpop.xlane.xlu1 %6388 }
 0x74e   : >> { %3342 = vperm.xlu0 %18460, %v3339_v61   ;;  %17785 = vmatprep.subr.bf16.mxu0 %v18584_v31 }
 0x74f   : >> { %17803 = vmatprep.subr.bf16.mxu1 %v18584_v31  ;;  %16402 = vmatprep.mubr.msk.f32.mxu0 %vm18585_vm0, %v18586_v36 }
 0x750   : >> { %16435 = vmatprep.mubr.msk.f32.mxu1 %vm18585_vm0, %v18586_v36 }
 0x751   : >> { %17787 = vmatpush3.bf16.msra.mxu0 %v18826_v1  ;;  %17805 = vmatpush3.bf16.msra.mxu1 %v18785_v39  ;;  %v6390_v1 = vadd.f32 %v6389_v62, %v19458_v44  ;;  %v7929_v62 = vadd.f32 %v7928_v0, %v18727_v21 }
 0x752   : >> { %4359 = vperm.xlu0 %18460, %v4356_v2   ;;  %17794 = vmatprep.subr.bf16.mxu0 %v18584_v31 }
 0x754   : >> { %16403 = vmatmul.mubr.f32.vlgmr.msra.gmra.mrb[92].mxu0 %v8003_v54  ;;  %16436 = vmatmul.mubr.f32.vlgmr.msra.gmra.mrb[94].mxu1 %v8002_v51 }
 0x755   : >> { %17796 = vmatpush3.bf16.msra.mxu0 %v18840_v16  ;;  %16424 = vmatprep.mubr.msk.f32.mxu0 %vm18585_vm0, %v18586_v36  ;;  %vm12934_vm0 = vcmp.eq.s32.totalorder (%p276_p9), %v18707_v14, 20 }
 0x756   : >> { %5376 = vperm.xlu0 %18460, %v5373_v33   ;;  %17797 = vmatprep.subr.bf16.mxu0 %v18584_v31 }
 0x759   : >> { %17799 = vmatpush3.bf16.msra.mxu0 %v18852_v18  ;;  %v7419_v18 = vmul.f32 %v19437_v35, %v18724_v20 }
 0x75a   : >> { %6393 = vperm.xlu0 %18460, %v6390_v1  }
 0x75b   : >> { %v7420_v41 = vadd.f32 %v7419_v18, %v18727_v21 }
 0x75c   : >> { %16425 = vmatmul.mubr.f32.vlgmr.msra.gmra.mrb[94].mxu0 %v8002_v51 }
 0x7d3   : >> { %v7406_v39 = vpop.xlane.xlu1 %7405 }
 0x7d4   : >> { %v7407_v4 = vadd.f32 %v7406_v39, %v19458_v44 }
 0x7d6   : >> { %7410 = vperm.xlu0 %18460, %v7407_v4  }
 0x7ff   : >> { %v7590_v17 = vpop.f32.mrb[84].mxu1 }
 0x800   : >> { %v16327_v19 = vpop.f32.mrb[85].mxu1 }
 0x807   : >> { %v7747_v26 = vpop.f32.mrb[86].mxu1  ;;  %v7499_v16 = vpop.f32.mrb[84].mxu0 }
 0x808   : >> { %v7591_v27 = vadd.f32 %v7590_v17, %v7499_v16  ;;  %v16349_v28 = vpop.f32.mrb[87].mxu1  ;;  %v16316_v36 = vpop.f32.mrb[85].mxu0  ;;  %v1305_v16 = vadd.f32 %v19460_v46, %v19458_v44 }
 0x809   : >> { %v3846_v28 = vpop.xlane.xlu0 %3845 }
 0x80a   : >> { %v3847_v36 = vadd.f32 %v3846_v28, %v19458_v44 }
 0x80f   : >> { %v7670_v29 = vpop.f32.mrb[86].mxu0  ;;  %v7905_v30 = vpop.f32.mrb[88].mxu1 }
 0x810   : >> { %v7671_v31 = vadd.f32 %v7670_v29, %v7591_v27  ;;  %v16338_v32 = vpop.f32.mrb[87].mxu0  ;;  %v16371_v34 = vpop.f32.mrb[89].mxu1 }
 0x811   : >> { %v4863_v29 = vpop.xlane.xlu0 %4862 }
 0x812   : >> { %v7748_v37 = vadd.f32 %v7747_v26, %v7671_v31 }
 0x817   : >> { %v7830_v38 = vpop.f32.mrb[88].mxu0  ;;  %v8099_v40 = vpop.f32.mrb[90].mxu1 }
 0x818   : >> { %v7831_v43 = vadd.f32 %v7830_v38, %v7748_v37  ;;  %v16360_v45 = vpop.f32.mrb[89].mxu0  ;;  %v16393_v47 = vpop.f32.mrb[91].mxu1 }
 0x81a   : >> { %v7906_v48 = vadd.f32 %v7905_v30, %v7831_v43  ;;  %v5880_v30 = vpop.xlane.xlu0 %5879 }
 0x81b   : >> { %v5881_v31 = vadd.f32 %v5880_v30, %v19458_v44 }
 0x81c   : >> { %v7909_v49 = vadd.f32 %v7906_v48, %v7420_v41  ;;  %v796_v48 = vstv %s14538_s11 }
 0x81d   : >> { %vm19540_vm2 = vcmp.eq.s32.totalorder %v18707_v14, %v796_v48 }
 0x81e   : >> { %18490 = vtanh.f32 %v7909_v49  ;;  %v6897_v32 = vpop.xlane.xlu0 %6896  ;;  %v1814_v49 = vstv %s1312_s12 }
 0x81f   : >> { %v8256_v58 = vpop.f32.mrb[92].mxu1  ;;  %v8008_v50 = vpop.f32.mrb[90].mxu0  ;;  %v6898_v46 = vadd.f32 %v6897_v32, %v19458_v44  ;;  %vm1815_vm3 = vcmp.eq.s32.totalorder %v18707_v14, %v1814_v49 }
 0x820   : >> { %v8100_v51 = vadd.f32 %v8099_v40, %v8008_v50  ;;  %v16415_v52 = vpop.f32.mrb[93].mxu1  ;;  %v16382_v53 = vpop.f32.mrb[91].mxu0 }
 0x821   : >> { %v2831_v52 = vstv %s2329_s13  ;;  %v3848_v53 = vstv %s3346_s14 }
 0x822   : >> { %v801_v45 = vpop.permute.xlu0 %800  ;;  %vm2832_vm4 = vcmp.eq.s32.totalorder %v18707_v14, %v2831_v52  ;;  %vm3849_vm5 = vcmp.eq.s32.totalorder %v18707_v14, %v3848_v53 }
 0x827   : >> { %v8179_v54 = vpop.f32.mrb[92].mxu0  ;;  %v8414_v55 = vpop.f32.mrb[94].mxu1 }
 0x828   : >> { %v19516_v27 = vpop.eup %18490   ;;  %v8180_v35 = vadd.f32 %v8179_v54, %v8100_v51  ;;  %v16404_v56 = vpop.f32.mrb[93].mxu0  ;;  %v803_v54 = vsel %vm19540_vm2, %v801_v45, %v18570_v25 }
 0x829   : >> { %v20260_v63 = vmov %v19516_v27  ;;  %v16437_v57 = vpop.f32.mrb[95].mxu1  ;;  %v2830_v27 = vadd.f32 %v2829_v42, %v19458_v44 }
 0x82a   : >> { %v7911_v59 = vmul.f32 %v20260_v63, %v18733_v23  ;;  %v8257_v60 = vadd.f32 %v8256_v58, %v8180_v35  ;;  %v1819_v58 = vpop.permute.xlu0 %1818  ;;  %v5882_v57 = vstv %s5380_s17 }
 0x82b   : >> { %v1821_v35 = vsel %vm1815_vm3, %v1819_v58, %v803_v54  ;;  %vm5883_vm7 = vcmp.eq.s32.totalorder %v18707_v14, %v5882_v57 }
 0x82c   : >> { %v7912_v61 = vsel %vm296_vm1, %v7911_v59, 0.0  ;;  %v7916_v59 = vstv %s7414_s18 }
 0x82d   : >> { %7913 = vadd.xlane.f32.xlu1 %v7912_v61  ;;  %v6899_v61 = vstv %s6397_s20  ;;  %vm7917_vm8 = vcmp.eq.s32.totalorder %v18707_v14, %v7916_v59 }
 0x82e   : >> { %v2326_v56 = vpop.permute.xlu0 %2325  ;;  %vm6900_vm9 = vcmp.eq.s32.totalorder %v18707_v14, %v6899_v61 }
 0x82f   : >> { %v8339_v2 = vpop.f32.mrb[94].mxu0 }
 0x830   : >> { %v8340_v3 = vadd.f32 %v8339_v2, %v8257_v60  ;;  %v16426_v33 = vpop.f32.mrb[95].mxu0 }
 0x832   : >> { %v8415_v1 = vadd.f32 %v8414_v55, %v8340_v3  ;;  %v4865_v55 = vstv %s4363_s15 }
 0x833   : >> { %vm4866_vm6 = vcmp.eq.s32.totalorder %v18707_v14, %v4865_v55 }
 0x834   : >> { %v8418_v39 = vadd.f32 %v8415_v1, %v7929_v62  ;;  %v3343_v1 = vpop.permute.xlu0 %3342 }
 0x836   : >> { %18492 = vtanh.f32 %v8418_v39 }
 0x840   : >> { %v19524_v26 = vpop.eup %18492  }
 0x841   : >> { %v20261_v4 = vmov %v19524_v26  ;;  %v4864_v26 = vadd.f32 %v4863_v29, %v19458_v44 }
 0x842   : >> { %v8420_v17 = vmul.f32 %v20261_v4, %v18733_v23  ;;  %v8938_v6 = vsel (%p276_p9), %vm296_vm1, %v20261_v4, 0 }
 0x843   : > { %v19625_v8 = vand.u32 (%p276_p9), 4294901760, %v8938_v6 }
 0x844   : >> { %v8421_v19 = vsel %vm296_vm1, %v8420_v17, 0.0 }
 0x845   : >> { %8422 = vadd.xlane.f32.xlu1 %v8421_v19  ;;  %v4360_v19 = vpop.permute.xlu0 %4359 }
 0x856   : >> { %1308 = vperm.xlu1 %18461, %v1305_v16  }
 0x85a   : >> { %2835 = vperm.xlu1 %18461, %v2830_v27   ;;  %v5377_v27 = vpop.permute.xlu0 %5376 }
 0x85e   : >> { %3852 = vperm.xlu1 %18461, %v3847_v36   ;;  %v6394_v29 = vpop.permute.xlu0 %6393 }
 0x862   : >> { %4869 = vperm.xlu1 %18461, %v4864_v26   ;;  %v7411_v30 = vpop.permute.xlu0 %7410 }
 0x866   : >> { %5886 = vperm.xlu1 %18461, %v5881_v31  }
 0x86a   : >> { %6903 = vperm.xlu1 %18461, %v6898_v46   ;;  %v8436_v46 = vand.u32 (%p276_p9), 4294901760, %v18688_v9 }
 0x86c   : > { %v19623_v7 = vsub.f32 (%p276_p9), %v18688_v9, %v8436_v46 }
 0x86e   : > { %v8517_v9 = vand.u32 (%p276_p9), 4294901760, %v19623_v7 }
 0x8ba   : >> { %v7914_v34 = vpop.xlane.xlu1 %7913 }
 0x8bb   : >> { %v7915_v37 = vadd.f32 %v7914_v34, %v19458_v44  ;;  %v8439_v34 = vand.u32 (%p276_p9), 4294901760, %v18695_v11 }
 0x8bd   : >> { %7920 = vperm.xlu1 %18461, %v7915_v37   ;;  %v8442_v37 = vand.u32 (%p276_p9), 4294901760, %v18700_v12  ;;  %v19628_v10 = vsub.f32 (%p276_p9), %v18695_v11, %v8439_v34  ;;  %v19647_v11 = vsub.f32 (%p276_p9), %v8938_v6, %v19625_v8 }
 0x8bf   : > { %v19631_v15 = vsub.f32 (%p276_p9), %v18700_v12, %v8442_v37  ;;  %v8524_v12 = vand.u32 (%p276_p9), 4294901760, %v19628_v10  ;;  %v9011_v48 = vand.u32 (%p276_p9), 4294901760, %v19647_v11  ;;  %v19683_v61 = vpack.c.bf16 (%p276_p9), %v19628_v10, %v19623_v7 }
 0x8c1   : > { %v8525_v49 = vsub.f32 (%p276_p9), %v19628_v10, %v8524_v12  ;;  %v9012_v53 = vsub.f32 (%p276_p9), %v19647_v11, %v9011_v48 }
 0x8c3   : > { %v8526_v54 = vand.u32 (%p276_p9), 4294901760, %v8525_v49  ;;  %v9013_v57 = vand.u32 (%p276_p9), 4294901760, %v9012_v53 }
 0x8d2   : >> { %v8423_v18 = vpop.xlane.xlu1 %8422 }
 0x8d3   : >> { %v8424_v38 = vadd.f32 %v8423_v18, %v19458_v44  ;;  %v18595_v18 = vmov (%p276_p9), 0.0|0.0  }
 0x8d4   : > { %17806 = vmatprep.subr.bf16.mxu0 (%p276_p9), %v18595_v18  ;;  %17842 = vmatprep.subr.bf16.mxu1 (%p276_p9), %v18595_v18 }
 0x8d5   : >> { %8427 = vperm.xlu1 %18461, %v8424_v38   ;;  %v8445_v38 = vand.u32 (%p276_p9), 4294901760, %v18705_v13 }
 0x8d6   : >> { %v1309_v40 = vpop.permute.xlu1 %1308 }
 0x8d7   : >> { %v1311_v17 = vsel %vm19540_vm2, %v1309_v40, %v18566_v24  ;;  %v8433_v40 = vsel (%p276_p9), %vm296_vm1, %v20260_v63, 0  ;;  %v19635_v20 = vpack.c.bf16 (%p276_p9), %v8445_v38, %v8442_v37 }
 0x8d8   : >> { %v2328_v16 = vsel %vm1815_vm3, %v2326_v56, %v1311_v17  ;;  %v19618_v5 = vand.u32 (%p276_p9), 4294901760, %v8433_v40 }
 0x8d9   : >> { %v3345_v42 = vsel %vm2832_vm4, %v3343_v1, %v2328_v16 }
 0x8da   : >> { %v2836_v41 = vpop.permute.xlu1 %2835  ;;  %v4362_v28 = vsel %vm3849_vm5, %v4360_v19, %v3345_v42  ;;  %v19638_v21 = vsub.f32 (%p276_p9), %v8433_v40, %v19618_v5 }
 0x8db   : >> { %v2838_v60 = vsel %vm2832_vm4, %v2836_v41, %v1821_v35  ;;  %v5379_v36 = vsel %vm4866_vm6, %v5377_v27, %v4362_v28  ;;  %v20269_v27 = vmov %v20260_v63  ;;  %v19612_v41 = vpack.c.bf16 (%p276_p9), %v8439_v34, %v8436_v46 }
 0x8dc   : >> { %v6396_v26 = vsel %vm5883_vm7, %v6394_v29, %v5379_v36  ;;  %v19642_v63 = vsub.f32 (%p276_p9), %v18705_v13, %v8445_v38  ;;  %v8506_v45 = vand.u32 (%p276_p9), 4294901760, %v19638_v21 }
 0x8dd   : >> { %v7413_v31 = vsel %vm6900_vm9, %v7411_v30, %v6396_v26  ;;  %v20268_v26 = vmov %v20261_v4  ;;  %17808 = vmatpush3.bf16.msra.mxu0 (%p276_p9), %v19612_v41  ;;  %17844 = vmatpush3.bf16.msra.mxu1 (%p276_p9), %v19612_v41  ;;  %v8531_v4 = vand.u32 (%p276_p9), 4294901760, %v19631_v15 }
 0x8de   : >> { %v3853_v43 = vpop.permute.xlu1 %3852  ;;  %17809 = vmatprep.subr.bf16.mxu0 (%p276_p9), %v18595_v18  ;;  %17845 = vmatprep.subr.bf16.mxu1 (%p276_p9), %v18595_v18  ;;  %v8538_v13 = vand.u32 (%p276_p9), 4294901760, %v19642_v63 }
 0x8df   : >> { %v3855_v2 = vsel %vm3849_vm5, %v3853_v43, %v2838_v60  ;;  %v18597_v43 = vmov (%p276_p9), 0.0   ;;  %v8532_v58 = vsub.f32 (%p276_p9), %v19631_v15, %v8531_v4 }
 0x8e0   : > { %16446 = vmatprep.mubr.msk.f32.mxu0 (%p276_p9), %vm18596_vm10, %v18597_v43  ;;  %16512 = vmatprep.mubr.msk.f32.mxu1 (%p276_p9), %vm18596_vm10, %v18597_v43  ;;  %v8539_v52 = vsub.f32 (%p276_p9), %v19642_v63, %v8538_v13 }
 0x8e1   : > { %17811 = vmatpush3.bf16.msra.mxu0 (%p276_p9), %v19635_v20  ;;  %17847 = vmatpush3.bf16.msra.mxu1 (%p276_p9), %v19635_v20  ;;  %v8533_v55 = vand.u32 (%p276_p9), 4294901760, %v8532_v58 }
 0x8e2   : >> { %v4870_v47 = vpop.permute.xlu1 %4869  ;;  %17812 = vmatprep.subr.bf16.mxu0 (%p276_p9), %v18595_v18  ;;  %17848 = vmatprep.subr.bf16.mxu1 (%p276_p9), %v18595_v18  ;;  %v8540_v56 = vand.u32 (%p276_p9), 4294901760, %v8539_v52 }
 0x8e3   : >> { %v4872_v25 = vsel %vm4866_vm6, %v4870_v47, %v3855_v2  ;;  %v8518_v47 = vsub.f32 (%p276_p9), %v19623_v7, %v8517_v9  ;;  %v19719_v2 = vpack.c.bf16 (%p276_p9), %v8524_v12, %v8517_v9 }
 0x8e4   : > { %16513 = vmatmul.mubr.f32.vlgmr.msra.gmra.mrb[0].mxu1 (%p276_p9), %v9013_v57  ;;  %v19671_v60 = vpack.c.bf16 (%p276_p9), %v8540_v56, %v8533_v55 }
 0x8e5   : > { %v8519_v51 = vand.u32 (%p276_p9), 4294901760, %v8518_v47  ;;  %16523 = vmatprep.mubr.msk.f32.mxu1 (%p276_p9), %vm18596_vm10, %v18597_v43 }
 0x8e6   : >> { %v5887_v50 = vpop.permute.xlu1 %5886 }
 0x8e7   : >> { %v5889_v3 = vsel %vm5883_vm7, %v5887_v50, %v4872_v25  ;;  %v8507_v50 = vsub.f32 (%p276_p9), %v19638_v21, %v8506_v45  ;;  %v19668_v59 = vpack.c.bf16 (%p276_p9), %v8526_v54, %v8519_v51 }
 0x8e9   : > { %v8508_v35 = vand.u32 (%p276_p9), 4294901760, %v8507_v50  ;;  %17850 = vmatpush3.bf16.msra.mxu1 (%p276_p9), %v19668_v59 }
 0x8ea   : >> { %v6904_v0 = vpop.permute.xlu1 %6903  ;;  %17851 = vmatprep.subr.bf16.mxu1 (%p276_p9), %v18595_v18 }
 0x8eb   : >> { %v6906_v33 = vsel %vm6900_vm9, %v6904_v0, %v5889_v3  ;;  %16447 = vmatmul.mubr.f32.vlgmr.msra.gmra.mrb[0].mxu0 (%p276_p9), %v8508_v35  ;;  %v19693_v0 = vpack.c.bf16 (%p276_p9), %v19642_v63, %v19631_v15 }
 0x8ec   : > { %17814 = vmatpush3.bf16.msra.mxu0 (%p276_p9), %v19668_v59  ;;  %16457 = vmatprep.mubr.msk.f32.mxu0 (%p276_p9), %vm18596_vm10, %v18597_v43 }
 0x8ed   : > { %17815 = vmatprep.subr.bf16.mxu0 (%p276_p9), %v18595_v18  ;;  %17853 = vmatpush3.bf16.msra.mxu1 (%p276_p9), %v19671_v60 }
 0x8ee   : > { %17854 = vmatprep.subr.bf16.mxu1 (%p276_p9), %v18595_v18 }
 0x8f0   : > { %17817 = vmatpush3.bf16.msra.mxu0 (%p276_p9), %v19671_v60  ;;  %16524 = vmatmul.mubr.f32.vlgmr.msra.gmra.mrb[0].mxu1 (%p276_p9), %v19625_v8 }
 0x8f1   : > { %17818 = vmatprep.subr.bf16.mxu0 (%p276_p9), %v18595_v18  ;;  %17856 = vmatpush3.bf16.msra.mxu1 (%p276_p9), %v19683_v61 }
 0x8f2   : > { %17857 = vmatprep.subr.bf16.mxu1 (%p276_p9), %v18595_v18  ;;  %16534 = vmatprep.mubr.msk.f32.mxu1 (%p276_p9), %vm18596_vm10, %v18597_v43 }
 0x8f3   : > { %16458 = vmatmul.mubr.f32.vlgmr.msra.gmra.mrb[0].mxu0 (%p276_p9), %v19618_v5 }
 0x8f4   : > { %17820 = vmatpush3.bf16.msra.mxu0 (%p276_p9), %v19683_v61  ;;  %16468 = vmatprep.mubr.msk.f32.mxu0 (%p276_p9), %vm18596_vm10, %v18597_v43 }
 0x8f5   : > { %17821 = vmatprep.subr.bf16.mxu0 (%p276_p9), %v18595_v18  ;;  %17859 = vmatpush3.bf16.msra.mxu1 (%p276_p9), %v19693_v0 }
 0x8f6   : > { %17860 = vmatprep.subr.bf16.mxu1 (%p276_p9), %v18595_v18 }
 0x8f8   : > { %17823 = vmatpush3.bf16.msra.mxu0 (%p276_p9), %v19693_v0  ;;  %16535 = vmatmul.mubr.f32.vlgmr.msra.gmra.mrb[0].mxu1 (%p276_p9), %v19647_v11 }
 0x8f9   : > { %17824 = vmatprep.subr.bf16.mxu0 (%p276_p9), %v18595_v18  ;;  %17862 = vmatpush3.bf16.msra.mxu1 (%p276_p9), %v19612_v41 }
 0x8fa   : > { %17863 = vmatprep.subr.bf16.mxu1 (%p276_p9), %v18595_v18  ;;  %16545 = vmatprep.mubr.msk.f32.mxu1 (%p276_p9), %vm18596_vm10, %v18597_v43 }
 0x8fb   : > { %16469 = vmatmul.mubr.f32.vlgmr.msra.gmra.mrb[0].mxu0 (%p276_p9), %v19638_v21 }
 0x8fc   : > { %17826 = vmatpush3.bf16.msra.mxu0 (%p276_p9), %v19612_v41  ;;  %16479 = vmatprep.mubr.msk.f32.mxu0 (%p276_p9), %vm18596_vm10, %v18597_v43 }
 0x8fd   : > { %17827 = vmatprep.subr.bf16.mxu0 (%p276_p9), %v18595_v18  ;;  %17865 = vmatpush3.bf16.msra.mxu1 (%p276_p9), %v19635_v20 }
 0x8fe   : > { %17866 = vmatprep.subr.bf16.mxu1 (%p276_p9), %v18595_v18 }
 0x900   : > { %17829 = vmatpush3.bf16.msra.mxu0 (%p276_p9), %v19635_v20  ;;  %16546 = vmatmul.mubr.f32.vlgmr.msra.gmra.mrb[0].mxu1 (%p276_p9), %v9011_v48 }
 0x901   : > { %17830 = vmatprep.subr.bf16.mxu0 (%p276_p9), %v18595_v18  ;;  %17868 = vmatpush3.bf16.msra.mxu1 (%p276_p9), %v19719_v2 }
 0x902   : > { %17869 = vmatprep.subr.bf16.mxu1 (%p276_p9), %v18595_v18  ;;  %16556 = vmatprep.mubr.msk.f32.mxu1 (%p276_p9), %vm18596_vm10, %v18597_v43 }
 0x903   : > { %16480 = vmatmul.mubr.f32.vlgmr.msra.gmra.mrb[0].mxu0 (%p276_p9), %v8506_v45 }
 0x904   : > { %17832 = vmatpush3.bf16.msra.mxu0 (%p276_p9), %v19719_v2  ;;  %16490 = vmatprep.mubr.msk.f32.mxu0 (%p276_p9), %vm18596_vm10, %v18597_v43 }
 0x905   : > { %17833 = vmatprep.subr.bf16.mxu0 (%p276_p9), %v18595_v18 }
 0x93c   : >> { %v7921_v62 = vpop.permute.xlu1 %7920 }
 0x93d   : >> { %v19568_v25 = vsel %vm7917_vm8, %v7921_v62, %v6906_v33  }
 0x93e   : >> { %v20264_v39 = vmov %v19568_v25 }
 0x93f   : >> { %v20267_v25 = vmov %v20264_v39 }
 0x940   : > { %v19727_v25 = vpack.c.bf16 (%p276_p9), %v8538_v13, %v8531_v4 }
 0x942   : > { %17835 = vmatpush3.bf16.msra.mxu0 (%p276_p9), %v19727_v25  ;;  %17871 = vmatpush3.bf16.msra.mxu1 (%p276_p9), %v19727_v25 }
 0x943   : > { %17836 = vmatprep.subr.bf16.mxu0 (%p276_p9), %v18595_v18  ;;  %17872 = vmatprep.subr.bf16.mxu1 (%p276_p9), %v18595_v18 }
 0x945   : > { %16491 = vmatmul.mubr.f32.vlgmr.msra.gmra.mrb[0].mxu0 (%p276_p9), %v19618_v5  ;;  %16557 = vmatmul.mubr.f32.vlgmr.msra.gmra.mrb[0].mxu1 (%p276_p9), %v19625_v8 }
 0x946   : > { %17838 = vmatpush3.bf16.msra.mxu0 (%p276_p9), %v19612_v41  ;;  %17874 = vmatpush3.bf16.msra.mxu1 (%p276_p9), %v19612_v41 }
 0x947   : > { %17839 = vmatprep.subr.bf16.mxu0 (%p276_p9), %v18595_v18  ;;  %17875 = vmatprep.subr.bf16.mxu1 (%p276_p9), %v18595_v18 }
 0x948   : > { %16501 = vmatprep.mubr.msk.f32.mxu0 (%p276_p9), %vm18596_vm10, %v18597_v43  ;;  %16567 = vmatprep.mubr.msk.f32.mxu1 (%p276_p9), %vm18596_vm10, %v18597_v43 }
 0x94a   : > { %17841 = vmatpush3.bf16.msra.mxu0 (%p276_p9), %v19635_v20  ;;  %17877 = vmatpush3.bf16.msra.mxu1 (%p276_p9), %v19635_v20 }
 0x94b   : > { %17878 = vmatprep.subr.bf16.mxu0 (%p276_p9), %v18595_v18  ;;  %17914 = vmatprep.subr.bf16.mxu1 (%p276_p9), %v18595_v18 }
 0x94d   : > { %16502 = vmatmul.mubr.f32.vlgmr.msra.gmra.mrb[0].mxu0 (%p276_p9), %v19618_v5  ;;  %16568 = vmatmul.mubr.f32.vlgmr.msra.gmra.mrb[0].mxu1 (%p276_p9), %v19625_v8 }
 0x94e   : > { %17880 = vmatpush3.bf16.msra.mxu0 (%p276_p9), %v19612_v41  ;;  %17916 = vmatpush3.bf16.msra.mxu1 (%p276_p9), %v19612_v41 }
 0x94f   : > { %17881 = vmatprep.subr.bf16.mxu0 (%p276_p9), %v18595_v18  ;;  %17917 = vmatprep.subr.bf16.mxu1 (%p276_p9), %v18595_v18 }
 0x950   : > { %16578 = vmatprep.mubr.msk.f32.mxu0 (%p276_p9), %vm18596_vm10, %v18597_v43  ;;  %16644 = vmatprep.mubr.msk.f32.mxu1 (%p276_p9), %vm18596_vm10, %v18597_v43 }
 0x951   : > { %278 = sbr.rel (!%p276_p9) target bundleno = 35 (0x23), region = 117 }
 0x952   : > { %17883 = vmatpush3.bf16.msra.mxu0 (%p276_p9), %v19635_v20  ;;  %17919 = vmatpush3.bf16.msra.mxu1 (%p276_p9), %v19635_v20 }
 0x953   : > { %17884 = vmatprep.subr.bf16.mxu0 (%p276_p9), %v18595_v18  ;;  %17920 = vmatprep.subr.bf16.mxu1 (%p276_p9), %v18595_v18 }
 0x954   : >> { %v8428_v24 = vpop.permute.xlu1 %8427 }
 0x955   : >> { %v19587_v24 = vsel %vm7917_vm8, %v8428_v24, %v7413_v31  }
 0x956   : >> { %v20265_v32 = vmov %v19587_v24 }
 0x957   : >> { %v20266_v24 = vmov %v20265_v32 }
 0xa20   : > { %v8916_v3 = vpop.f32.mrb[0].mxu0  ;;  %v9421_v62 = vpop.f32.mrb[0].mxu1 }
 0xa21   : > { %v18238_v33 = vadd.f32 %v8916_v3, %v18730_v22  ;;  %v16503_v1 = vpop.f32.mrb[1].mxu0  ;;  %v18239_v17 = vadd.f32 %v9421_v62, %v18730_v22  ;;  %v16569_v19 = vpop.f32.mrb[1].mxu1 }
 0xa23   : > { %18496 = vtanh.f32 %v18238_v33 }
 0xa24   : > { %18498 = vtanh.f32 %v18239_v17 }
 0xa2d   : > { %v18497_v16 = vpop.eup %18496 }
 0xa2e   : > { %v18499_v42 = vpop.eup %18498  ;;  %v9438_v27 = vsel %vm296_vm1, %v18497_v16, 0  ;;  %v8921_v28 = vmul.f32 %v18497_v16, %v18733_v23 }
 0xa2f   : > { %v19772_v36 = vand.u32 4294901760, %v9438_v27  ;;  %v9939_v29 = vsel %vm296_vm1, %v18499_v42, 0  ;;  %v9426_v26 = vmul.f32 %v18499_v42, %v18733_v23 }
 0xa30   : > { %v19776_v30 = vand.u32 4294901760, %v9939_v29  ;;  %v8922_v24 = vsel %vm296_vm1, %v8921_v28, 0.0 }
 0xa31   : > { %v9427_v31 = vsel %vm296_vm1, %v9426_v26, 0.0  ;;  %8923 = vadd.xlane.f32.xlu0 %v8922_v24  ;;  %v9510_v46 = vsub.f32 %v9438_v27, %v19772_v36 }
 0xa32   : > { %9428 = vadd.xlane.f32.xlu1 %v9427_v31  ;;  %v10011_v34 = vsub.f32 %v9939_v29, %v19776_v30 }
 0xa33   : > { %v9511_v37 = vand.u32 4294901760, %v9510_v46 }
 0xa34   : > { %v10012_v38 = vand.u32 4294901760, %v10011_v34 }
 0xa35   : > { %v9512_v40 = vsub.f32 %v9510_v46, %v9511_v37 }
 0xa36   : > { %v10013_v5 = vsub.f32 %v10011_v34, %v10012_v38 }
 0xa37   : > { %v9513_v6 = vand.u32 4294901760, %v9512_v40 }
 0xa38   : > { %v10014_v7 = vand.u32 4294901760, %v10013_v5 }
 0xa39   : > { %16579 = vmatmul.mubr.f32.vlgmr.msra.gmra.mrb[2].mxu0 %v9513_v6 }
 0xa3a   : > { %16645 = vmatmul.mubr.f32.vlgmr.msra.gmra.mrb[2].mxu1 %v10014_v7  ;;  %17886 = vmatpush3.bf16.msra.mxu0 %v19668_v59 }
 0xa3b   : > { %17922 = vmatpush3.bf16.msra.mxu1 %v19668_v59  ;;  %17887 = vmatprep.subr.bf16.mxu0 %v18595_v18 }
 0xa3c   : > { %17923 = vmatprep.subr.bf16.mxu1 %v18595_v18  ;;  %16589 = vmatprep.mubr.msk.f32.mxu0 %vm18596_vm10, %v18597_v43 }
 0xa3d   : > { %16655 = vmatprep.mubr.msk.f32.mxu1 %vm18596_vm10, %v18597_v43 }
 0xa3e   : > { %17889 = vmatpush3.bf16.msra.mxu0 %v19671_v60 }
 0xa3f   : > { %17925 = vmatpush3.bf16.msra.mxu1 %v19671_v60  ;;  %17890 = vmatprep.subr.bf16.mxu0 %v18595_v18 }
 0xa40   : > { %17926 = vmatprep.subr.bf16.mxu1 %v18595_v18 }
 0xa41   : > { %16590 = vmatmul.mubr.f32.vlgmr.msra.gmra.mrb[2].mxu0 %v19772_v36 }
 0xa42   : > { %16656 = vmatmul.mubr.f32.vlgmr.msra.gmra.mrb[2].mxu1 %v19776_v30  ;;  %17892 = vmatpush3.bf16.msra.mxu0 %v19683_v61 }
 0xa43   : > { %17928 = vmatpush3.bf16.msra.mxu1 %v19683_v61  ;;  %17893 = vmatprep.subr.bf16.mxu0 %v18595_v18 }
 0xa44   : > { %17929 = vmatprep.subr.bf16.mxu1 %v18595_v18  ;;  %16600 = vmatprep.mubr.msk.f32.mxu0 %vm18596_vm10, %v18597_v43 }
 0xa45   : > { %16666 = vmatprep.mubr.msk.f32.mxu1 %vm18596_vm10, %v18597_v43 }
 0xa46   : > { %17895 = vmatpush3.bf16.msra.mxu0 %v19693_v0 }
 0xa47   : > { %17931 = vmatpush3.bf16.msra.mxu1 %v19693_v0  ;;  %17896 = vmatprep.subr.bf16.mxu0 %v18595_v18 }
 0xa48   : > { %17932 = vmatprep.subr.bf16.mxu1 %v18595_v18 }
 0xa49   : > { %16601 = vmatmul.mubr.f32.vlgmr.msra.gmra.mrb[2].mxu0 %v9510_v46 }
 0xa4a   : > { %16667 = vmatmul.mubr.f32.vlgmr.msra.gmra.mrb[2].mxu1 %v10011_v34  ;;  %17898 = vmatpush3.bf16.msra.mxu0 %v19612_v41 }
 0xa4b   : > { %17934 = vmatpush3.bf16.msra.mxu1 %v19612_v41  ;;  %17899 = vmatprep.subr.bf16.mxu0 %v18595_v18 }
 0xa4c   : > { %17935 = vmatprep.subr.bf16.mxu1 %v18595_v18  ;;  %16611 = vmatprep.mubr.msk.f32.mxu0 %vm18596_vm10, %v18597_v43 }
 0xa4d   : > { %16677 = vmatprep.mubr.msk.f32.mxu1 %vm18596_vm10, %v18597_v43 }
 0xa4e   : > { %17901 = vmatpush3.bf16.msra.mxu0 %v19635_v20 }
 0xa4f   : > { %17937 = vmatpush3.bf16.msra.mxu1 %v19635_v20  ;;  %17902 = vmatprep.subr.bf16.mxu0 %v18595_v18 }
 0xa50   : > { %17938 = vmatprep.subr.bf16.mxu1 %v18595_v18 }
 0xa51   : > { %16612 = vmatmul.mubr.f32.vlgmr.msra.gmra.mrb[2].mxu0 %v9511_v37 }
 0xa52   : > { %16678 = vmatmul.mubr.f32.vlgmr.msra.gmra.mrb[2].mxu1 %v10012_v38  ;;  %17904 = vmatpush3.bf16.msra.mxu0 %v19719_v2 }
 0xa53   : > { %17940 = vmatpush3.bf16.msra.mxu1 %v19719_v2  ;;  %17905 = vmatprep.subr.bf16.mxu0 %v18595_v18 }
 0xa54   : > { %17941 = vmatprep.subr.bf16.mxu1 %v18595_v18  ;;  %16622 = vmatprep.mubr.msk.f32.mxu0 %vm18596_vm10, %v18597_v43 }
 0xa55   : > { %16688 = vmatprep.mubr.msk.f32.mxu1 %vm18596_vm10, %v18597_v43 }
 0xa56   : > { %17907 = vmatpush3.bf16.msra.mxu0 %v19727_v25 }
 0xa57   : > { %17943 = vmatpush3.bf16.msra.mxu1 %v19727_v25  ;;  %17908 = vmatprep.subr.bf16.mxu0 %v18595_v18 }
 0xa58   : > { %17944 = vmatprep.subr.bf16.mxu1 %v18595_v18 }
 0xa59   : > { %16623 = vmatmul.mubr.f32.vlgmr.msra.gmra.mrb[2].mxu0 %v19772_v36 }
 0xa5a   : > { %16689 = vmatmul.mubr.f32.vlgmr.msra.gmra.mrb[2].mxu1 %v19776_v30  ;;  %17910 = vmatpush3.bf16.msra.mxu0 %v19612_v41 }
 0xa5b   : > { %17946 = vmatpush3.bf16.msra.mxu1 %v19612_v41  ;;  %17911 = vmatprep.subr.bf16.mxu0 %v18595_v18 }
 0xa5c   : > { %17947 = vmatprep.subr.bf16.mxu1 %v18595_v18  ;;  %16633 = vmatprep.mubr.msk.f32.mxu0 %vm18596_vm10, %v18597_v43 }
 0xa5d   : > { %16699 = vmatprep.mubr.msk.f32.mxu1 %vm18596_vm10, %v18597_v43 }
 0xa5e   : > { %17913 = vmatpush3.bf16.msra.mxu0 %v19635_v20 }
 0xa5f   : > { %17949 = vmatpush3.bf16.msra.mxu1 %v19635_v20  ;;  %17950 = vmatprep.subr.bf16.mxu0 %v18595_v18 }
 0xa60   : > { %17986 = vmatprep.subr.bf16.mxu1 %v18595_v18 }
 0xa61   : > { %16634 = vmatmul.mubr.f32.vlgmr.msra.gmra.mrb[2].mxu0 %v19772_v36 }
 0xa62   : > { %16700 = vmatmul.mubr.f32.vlgmr.msra.gmra.mrb[2].mxu1 %v19776_v30  ;;  %17952 = vmatpush3.bf16.msra.mxu0 %v19612_v41 }
 0xa63   : > { %17988 = vmatpush3.bf16.msra.mxu1 %v19612_v41  ;;  %17953 = vmatprep.subr.bf16.mxu0 %v18595_v18 }
 0xa64   : > { %17989 = vmatprep.subr.bf16.mxu1 %v18595_v18  ;;  %16710 = vmatprep.mubr.msk.f32.mxu0 %vm18596_vm10, %v18597_v43 }
 0xa65   : > { %16776 = vmatprep.mubr.msk.f32.mxu1 %vm18596_vm10, %v18597_v43 }
 0xa66   : > { %17955 = vmatpush3.bf16.msra.mxu0 %v19635_v20 }
 0xa67   : > { %17991 = vmatpush3.bf16.msra.mxu1 %v19635_v20  ;;  %17956 = vmatprep.subr.bf16.mxu0 %v18595_v18 }
 0xa68   : > { %17992 = vmatprep.subr.bf16.mxu1 %v18595_v18 }
 0xb34   : > { %v9921_v8 = vpop.f32.mrb[2].mxu0 }
 0xb35   : > { %v18240_v10 = vadd.f32 %v9921_v8, %v18730_v22  ;;  %v10422_v15 = vpop.f32.mrb[2].mxu1  ;;  %v16635_v21 = vpop.f32.mrb[3].mxu0 }
 0xb36   : > { %v18241_v9 = vadd.f32 %v10422_v15, %v18730_v22  ;;  %v16701_v63 = vpop.f32.mrb[3].mxu1 }
 0xb37   : > { %18500 = vtanh.f32 %v18240_v10 }
 0xb38   : > { %18502 = vtanh.f32 %v18241_v9 }
 0xb41   : > { %v18501_v11 = vpop.eup %18500 }
 0xb42   : > { %v18503_v12 = vpop.eup %18502  ;;  %v10439_v4 = vsel %vm296_vm1, %v18501_v11, 0  ;;  %v9926_v45 = vmul.f32 %v18501_v11, %v18733_v23 }
 0xb43   : > { %v19864_v47 = vand.u32 4294901760, %v10439_v4  ;;  %v10940_v13 = vsel %vm296_vm1, %v18503_v12, 0  ;;  %v10427_v48 = vmul.f32 %v18503_v12, %v18733_v23 }
 0xb44   : > { %v19868_v49 = vand.u32 4294901760, %v10940_v13  ;;  %v9927_v58 = vsel %vm296_vm1, %v9926_v45, 0.0 }
 0xb45   : > { %v10428_v50 = vsel %vm296_vm1, %v10427_v48, 0.0  ;;  %9928 = vadd.xlane.f32.xlu1 %v9927_v58  ;;  %v10511_v51 = vsub.f32 %v10439_v4, %v19864_v47 }
 0xb46   : > { %10429 = vadd.xlane.f32.xlu0 %v10428_v50  ;;  %v11012_v52 = vsub.f32 %v10940_v13, %v19868_v49 }
 0xb47   : > { %v10512_v53 = vand.u32 4294901760, %v10511_v51 }
 0xb48   : > { %v11013_v54 = vand.u32 4294901760, %v11012_v52 }
 0xb49   : > { %v10513_v55 = vsub.f32 %v10511_v51, %v10512_v53 }
 0xb4a   : > { %v11014_v35 = vsub.f32 %v11012_v52, %v11013_v54 }
 0xb4b   : > { %v10514_v56 = vand.u32 4294901760, %v10513_v55 }
 0xb4c   : > { %v11015_v57 = vand.u32 4294901760, %v11014_v35 }
 0xb4d   : > { %16711 = vmatmul.mubr.f32.vlgmr.msra.gmra.mrb[4].mxu0 %v10514_v56 }
 0xb4e   : > { %16777 = vmatmul.mubr.f32.vlgmr.msra.gmra.mrb[4].mxu1 %v11015_v57  ;;  %17958 = vmatpush3.bf16.msra.mxu0 %v19668_v59 }
 0xb4f   : > { %17994 = vmatpush3.bf16.msra.mxu1 %v19668_v59  ;;  %17959 = vmatprep.subr.bf16.mxu0 %v18595_v18 }
 0xb50   : > { %17995 = vmatprep.subr.bf16.mxu1 %v18595_v18  ;;  %16721 = vmatprep.mubr.msk.f32.mxu0 %vm18596_vm10, %v18597_v43 }
 0xb51   : > { %16787 = vmatprep.mubr.msk.f32.mxu1 %vm18596_vm10, %v18597_v43 }
 0xb52   : > { %17961 = vmatpush3.bf16.msra.mxu0 %v19671_v60 }
 0xb53   : > { %17997 = vmatpush3.bf16.msra.mxu1 %v19671_v60  ;;  %17962 = vmatprep.subr.bf16.mxu0 %v18595_v18 }
 0xb54   : > { %17998 = vmatprep.subr.bf16.mxu1 %v18595_v18 }
 0xb55   : > { %16722 = vmatmul.mubr.f32.vlgmr.msra.gmra.mrb[4].mxu0 %v19864_v47 }
 0xb56   : > { %16788 = vmatmul.mubr.f32.vlgmr.msra.gmra.mrb[4].mxu1 %v19868_v49  ;;  %17964 = vmatpush3.bf16.msra.mxu0 %v19683_v61 }
 0xb57   : > { %18000 = vmatpush3.bf16.msra.mxu1 %v19683_v61  ;;  %17965 = vmatprep.subr.bf16.mxu0 %v18595_v18 }
 0xb58   : > { %18001 = vmatprep.subr.bf16.mxu1 %v18595_v18  ;;  %16732 = vmatprep.mubr.msk.f32.mxu0 %vm18596_vm10, %v18597_v43 }
 0xb59   : > { %16798 = vmatprep.mubr.msk.f32.mxu1 %vm18596_vm10, %v18597_v43 }
 0xb5a   : > { %17967 = vmatpush3.bf16.msra.mxu0 %v19693_v0 }
 0xb5b   : > { %18003 = vmatpush3.bf16.msra.mxu1 %v19693_v0  ;;  %17968 = vmatprep.subr.bf16.mxu0 %v18595_v18 }
 0xb5c   : > { %18004 = vmatprep.subr.bf16.mxu1 %v18595_v18 }
 0xb5d   : > { %16733 = vmatmul.mubr.f32.vlgmr.msra.gmra.mrb[4].mxu0 %v10511_v51 }
 0xb5e   : > { %16799 = vmatmul.mubr.f32.vlgmr.msra.gmra.mrb[4].mxu1 %v11012_v52  ;;  %17970 = vmatpush3.bf16.msra.mxu0 %v19612_v41 }
 0xb5f   : > { %18006 = vmatpush3.bf16.msra.mxu1 %v19612_v41  ;;  %17971 = vmatprep.subr.bf16.mxu0 %v18595_v18 }
 0xb60   : > { %18007 = vmatprep.subr.bf16.mxu1 %v18595_v18  ;;  %16743 = vmatprep.mubr.msk.f32.mxu0 %vm18596_vm10, %v18597_v43 }
 0xb61   : > { %16809 = vmatprep.mubr.msk.f32.mxu1 %vm18596_vm10, %v18597_v43 }
 0xb62   : > { %17973 = vmatpush3.bf16.msra.mxu0 %v19635_v20 }
 0xb63   : > { %18009 = vmatpush3.bf16.msra.mxu1 %v19635_v20  ;;  %17974 = vmatprep.subr.bf16.mxu0 %v18595_v18 }
 0xb64   : > { %18010 = vmatprep.subr.bf16.mxu1 %v18595_v18 }
 0xb65   : > { %16744 = vmatmul.mubr.f32.vlgmr.msra.gmra.mrb[4].mxu0 %v10512_v53 }
 0xb66   : > { %16810 = vmatmul.mubr.f32.vlgmr.msra.gmra.mrb[4].mxu1 %v11013_v54  ;;  %17976 = vmatpush3.bf16.msra.mxu0 %v19719_v2 }
 0xb67   : > { %18012 = vmatpush3.bf16.msra.mxu1 %v19719_v2  ;;  %17977 = vmatprep.subr.bf16.mxu0 %v18595_v18 }
 0xb68   : > { %18013 = vmatprep.subr.bf16.mxu1 %v18595_v18  ;;  %16754 = vmatprep.mubr.msk.f32.mxu0 %vm18596_vm10, %v18597_v43 }
 0xb69   : > { %16820 = vmatprep.mubr.msk.f32.mxu1 %vm18596_vm10, %v18597_v43 }
 0xb6a   : > { %17979 = vmatpush3.bf16.msra.mxu0 %v19727_v25 }
 0xb6b   : > { %18015 = vmatpush3.bf16.msra.mxu1 %v19727_v25  ;;  %17980 = vmatprep.subr.bf16.mxu0 %v18595_v18 }
 0xb6c   : > { %18016 = vmatprep.subr.bf16.mxu1 %v18595_v18 }
 0xb6d   : > { %16755 = vmatmul.mubr.f32.vlgmr.msra.gmra.mrb[4].mxu0 %v19864_v47 }
 0xb6e   : > { %16821 = vmatmul.mubr.f32.vlgmr.msra.gmra.mrb[4].mxu1 %v19868_v49  ;;  %17982 = vmatpush3.bf16.msra.mxu0 %v19612_v41 }
 0xb6f   : > { %18018 = vmatpush3.bf16.msra.mxu1 %v19612_v41  ;;  %17983 = vmatprep.subr.bf16.mxu0 %v18595_v18 }
 0xb70   : > { %18019 = vmatprep.subr.bf16.mxu1 %v18595_v18  ;;  %16765 = vmatprep.mubr.msk.f32.mxu0 %vm18596_vm10, %v18597_v43 }
 0xb71   : > { %16831 = vmatprep.mubr.msk.f32.mxu1 %vm18596_vm10, %v18597_v43 }
 0xb72   : > { %17985 = vmatpush3.bf16.msra.mxu0 %v19635_v20 }
 0xb73   : > { %18021 = vmatpush3.bf16.msra.mxu1 %v19635_v20  ;;  %18022 = vmatprep.subr.bf16.mxu0 %v18595_v18 }
 0xb74   : > { %18058 = vmatprep.subr.bf16.mxu1 %v18595_v18 }
 0xb75   : > { %16766 = vmatmul.mubr.f32.vlgmr.msra.gmra.mrb[4].mxu0 %v19864_v47 }
 0xb76   : > { %16832 = vmatmul.mubr.f32.vlgmr.msra.gmra.mrb[4].mxu1 %v19868_v49  ;;  %18024 = vmatpush3.bf16.msra.mxu0 %v19612_v41 }
 0xb77   : > { %18060 = vmatpush3.bf16.msra.mxu1 %v19612_v41  ;;  %18025 = vmatprep.subr.bf16.mxu0 %v18595_v18 }
 0xb78   : > { %18061 = vmatprep.subr.bf16.mxu1 %v18595_v18  ;;  %16842 = vmatprep.mubr.msk.f32.mxu0 %vm18596_vm10, %v18597_v43 }
 0xb79   : > { %16908 = vmatprep.mubr.msk.f32.mxu1 %vm18596_vm10, %v18597_v43 }
 0xb7a   : > { %18027 = vmatpush3.bf16.msra.mxu0 %v19635_v20 }
 0xb7b   : > { %18063 = vmatpush3.bf16.msra.mxu1 %v19635_v20  ;;  %18028 = vmatprep.subr.bf16.mxu0 %v18595_v18 }
 0xb7c   : > { %18064 = vmatprep.subr.bf16.mxu1 %v18595_v18 }
 0xc48   : > { %v10922_v3 = vpop.f32.mrb[4].mxu0 }
 0xc49   : > { %v18242_v33 = vadd.f32 %v10922_v3, %v18730_v22  ;;  %v11423_v62 = vpop.f32.mrb[4].mxu1  ;;  %v16767_v1 = vpop.f32.mrb[5].mxu0  ;;  %v18598_v3 = vmov 0  }
 0xc4a   : > { %v18243_v17 = vadd.f32 %v11423_v62, %v18730_v22  ;;  %v16833_v19 = vpop.f32.mrb[5].mxu1  ;;  %18494 = vset.pattern.permute.xlu1 %v18598_v3  ;;  %18495 = vset.pattern.permute.xlu0 %v18598_v3 }
 0xc4b   : > { %18504 = vtanh.f32 %v18242_v33 }
 0xc4c   : > { %18506 = vtanh.f32 %v18243_v17 }
 0xc55   : > { %v18505_v16 = vpop.eup %18504 }
 0xc56   : > { %v18507_v42 = vpop.eup %18506  ;;  %v11440_v27 = vsel %vm296_vm1, %v18505_v16, 0  ;;  %v10927_v28 = vmul.f32 %v18505_v16, %v18733_v23 }
 0xc57   : > { %v19956_v36 = vand.u32 4294901760, %v11440_v27  ;;  %v11941_v29 = vsel %vm296_vm1, %v18507_v42, 0  ;;  %v11428_v26 = vmul.f32 %v18507_v42, %v18733_v23 }
 0xc58   : > { %v19960_v30 = vand.u32 4294901760, %v11941_v29  ;;  %v10928_v24 = vsel %vm296_vm1, %v10927_v28, 0.0 }
 0xc59   : > { %v11429_v31 = vsel %vm296_vm1, %v11428_v26, 0.0  ;;  %10929 = vadd.xlane.f32.xlu1 %v10928_v24  ;;  %v11512_v46 = vsub.f32 %v11440_v27, %v19956_v36 }
 0xc5a   : > { %11430 = vadd.xlane.f32.xlu0 %v11429_v31  ;;  %v12013_v34 = vsub.f32 %v11941_v29, %v19960_v30 }
 0xc5b   : > { %v11513_v37 = vand.u32 4294901760, %v11512_v46 }
 0xc5c   : > { %v12014_v38 = vand.u32 4294901760, %v12013_v34 }
 0xc5d   : > { %v11514_v40 = vsub.f32 %v11512_v46, %v11513_v37 }
 0xc5e   : > { %v12015_v5 = vsub.f32 %v12013_v34, %v12014_v38 }
 0xc5f   : > { %v11515_v6 = vand.u32 4294901760, %v11514_v40 }
 0xc60   : > { %v12016_v7 = vand.u32 4294901760, %v12015_v5 }
 0xc61   : > { %16843 = vmatmul.mubr.f32.vlgmr.msra.gmra.mrb[6].mxu0 %v11515_v6 }
 0xc62   : > { %16909 = vmatmul.mubr.f32.vlgmr.msra.gmra.mrb[6].mxu1 %v12016_v7  ;;  %18030 = vmatpush3.bf16.msra.mxu0 %v19668_v59 }
 0xc63   : > { %18066 = vmatpush3.bf16.msra.mxu1 %v19668_v59  ;;  %18031 = vmatprep.subr.bf16.mxu0 %v18595_v18 }
 0xc64   : > { %18067 = vmatprep.subr.bf16.mxu1 %v18595_v18  ;;  %16853 = vmatprep.mubr.msk.f32.mxu0 %vm18596_vm10, %v18597_v43 }
 0xc65   : > { %16919 = vmatprep.mubr.msk.f32.mxu1 %vm18596_vm10, %v18597_v43 }
 0xc66   : > { %18033 = vmatpush3.bf16.msra.mxu0 %v19671_v60 }
 0xc67   : > { %18069 = vmatpush3.bf16.msra.mxu1 %v19671_v60  ;;  %18034 = vmatprep.subr.bf16.mxu0 %v18595_v18 }
 0xc68   : > { %18070 = vmatprep.subr.bf16.mxu1 %v18595_v18 }
 0xc69   : > { %16854 = vmatmul.mubr.f32.vlgmr.msra.gmra.mrb[6].mxu0 %v19956_v36 }
 0xc6a   : > { %16920 = vmatmul.mubr.f32.vlgmr.msra.gmra.mrb[6].mxu1 %v19960_v30  ;;  %18036 = vmatpush3.bf16.msra.mxu0 %v19683_v61 }
 0xc6b   : > { %18072 = vmatpush3.bf16.msra.mxu1 %v19683_v61  ;;  %18037 = vmatprep.subr.bf16.mxu0 %v18595_v18 }
 0xc6c   : > { %18073 = vmatprep.subr.bf16.mxu1 %v18595_v18  ;;  %16864 = vmatprep.mubr.msk.f32.mxu0 %vm18596_vm10, %v18597_v43 }
 0xc6d   : > { %16930 = vmatprep.mubr.msk.f32.mxu1 %vm18596_vm10, %v18597_v43 }
 0xc6e   : > { %18039 = vmatpush3.bf16.msra.mxu0 %v19693_v0 }
 0xc6f   : > { %18075 = vmatpush3.bf16.msra.mxu1 %v19693_v0  ;;  %18040 = vmatprep.subr.bf16.mxu0 %v18595_v18 }
 0xc70   : > { %18076 = vmatprep.subr.bf16.mxu1 %v18595_v18 }
 0xc71   : > { %16865 = vmatmul.mubr.f32.vlgmr.msra.gmra.mrb[6].mxu0 %v11512_v46 }
 0xc72   : > { %16931 = vmatmul.mubr.f32.vlgmr.msra.gmra.mrb[6].mxu1 %v12013_v34  ;;  %18042 = vmatpush3.bf16.msra.mxu0 %v19612_v41 }
 0xc73   : > { %18078 = vmatpush3.bf16.msra.mxu1 %v19612_v41  ;;  %18043 = vmatprep.subr.bf16.mxu0 %v18595_v18 }
 0xc74   : > { %18079 = vmatprep.subr.bf16.mxu1 %v18595_v18  ;;  %16875 = vmatprep.mubr.msk.f32.mxu0 %vm18596_vm10, %v18597_v43 }
 0xc75   : > { %16941 = vmatprep.mubr.msk.f32.mxu1 %vm18596_vm10, %v18597_v43 }
 0xc76   : > { %18045 = vmatpush3.bf16.msra.mxu0 %v19635_v20 }
 0xc77   : > { %18081 = vmatpush3.bf16.msra.mxu1 %v19635_v20  ;;  %18046 = vmatprep.subr.bf16.mxu0 %v18595_v18 }
 0xc78   : > { %18082 = vmatprep.subr.bf16.mxu1 %v18595_v18 }
 0xc79   : > { %16876 = vmatmul.mubr.f32.vlgmr.msra.gmra.mrb[6].mxu0 %v11513_v37 }
 0xc7a   : > { %16942 = vmatmul.mubr.f32.vlgmr.msra.gmra.mrb[6].mxu1 %v12014_v38  ;;  %18048 = vmatpush3.bf16.msra.mxu0 %v19719_v2 }
 0xc7b   : > { %18084 = vmatpush3.bf16.msra.mxu1 %v19719_v2  ;;  %18049 = vmatprep.subr.bf16.mxu0 %v18595_v18 }
 0xc7c   : > { %18085 = vmatprep.subr.bf16.mxu1 %v18595_v18  ;;  %16886 = vmatprep.mubr.msk.f32.mxu0 %vm18596_vm10, %v18597_v43 }
 0xc7d   : > { %16952 = vmatprep.mubr.msk.f32.mxu1 %vm18596_vm10, %v18597_v43 }
 0xc7e   : > { %18051 = vmatpush3.bf16.msra.mxu0 %v19727_v25 }
 0xc7f   : > { %18087 = vmatpush3.bf16.msra.mxu1 %v19727_v25  ;;  %18052 = vmatprep.subr.bf16.mxu0 %v18595_v18 }
 0xc80   : > { %18088 = vmatprep.subr.bf16.mxu1 %v18595_v18 }
 0xc81   : > { %16887 = vmatmul.mubr.f32.vlgmr.msra.gmra.mrb[6].mxu0 %v19956_v36 }
 0xc82   : > { %16953 = vmatmul.mubr.f32.vlgmr.msra.gmra.mrb[6].mxu1 %v19960_v30  ;;  %18054 = vmatpush3.bf16.msra.mxu0 %v19612_v41 }
 0xc83   : > { %18090 = vmatpush3.bf16.msra.mxu1 %v19612_v41  ;;  %18055 = vmatprep.subr.bf16.mxu0 %v18595_v18 }
 0xc84   : > { %18091 = vmatprep.subr.bf16.mxu1 %v18595_v18  ;;  %16897 = vmatprep.mubr.msk.f32.mxu0 %vm18596_vm10, %v18597_v43 }
 0xc85   : > { %16963 = vmatprep.mubr.msk.f32.mxu1 %vm18596_vm10, %v18597_v43 }
 0xc86   : > { %18057 = vmatpush3.bf16.msra.mxu0 %v19635_v20 }
 0xc87   : > { %18093 = vmatpush3.bf16.msra.mxu1 %v19635_v20  ;;  %18094 = vmatprep.subr.bf16.mxu0 %v18595_v18 }
 0xc88   : > { %18130 = vmatprep.subr.bf16.mxu1 %v18595_v18 }
 0xc89   : > { %16898 = vmatmul.mubr.f32.vlgmr.msra.gmra.mrb[6].mxu0 %v19956_v36 }
 0xc8a   : > { %16964 = vmatmul.mubr.f32.vlgmr.msra.gmra.mrb[6].mxu1 %v19960_v30  ;;  %18096 = vmatpush3.bf16.msra.mxu0 %v19612_v41 }
 0xc8b   : > { %18132 = vmatpush3.bf16.msra.mxu1 %v19612_v41  ;;  %18097 = vmatprep.subr.bf16.mxu0 %v18595_v18 }
 0xc8c   : > { %18133 = vmatprep.subr.bf16.mxu1 %v18595_v18  ;;  %16974 = vmatprep.mubr.msk.f32.mxu0 %vm18596_vm10, %v18597_v43 }
 0xc8d   : > { %17040 = vmatprep.mubr.msk.f32.mxu1 %vm18596_vm10, %v18597_v43 }
 0xc8e   : > { %18099 = vmatpush3.bf16.msra.mxu0 %v19635_v20 }
 0xc8f   : > { %18135 = vmatpush3.bf16.msra.mxu1 %v19635_v20  ;;  %18100 = vmatprep.subr.bf16.mxu0 %v18595_v18 }
 0xc90   : > { %18136 = vmatprep.subr.bf16.mxu1 %v18595_v18 }
 0xd5c   : > { %v11923_v8 = vpop.f32.mrb[6].mxu0 }
 0xd5d   : > { %v18244_v10 = vadd.f32 %v11923_v8, %v18730_v22  ;;  %v12424_v15 = vpop.f32.mrb[6].mxu1  ;;  %v16899_v21 = vpop.f32.mrb[7].mxu0 }
 0xd5e   : > { %v18245_v9 = vadd.f32 %v12424_v15, %v18730_v22  ;;  %v16965_v63 = vpop.f32.mrb[7].mxu1  ;;  %v20158_v15 = vpop.xlane.xlu0 %8923 }
 0xd5f   : > { %18508 = vtanh.f32 %v18244_v10  ;;  %v9429_v10 = vpop.xlane.xlu1 %9428 }
 0xd60   : > { %18510 = vtanh.f32 %v18245_v9 }
 0xd62   : > { %v10430_v21 = vpop.xlane.xlu0 %10429 }
 0xd66   : > { %v11431_v9 = vpop.xlane.xlu0 %11430 }
 0xd69   : > { %v18509_v11 = vpop.eup %18508 }
 0xd6a   : > { %v18511_v12 = vpop.eup %18510  ;;  %v12441_v4 = vsel %vm296_vm1, %v18509_v11, 0  ;;  %v11928_v45 = vmul.f32 %v18509_v11, %v18733_v23 }
 0xd6b   : > { %v20048_v47 = vand.u32 4294901760, %v12441_v4  ;;  %v12942_v13 = vsel %vm296_vm1, %v18511_v12, 0  ;;  %v12429_v48 = vmul.f32 %v18511_v12, %v18733_v23 }
 0xd6c   : > { %v20052_v49 = vand.u32 4294901760, %v12942_v13  ;;  %v11929_v58 = vsel %vm296_vm1, %v11928_v45, 0.0 }
 0xd6d   : > { %v12430_v50 = vsel %vm296_vm1, %v12429_v48, 0.0  ;;  %11930 = vadd.xlane.f32.xlu1 %v11929_v58  ;;  %v12513_v51 = vsub.f32 %v12441_v4, %v20048_v47  ;;  %v8929_v58 = vadd.f32 %v20158_v15, %v19458_v44 }
 0xd6e   : > { %12431 = vadd.xlane.f32.xlu0 %v12430_v50  ;;  %v13014_v52 = vsub.f32 %v12942_v13, %v20052_v49  ;;  %v9929_v50 = vpop.xlane.xlu1 %9928 }
 0xd6f   : > { %v12514_v53 = vand.u32 4294901760, %v12513_v51 }
 0xd70   : > { %v13015_v54 = vand.u32 4294901760, %v13014_v52 }
 0xd71   : > { %v12515_v55 = vsub.f32 %v12513_v51, %v12514_v53 }
 0xd72   : > { %v13016_v35 = vsub.f32 %v13014_v52, %v13015_v54 }
 0xd73   : > { %v12516_v56 = vand.u32 4294901760, %v12515_v55 }
 0xd74   : > { %v13017_v57 = vand.u32 4294901760, %v13016_v35 }
 0xd75   : > { %16975 = vmatmul.mubr.f32.vlgmr.msra.gmra.mrb[8].mxu0 %v12516_v56 }
 0xd76   : > { %17041 = vmatmul.mubr.f32.vlgmr.msra.gmra.mrb[8].mxu1 %v13017_v57  ;;  %18102 = vmatpush3.bf16.msra.mxu0 %v19668_v59 }
 0xd77   : > { %18138 = vmatpush3.bf16.msra.mxu1 %v19668_v59  ;;  %18103 = vmatprep.subr.bf16.mxu0 %v18595_v18 }
 0xd78   : > { %18139 = vmatprep.subr.bf16.mxu1 %v18595_v18  ;;  %16985 = vmatprep.mubr.msk.f32.mxu0 %vm18596_vm10, %v18597_v43 }
 0xd79   : > { %17051 = vmatprep.mubr.msk.f32.mxu1 %vm18596_vm10, %v18597_v43 }
 0xd7a   : > { %18105 = vmatpush3.bf16.msra.mxu0 %v19671_v60 }
 0xd7b   : > { %18141 = vmatpush3.bf16.msra.mxu1 %v19671_v60  ;;  %18106 = vmatprep.subr.bf16.mxu0 %v18595_v18 }
 0xd7c   : > { %18142 = vmatprep.subr.bf16.mxu1 %v18595_v18 }
 0xd7d   : > { %16986 = vmatmul.mubr.f32.vlgmr.msra.gmra.mrb[8].mxu0 %v20048_v47 }
 0xd7e   : > { %17052 = vmatmul.mubr.f32.vlgmr.msra.gmra.mrb[8].mxu1 %v20052_v49  ;;  %18108 = vmatpush3.bf16.msra.mxu0 %v19683_v61 }
 0xd7f   : > { %18144 = vmatpush3.bf16.msra.mxu1 %v19683_v61  ;;  %18109 = vmatprep.subr.bf16.mxu0 %v18595_v18 }
 0xd80   : > { %18145 = vmatprep.subr.bf16.mxu1 %v18595_v18  ;;  %16996 = vmatprep.mubr.msk.f32.mxu0 %vm18596_vm10, %v18597_v43 }
 0xd81   : > { %17062 = vmatprep.mubr.msk.f32.mxu1 %vm18596_vm10, %v18597_v43 }
 0xd82   : > { %18111 = vmatpush3.bf16.msra.mxu0 %v19693_v0 }
 0xd83   : > { %18147 = vmatpush3.bf16.msra.mxu1 %v19693_v0  ;;  %18112 = vmatprep.subr.bf16.mxu0 %v18595_v18 }
 0xd84   : > { %18148 = vmatprep.subr.bf16.mxu1 %v18595_v18 }
 0xd85   : > { %16997 = vmatmul.mubr.f32.vlgmr.msra.gmra.mrb[8].mxu0 %v12513_v51  ;;  %v10930_v51 = vpop.xlane.xlu1 %10929 }
 0xd86   : > { %17063 = vmatmul.mubr.f32.vlgmr.msra.gmra.mrb[8].mxu1 %v13014_v52  ;;  %18114 = vmatpush3.bf16.msra.mxu0 %v19612_v41  ;;  %v10931_v52 = vadd.f32 %v10930_v51, %v19458_v44 }
 0xd87   : > { %18150 = vmatpush3.bf16.msra.mxu1 %v19612_v41  ;;  %18115 = vmatprep.subr.bf16.mxu0 %v18595_v18 }
 0xd88   : > { %18151 = vmatprep.subr.bf16.mxu1 %v18595_v18  ;;  %17007 = vmatprep.mubr.msk.f32.mxu0 %vm18596_vm10, %v18597_v43 }
 0xd89   : > { %17073 = vmatprep.mubr.msk.f32.mxu1 %vm18596_vm10, %v18597_v43 }
 0xd8a   : > { %18117 = vmatpush3.bf16.msra.mxu0 %v19635_v20 }
 0xd8b   : > { %18153 = vmatpush3.bf16.msra.mxu1 %v19635_v20  ;;  %18118 = vmatprep.subr.bf16.mxu0 %v18595_v18 }
 0xd8c   : > { %18154 = vmatprep.subr.bf16.mxu1 %v18595_v18 }
 0xd8d   : > { %17008 = vmatmul.mubr.f32.vlgmr.msra.gmra.mrb[8].mxu0 %v12514_v53 }
 0xd8e   : > { %17074 = vmatmul.mubr.f32.vlgmr.msra.gmra.mrb[8].mxu1 %v13015_v54  ;;  %18120 = vmatpush3.bf16.msra.mxu0 %v19719_v2 }
 0xd8f   : > { %18156 = vmatpush3.bf16.msra.mxu1 %v19719_v2  ;;  %18121 = vmatprep.subr.bf16.mxu0 %v18595_v18 }
 0xd90   : > { %18157 = vmatprep.subr.bf16.mxu1 %v18595_v18  ;;  %17018 = vmatprep.mubr.msk.f32.mxu0 %vm18596_vm10, %v18597_v43 }
 0xd91   : > { %17084 = vmatprep.mubr.msk.f32.mxu1 %vm18596_vm10, %v18597_v43 }
 0xd92   : > { %18123 = vmatpush3.bf16.msra.mxu0 %v19727_v25 }
 0xd93   : > { %18159 = vmatpush3.bf16.msra.mxu1 %v19727_v25  ;;  %18124 = vmatprep.subr.bf16.mxu0 %v18595_v18 }
 0xd94   : > { %18160 = vmatprep.subr.bf16.mxu1 %v18595_v18 }
 0xd95   : > { %17019 = vmatmul.mubr.f32.vlgmr.msra.gmra.mrb[8].mxu0 %v20048_v47 }
 0xd96   : > { %17085 = vmatmul.mubr.f32.vlgmr.msra.gmra.mrb[8].mxu1 %v20052_v49  ;;  %18126 = vmatpush3.bf16.msra.mxu0 %v19612_v41 }
 0xd97   : > { %18162 = vmatpush3.bf16.msra.mxu1 %v19612_v41  ;;  %18127 = vmatprep.subr.bf16.mxu0 %v18595_v18 }
 0xd98   : > { %18163 = vmatprep.subr.bf16.mxu1 %v18595_v18  ;;  %17029 = vmatprep.mubr.msk.f32.mxu0 %vm18596_vm10, %v18597_v43 }
 0xd99   : > { %17095 = vmatprep.mubr.msk.f32.mxu1 %vm18596_vm10, %v18597_v43 }
 0xd9a   : > { %18129 = vmatpush3.bf16.msra.mxu0 %v19635_v20 }
 0xd9b   : > { %18165 = vmatpush3.bf16.msra.mxu1 %v19635_v20  ;;  %18166 = vmatprep.subr.bf16.mxu0 %v18595_v18 }
 0xd9c   : > { %18202 = vmatprep.subr.bf16.mxu1 %v18595_v18 }
 0xd9d   : > { %17030 = vmatmul.mubr.f32.vlgmr.msra.gmra.mrb[8].mxu0 %v20048_v47 }
 0xd9e   : > { %17096 = vmatmul.mubr.f32.vlgmr.msra.gmra.mrb[8].mxu1 %v20052_v49  ;;  %18168 = vmatpush3.bf16.msra.mxu0 %v19612_v41 }
 0xd9f   : > { %18204 = vmatpush3.bf16.msra.mxu1 %v19612_v41  ;;  %18169 = vmatprep.subr.bf16.mxu0 %v18595_v18 }
 0xda0   : > { %18205 = vmatprep.subr.bf16.mxu1 %v18595_v18  ;;  %17106 = vmatprep.mubr.msk.f32.mxu0 %vm18596_vm10, %v18597_v43 }
 0xda1   : > { %17172 = vmatprep.mubr.msk.f32.mxu1 %vm18596_vm10, %v18597_v43 }
 0xda2   : > { %18171 = vmatpush3.bf16.msra.mxu0 %v19635_v20 }
 0xda3   : > { %18207 = vmatpush3.bf16.msra.mxu1 %v19635_v20  ;;  %18172 = vmatprep.subr.bf16.mxu0 %v18595_v18 }
 0xda4   : > { %18208 = vmatprep.subr.bf16.mxu1 %v18595_v18 }
 0xdfa   : > { %v11931_v53 = vpop.xlane.xlu1 %11930 }
 0xdfb   : > { %v12432_v63 = vpop.xlane.xlu0 %12431  ;;  %v11932_v54 = vadd.f32 %v11931_v53, %v19458_v44 }
 0xe70   : > { %v12924_v33 = vpop.f32.mrb[8].mxu0 }
 0xe71   : > { %v18246_v62 = vadd.f32 %v12924_v33, %v18730_v22  ;;  %v13425_v1 = vpop.f32.mrb[8].mxu1  ;;  %v17031_v17 = vpop.f32.mrb[9].mxu0 }
 0xe72   : > { %v18247_v19 = vadd.f32 %v13425_v1, %v18730_v22  ;;  %v17097_v16 = vpop.f32.mrb[9].mxu1 }
 0xe73   : > { %18512 = vtanh.f32 %v18246_v62 }
 0xe74   : > { %18514 = vtanh.f32 %v18247_v19 }
 0xe7d   : > { %v18513_v42 = vpop.eup %18512 }
 0xe7e   : > { %v18515_v27 = vpop.eup %18514  ;;  %v13442_v28 = vsel %vm296_vm1, %v18513_v42, 0  ;;  %v12929_v36 = vmul.f32 %v18513_v42, %v18733_v23 }
 0xe7f   : > { %v20140_v29 = vand.u32 4294901760, %v13442_v28  ;;  %v13943_v26 = vsel %vm296_vm1, %v18515_v27, 0  ;;  %v13430_v30 = vmul.f32 %v18515_v27, %v18733_v23 }
 0xe80   : > { %v20144_v24 = vand.u32 4294901760, %v13943_v26  ;;  %v12930_v31 = vsel %vm296_vm1, %v12929_v36, 0.0 }
 0xe81   : > { %v13431_v46 = vsel %vm296_vm1, %v13430_v30, 0.0  ;;  %12931 = vadd.xlane.f32.xlu1 %v12930_v31  ;;  %v13514_v34 = vsub.f32 %v13442_v28, %v20140_v29 }
 0xe82   : > { %13432 = vadd.xlane.f32.xlu0 %v13431_v46  ;;  %v14015_v37 = vsub.f32 %v13943_v26, %v20144_v24 }
 0xe83   : > { %v13515_v38 = vand.u32 4294901760, %v13514_v34 }
 0xe84   : > { %v14016_v40 = vand.u32 4294901760, %v14015_v37 }
 0xe85   : > { %v13516_v5 = vsub.f32 %v13514_v34, %v13515_v38 }
 0xe86   : > { %v14017_v6 = vsub.f32 %v14015_v37, %v14016_v40 }
 0xe87   : > { %v13517_v7 = vand.u32 4294901760, %v13516_v5 }
 0xe88   : > { %v14018_v8 = vand.u32 4294901760, %v14017_v6 }
 0xe89   : > { %17107 = vmatmul.mubr.f32.vlgmr.msra.gmra.mrb[10].mxu0 %v13517_v7 }
 0xe8a   : > { %17173 = vmatmul.mubr.f32.vlgmr.msra.gmra.mrb[10].mxu1 %v14018_v8  ;;  %18174 = vmatpush3.bf16.msra.mxu0 %v19668_v59 }
 0xe8b   : > { %18210 = vmatpush3.bf16.msra.mxu1 %v19668_v59  ;;  %18175 = vmatprep.subr.bf16.mxu0 %v18595_v18  ;;  %v9430_v59 = vadd.f32 %v9429_v10, %v19458_v44 }
 0xe8c   : > { %18211 = vmatprep.subr.bf16.mxu1 %v18595_v18  ;;  %17117 = vmatprep.mubr.msk.f32.mxu0 %vm18596_vm10, %v18597_v43 }
 0xe8d   : > { %17183 = vmatprep.mubr.msk.f32.mxu1 %vm18596_vm10, %v18597_v43 }
 0xe8e   : > { %18177 = vmatpush3.bf16.msra.mxu0 %v19671_v60 }
 0xe8f   : > { %18213 = vmatpush3.bf16.msra.mxu1 %v19671_v60  ;;  %18178 = vmatprep.subr.bf16.mxu0 %v18595_v18  ;;  %v10431_v60 = vadd.f32 %v10430_v21, %v19458_v44 }
 0xe90   : > { %18214 = vmatprep.subr.bf16.mxu1 %v18595_v18 }
 0xe91   : > { %17118 = vmatmul.mubr.f32.vlgmr.msra.gmra.mrb[10].mxu0 %v20140_v29 }
 0xe92   : > { %17184 = vmatmul.mubr.f32.vlgmr.msra.gmra.mrb[10].mxu1 %v20144_v24  ;;  %18180 = vmatpush3.bf16.msra.mxu0 %v19683_v61 }
 0xe93   : > { %18216 = vmatpush3.bf16.msra.mxu1 %v19683_v61  ;;  %9433 = vperm.xlu1 %18494, %v9430_v59   ;;  %v11432_v61 = vadd.f32 %v11431_v9, %v19458_v44 }
 0xe94   : > { %18181 = vmatprep.subr.bf16.mxu0 %v18595_v18  ;;  %18217 = vmatprep.subr.bf16.mxu1 %v18595_v18 }
 0xe95   : > { %17128 = vmatprep.mubr.msk.f32.mxu0 %vm18596_vm10, %v18597_v43  ;;  %17194 = vmatprep.mubr.msk.f32.mxu1 %vm18596_vm10, %v18597_v43 }
 0xe96   : > { %18183 = vmatpush3.bf16.msra.mxu0 %v19693_v0 }
 0xe97   : > { %18219 = vmatpush3.bf16.msra.mxu1 %v19693_v0  ;;  %10434 = vperm.xlu1 %18494, %v10431_v60   ;;  %v12433_v0 = vadd.f32 %v12432_v63, %v19458_v44 }
 0xe98   : > { %18184 = vmatprep.subr.bf16.mxu0 %v18595_v18  ;;  %18220 = vmatprep.subr.bf16.mxu1 %v18595_v18 }
 0xe99   : > { %17129 = vmatmul.mubr.f32.vlgmr.msra.gmra.mrb[10].mxu0 %v13514_v34 }
 0xe9a   : > { %17195 = vmatmul.mubr.f32.vlgmr.msra.gmra.mrb[10].mxu1 %v14015_v37  ;;  %18186 = vmatpush3.bf16.msra.mxu0 %v19612_v41 }
 0xe9b   : > { %18222 = vmatpush3.bf16.msra.mxu1 %v19612_v41  ;;  %11435 = vperm.xlu1 %18494, %v11432_v61  }
 0xe9c   : > { %18187 = vmatprep.subr.bf16.mxu0 %v18595_v18  ;;  %18223 = vmatprep.subr.bf16.mxu1 %v18595_v18 }
 0xe9d   : > { %17139 = vmatprep.mubr.msk.f32.mxu0 %vm18596_vm10, %v18597_v43  ;;  %17205 = vmatprep.mubr.msk.f32.mxu1 %vm18596_vm10, %v18597_v43 }
 0xe9e   : > { %18189 = vmatpush3.bf16.msra.mxu0 %v19635_v20 }
 0xe9f   : > { %18225 = vmatpush3.bf16.msra.mxu1 %v19635_v20  ;;  %12436 = vperm.xlu1 %18494, %v12433_v0  }
 0xea0   : > { %18190 = vmatprep.subr.bf16.mxu0 %v18595_v18  ;;  %18226 = vmatprep.subr.bf16.mxu1 %v18595_v18 }
 0xea1   : > { %17140 = vmatmul.mubr.f32.vlgmr.msra.gmra.mrb[10].mxu0 %v13515_v38 }
 0xea2   : > { %17206 = vmatmul.mubr.f32.vlgmr.msra.gmra.mrb[10].mxu1 %v14016_v40  ;;  %18192 = vmatpush3.bf16.msra.mxu0 %v19719_v2 }
 0xea3   : > { %18228 = vmatpush3.bf16.msra.mxu1 %v19719_v2  ;;  %18193 = vmatprep.subr.bf16.mxu0 %v18595_v18 }
 0xea4   : > { %18229 = vmatprep.subr.bf16.mxu1 %v18595_v18  ;;  %17150 = vmatprep.mubr.msk.f32.mxu0 %vm18596_vm10, %v18597_v43 }
 0xea5   : > { %17216 = vmatprep.mubr.msk.f32.mxu1 %vm18596_vm10, %v18597_v43 }
 0xea6   : > { %18195 = vmatpush3.bf16.msra.mxu0 %v19727_v25 }
 0xea7   : > { %18231 = vmatpush3.bf16.msra.mxu1 %v19727_v25  ;;  %18196 = vmatprep.subr.bf16.mxu0 %v18595_v18 }
 0xea8   : > { %18232 = vmatprep.subr.bf16.mxu1 %v18595_v18 }
 0xea9   : > { %17151 = vmatmul.mubr.f32.vlgmr.msra.gmra.mrb[10].mxu0 %v20140_v29 }
 0xeaa   : > { %17217 = vmatmul.mubr.f32.vlgmr.msra.gmra.mrb[10].mxu1 %v20144_v24  ;;  %18198 = vmatpush3.bf16.msra.mxu0 %v19612_v41 }
 0xeab   : > { %18234 = vmatpush3.bf16.msra.mxu1 %v19612_v41  ;;  %18199 = vmatprep.subr.bf16.mxu0 %v18595_v18 }
 0xeac   : > { %18235 = vmatprep.subr.bf16.mxu1 %v18595_v18  ;;  %17161 = vmatprep.mubr.msk.f32.mxu0 %vm18596_vm10, %v18597_v43 }
 0xead   : > { %17227 = vmatprep.mubr.msk.f32.mxu1 %vm18596_vm10, %v18597_v43 }
 0xeae   : > { %18201 = vmatpush3.bf16.msra.mxu0 %v19635_v20 }
 0xeaf   : > { %18237 = vmatpush3.bf16.msra.mxu1 %v19635_v20 }
 0xeb1   : > { %17162 = vmatmul.mubr.f32.vlgmr.msra.gmra.mrb[10].mxu0 %v20140_v29 }
 0xeb2   : > { %17228 = vmatmul.mubr.f32.vlgmr.msra.gmra.mrb[10].mxu1 %v20144_v24 }
 0xf0f   : > { %v13433_v2 = vpop.xlane.xlu0 %13432 }
 0xf10   : > { %v13434_v41 = vadd.f32 %v13433_v2, %v19458_v44 }
 0xf12   : > { %13437 = vperm.xlu1 %18494, %v13434_v41  }
 0xf84   : > { %v13925_v25 = vpop.f32.mrb[10].mxu0 }
 0xf85   : > { %v18248_v18 = vadd.f32 %v13925_v25, %v18730_v22  ;;  %v14426_v11 = vpop.f32.mrb[10].mxu1  ;;  %v17163_v12 = vpop.f32.mrb[11].mxu0 }
 0xf86   : > { %v18249_v4 = vadd.f32 %v14426_v11, %v18730_v22  ;;  %v17229_v43 = vpop.f32.mrb[11].mxu1  ;;  %v9930_v22 = vadd.f32 %v9929_v50, %v19458_v44 }
 0xf87   : > { %18516 = vtanh.f32 %v18248_v18 }
 0xf88   : > { %18518 = vtanh.f32 %v18249_v4 }
 0xf91   : > { %v18517_v45 = vpop.eup %18516 }
 0xf92   : > { %v18519_v20 = vpop.eup %18518  ;;  %v13930_v47 = vmul.f32 %v18517_v45, %v18733_v23 }
 0xf93   : > { %v14431_v48 = vmul.f32 %v18519_v20, %v18733_v23  ;;  %v12932_v23 = vpop.xlane.xlu1 %12931 }
 0xf94   : > { %v13931_v13 = vsel %vm296_vm1, %v13930_v47, 0.0  ;;  %v12933_v55 = vadd.f32 %v12932_v23, %v19458_v44 }
 0xf95   : > { %13932 = vadd.xlane.f32.xlu0 %v13931_v13  ;;  %v14432_v49 = vsel %vm296_vm1, %v14431_v48, 0.0  ;;  %vm14442_vm1 = vcmask 179200  }
 0xf97   : > { %v9434_v1 = vpop.permute.xlu1 %9433 }
 0xf98   : > { %v9436_v30 = vsel %vm8930_vm11, %v9434_v1, %v20265_v32 }
 0xf99   : > { %14433 = vadd.xlane.f32.xlu0 %v14432_v49 }
 0xf9b   : > { %v10435_v19 = vpop.permute.xlu1 %10434 }
 0xf9c   : > { %v10437_v31 = vsel %vm9931_vm12, %v10435_v19, %v9436_v30 }
 0xf9f   : > { %v11436_v42 = vpop.permute.xlu1 %11435 }
 0xfa0   : > { %v11438_v37 = vsel %vm10932_vm13, %v11436_v42, %v10437_v31 }
 0xfa3   : > { %v12437_v36 = vpop.permute.xlu1 %12436 }
 0xfa4   : > { %v12439_v38 = vsel %vm11933_vm14, %v12437_v36, %v11438_v37 }
 0xfa7   : > { %v13438_v46 = vpop.permute.xlu1 %13437 }
 0xfa8   : > { %v13440_v40 = vsel %vm12934_vm0, %v13438_v46, %v12439_v38 }
 0xfaf   : > { %8933 = vperm.xlu0 %18495, %v8929_v58  }
 0xfb3   : > { %9934 = vperm.xlu0 %18495, %v9930_v22  }
 0xfb7   : > { %10935 = vperm.xlu0 %18495, %v10931_v52  }
 0xfbb   : > { %11936 = vperm.xlu0 %18495, %v11932_v54  }
 0xfbf   : > { %12937 = vperm.xlu0 %18495, %v12933_v55  }
0x1022   : > { %v13933_v35 = vpop.xlane.xlu0 %13932 }
0x1023   : > { %v13934_v56 = vadd.f32 %v13933_v35, %v19458_v44 }
0x1025   : > { %13938 = vperm.xlu0 %18495, %v13934_v56  }
0x1026   : > { %v14434_v57 = vpop.xlane.xlu0 %14433 }
0x1027   : > { %v14435_v3 = vadd.f32 %v14434_v57, %v19458_v44 }
0x1029   : > { %14438 = vperm.xlu0 %18495, %v14435_v3  }
0x102e   : > { %v8934_v33 = vpop.permute.xlu0 %8933 }
0x102f   : > { %v8936_v27 = vsel %vm8930_vm11, %v8934_v33, %v20264_v39 }
0x1032   : > { %v9935_v62 = vpop.permute.xlu0 %9934 }
0x1033   : > { %v9937_v44 = vsel %vm9931_vm12, %v9935_v62, %v8936_v27 }
0x1036   : > { %v10936_v17 = vpop.permute.xlu0 %10935 }
0x1037   : > { %v10938_v29 = vsel %vm10932_vm13, %v10936_v17, %v9937_v44 }
0x103a   : > { %v11937_v16 = vpop.permute.xlu0 %11936 }
0x103b   : > { %v11939_v26 = vsel %vm11933_vm14, %v11937_v16, %v10938_v29 }
0x103e   : > { %v12938_v28 = vpop.permute.xlu0 %12937 }
0x103f   : > { %v12940_v24 = vsel %vm12934_vm0, %v12938_v28, %v11939_v26 }
0x10a4   : > { %v13939_v39 = vpop.permute.xlu0 %13938 }
0x10a5   : > { %v13941_v34 = vsel %vm13935_vm15, %v13939_v39, %v12940_v24 }
0x10a6   : > { %14443 = vst.msk [vmem:[%s18721_s6] sm:$0xff] %vm14442_vm1, %v13941_v34 }
0x10a8   : > { %v14439_v5 = vpop.permute.xlu0 %14438 }
0x10a9   : > { %v14441_v6 = vsel %vm13935_vm15, %v14439_v5, %v13440_v40 }
0x10aa   : > { %14444 = vst.msk [vmem:[%s18721_s6 + $0x8] sm:$0xff] %vm14442_vm1, %v14441_v6 }
0x10ab PF: > { %p11_p10 = scmp.ge.s32.totalorder %s18641_s19, 4   ;;  %s20270_s15 = smov %s18558_s16 }
0x10ac   : > { %s20271_s16 = smov %s18650_s22  ;;  %s20272_s17 = smov %s18641_s19 }
0x10ad   :  { %13 = sbr.rel (!%p11_p10) target bundleno = 2 (0x2), region = 128 }

</bundles_post_ra>
